<compile_context>
chip_gen: v5e
topology: v5e:2x2
jax: 0.10.0
libtpu: 0.0.40
codegen_flags: <defaults>
</compile_context>

<pallas_src>
import jax
import jax.numpy as jnp
from jax import lax
from jax.experimental import pallas as pl
from jax.experimental.pallas import tpu as pltpu

NUM_INPUTS = 28 * 28          # 784
NUM_HIDDEN = 100
NUM_OUTPUTS = 10
THRESHOLD = 1.0

HID_PAD = 128                 # 100 padded to 128 (lane-dense hidden)
OUT_PAD = 128                 # 10 padded to 128 (lane-dense output stores)


def _make_kernel(alpha, beta, num_steps, batch_pad, unroll):
    # Python floats -> jaxpr literals; never captured jax.Array constants.
    alpha = float(alpha)
    beta = float(beta)
    T = int(num_steps)
    B = int(batch_pad)        # guaranteed multiple of 8 by the wrapper

    def kernel(x_ref, w1t_ref, b1_ref, w2t_ref, b2_ref,
               spk_out_ref, mem_out_ref, buf_ref):
        # ---- phase A: fc1 for ALL steps in one dense MXU pass ---------------
        buf_ref[...] = (
            jnp.dot(x_ref[...], w1t_ref[...],
                    preferred_element_type=jnp.float32,
                    precision=lax.Precision.HIGHEST)
            + b1_ref[...])

        # ---- phase B: layer-1 Synaptic recurrence (pure VPU) ----------------
        # State lives in registers via the fori_loop carry; spk1 overwrites
        # cur1 in buf_ref in place, row-block by row-block.
        def step1(t, carry):
            syn1, mem1 = carry
            row = pl.multiple_of(t * B, B)
            cur1 = buf_ref[pl.ds(row, B), :]
            reset1 = (mem1 - THRESHOLD > 0.0).astype(jnp.float32)
            syn1 = alpha * syn1 + cur1
            mem1 = beta * mem1 + syn1 - reset1 * THRESHOLD
            spk1 = (mem1 - THRESHOLD > 0.0).astype(jnp.float32)
            buf_ref[pl.ds(row, B), :] = spk1
            return (syn1, mem1)

        zeros_h = jnp.zeros((B, HID_PAD), jnp.float32)
        lax.fori_loop(0, T, step1, (zeros_h, zeros_h), unroll=unroll)

        # ---- phase C: fc2 for ALL steps in one dense MXU pass ----------------
        # cur2 for every step is staged in mem_out_ref (reused as scratch) and
        # later overwritten with the final membrane values.
        mem_out_ref[...] = (
            jnp.dot(buf_ref[...], w2t_ref[...],
                    preferred_element_type=jnp.float32,
                    precision=lax.Precision.HIGHEST)
            + b2_ref[...])

        # ---- phase D: layer-2 Synaptic recurrence (pure VPU) ----------------
        def step2(t, carry):
            syn2, mem2 = carry
            row = pl.multiple_of(t * B, B)
            cur2 = mem_out_ref[pl.ds(row, B), :]
            reset2 = (mem2 - THRESHOLD > 0.0).astype(jnp.float32)
            syn2 = alpha * syn2 + cur2
            mem2 = beta * mem2 + syn2 - reset2 * THRESHOLD
            spk2 = (mem2 - THRESHOLD > 0.0).astype(jnp.float32)
            spk_out_ref[pl.ds(row, B), :] = spk2
            mem_out_ref[pl.ds(row, B), :] = mem2
            return (syn2, mem2)

        zeros_o = jnp.zeros((B, OUT_PAD), jnp.float32)
        lax.fori_loop(0, T, step2, (zeros_o, zeros_o), unroll=unroll)

    return kernel


def simple_fc_forward(x, w1, b1, w2, b2, *, alpha, beta, num_steps):
    """x: (batch, num_steps, 784). Returns (spk2_rec, mem2_rec), each
    (num_steps, batch, 10) float32 — matching torch.stack(..., dim=0)."""
    B = x.shape[0]
    T = int(num_steps)
    B_pad = ((B + 7) // 8) * 8          # sublane-aligned per-step row slices

    x_f = jnp.asarray(x, jnp.float32)
    if B_pad != B:
        x_f = jnp.pad(x_f, ((0, B_pad - B), (0, 0), (0, 0)))
    # Time-major, fold T into the row (sublane) dim. No K padding of x:
    # 784 is the full array extent (legal for a BlockSpec) and Mosaic pads
    # lanes internally; a wrapper-side pad would double x's HBM traffic.
    x_2d = jnp.transpose(x_f, (1, 0, 2)).reshape(T * B_pad, NUM_INPUTS)

    w1t = jnp.pad(jnp.asarray(w1, jnp.float32).T,
                  ((0, 0), (0, HID_PAD - NUM_HIDDEN)))
    b1p = jnp.pad(jnp.asarray(b1, jnp.float32),
                  (0, HID_PAD - NUM_HIDDEN)).reshape(1, HID_PAD)
    w2t = jnp.pad(jnp.asarray(w2, jnp.float32).T,
                  ((0, HID_PAD - NUM_HIDDEN), (0, OUT_PAD - NUM_OUTPUTS)))
    b2p = jnp.pad(jnp.asarray(b2, jnp.float32),
                  (0, OUT_PAD - NUM_OUTPUTS)).reshape(1, OUT_PAD)

    rows = T * B_pad
    unroll = max(1, min(T, 8))          # full unroll only while T is small

    spk_pad, mem_pad = pl.pallas_call(
        _make_kernel(alpha, beta, T, B_pad, unroll),
        out_shape=(
            jax.ShapeDtypeStruct((rows, OUT_PAD), jnp.float32),
            jax.ShapeDtypeStruct((rows, OUT_PAD), jnp.float32),
        ),
        grid=(1,),  # toy size: everything VMEM-resident, one invocation
        in_specs=[
            pl.BlockSpec((rows, NUM_INPUTS), lambda i: (0, 0)),
            pl.BlockSpec((NUM_INPUTS, HID_PAD), lambda i: (0, 0)),
            pl.BlockSpec((1, HID_PAD), lambda i: (0, 0)),
            pl.BlockSpec((HID_PAD, OUT_PAD), lambda i: (0, 0)),
            pl.BlockSpec((1, OUT_PAD), lambda i: (0, 0)),
        ],
        out_specs=(
            pl.BlockSpec((rows, OUT_PAD), lambda i: (0, 0)),
            pl.BlockSpec((rows, OUT_PAD), lambda i: (0, 0)),
        ),
        scratch_shapes=[
            pltpu.VMEM((rows, HID_PAD), jnp.float32),   # cur1 then spk1
        ],
        compiler_params=pltpu.CompilerParams(
            dimension_semantics=("arbitrary",)),        # time recurrence: serial
    )(x_2d, w1t, b1p, w2t, b2p)

    spk_rec = spk_pad.reshape(T, B_pad, OUT_PAD)[:, :B, :NUM_OUTPUTS]
    mem_rec = mem_pad.reshape(T, B_pad, OUT_PAD)[:, :B, :NUM_OUTPUTS]
    return spk_rec, mem_rec


def _reference(x, w1, b1, w2, b2, alpha, beta, num_steps):
    """Pure-JAX f32 reference of the snntorch Synaptic recurrence
    (matmul precision pinned to match the kernel)."""
    B = x.shape[0]
    syn1 = jnp.zeros((B, NUM_HIDDEN), jnp.float32)
    mem1 = jnp.zeros((B, NUM_HIDDEN), jnp.float32)
    syn2 = jnp.zeros((B, NUM_OUTPUTS), jnp.float32)
    mem2 = jnp.zeros((B, NUM_OUTPUTS), jnp.float32)
    spk_rec, mem_rec = [], []
    for t in range(num_steps):
        cur1 = jnp.dot(x[:, t], w1.T, precision=lax.Precision.HIGHEST) + b1
        r1 = (mem1 - THRESHOLD > 0).astype(jnp.float32)
        syn1 = alpha * syn1 + cur1
        mem1 = beta * mem1 + syn1 - r1 * THRESHOLD
        spk1 = (mem1 - THRESHOLD > 0).astype(jnp.float32)
        cur2 = jnp.dot(spk1, w2.T, precision=lax.Precision.HIGHEST) + b2
        r2 = (mem2 - THRESHOLD > 0).astype(jnp.float32)
        syn2 = alpha * syn2 + cur2
        mem2 = beta * mem2 + syn2 - r2 * THRESHOLD
        spk2 = (mem2 - THRESHOLD > 0).astype(jnp.float32)
        spk_rec.append(spk2)
        mem_rec.append(mem2)
    return jnp.stack(spk_rec, 0), jnp.stack(mem_rec, 0)


if __name__ == "__main__":
    key = jax.random.PRNGKey(0)
    k_x, k_w1, k_b1, k_w2, k_b2 = jax.random.split(key, 5)

    batch = 8          # multiple of 8 -> sublane-aligned per-step slices
    num_steps = 8
    alpha = 0.9
    beta = 0.8

    # Deterministic "PyTorch-like" Linear init: U(-1/sqrt(fan_in), 1/sqrt(fan_in))
    lim1 = 1.0 / (NUM_INPUTS ** 0.5)
    lim2 = 1.0 / (NUM_HIDDEN ** 0.5)
    w1 = jax.random.uniform(k_w1, (NUM_HIDDEN, NUM_INPUTS), jnp.float32, -lim1, lim1)
    b1 = jax.random.uniform(k_b1, (NUM_HIDDEN,), jnp.float32, -lim1, lim1)
    w2 = jax.random.uniform(k_w2, (NUM_OUTPUTS, NUM_HIDDEN), jnp.float32, -lim2, lim2)
    b2 = jax.random.uniform(k_b2, (NUM_OUTPUTS,), jnp.float32, -lim2, lim2)

    x = jax.random.uniform(k_x, (batch, num_steps, NUM_INPUTS), jnp.float32)

    spk_rec, mem_rec = simple_fc_forward(
        x, w1, b1, w2, b2, alpha=alpha, beta=beta, num_steps=num_steps)
    jax.block_until_ready((spk_rec, mem_rec))

    spk_ref, mem_ref = _reference(x, w1, b1, w2, b2, alpha, beta, num_steps)
    assert spk_rec.shape == (num_steps, batch, NUM_OUTPUTS)
    assert mem_rec.shape == (num_steps, batch, NUM_OUTPUTS)
    assert jnp.allclose(spk_rec, spk_ref, atol=1e-5)
    assert jnp.allclose(mem_rec, mem_ref, atol=1e-4)

    print("KERNEL_OK")
</pallas_src>

<mosaic_0001>
module attributes {stable_mosaic.version = 11 : i64} {
  func.func @kernel(%arg0: i32, %arg1: memref<64x784xf32, #tpu.memory_space<vmem>>, %arg2: memref<784x128xf32, #tpu.memory_space<vmem>>, %arg3: memref<1x128xf32, #tpu.memory_space<vmem>>, %arg4: memref<128x128xf32, #tpu.memory_space<vmem>>, %arg5: memref<1x128xf32, #tpu.memory_space<vmem>>, %arg6: memref<64x128xf32, #tpu.memory_space<vmem>>, %arg7: memref<64x128xf32, #tpu.memory_space<vmem>>, %arg8: memref<64x128xf32, #tpu.memory_space<vmem>>) attributes {dimension_semantics = [#tpu.dimension_semantics<arbitrary>], iteration_bounds = array<i64: 1>, scalar_prefetch = 0 : i64, scratch_operands = 1 : i64, tpu.core_type = #tpu.core_type<tc>, window_params = [{pipeline_mode = #tpu.pipeline_mode<synchronous>, transform_indices = @transform_0, window_bounds = array<i64: 64, 784>}, {pipeline_mode = #tpu.pipeline_mode<synchronous>, transform_indices = @transform_1, window_bounds = array<i64: 784, 128>}, {pipeline_mode = #tpu.pipeline_mode<synchronous>, transform_indices = @transform_2, window_bounds = array<i64: 1, 128>}, {pipeline_mode = #tpu.pipeline_mode<synchronous>, transform_indices = @transform_3, window_bounds = array<i64: 128, 128>}, {pipeline_mode = #tpu.pipeline_mode<synchronous>, transform_indices = @transform_4, window_bounds = array<i64: 1, 128>}, {pipeline_mode = #tpu.pipeline_mode<synchronous>, transform_indices = @transform_5, window_bounds = array<i64: 64, 128>}, {pipeline_mode = #tpu.pipeline_mode<synchronous>, transform_indices = @transform_6, window_bounds = array<i64: 64, 128>}]} {
    %c0 = arith.constant 0 : index
    %c0_0 = arith.constant 0 : index
    %0 = vector.load %arg1[%c0, %c0_0] : memref<64x784xf32, #tpu.memory_space<vmem>>, vector<64x784xf32>
    %c0_1 = arith.constant 0 : index
    %c0_2 = arith.constant 0 : index
    %1 = vector.load %arg2[%c0_1, %c0_2] : memref<784x128xf32, #tpu.memory_space<vmem>>, vector<784x128xf32>
    %cst = arith.constant dense<0.000000e+00> : vector<64x128xf32>
    %2 = tpu.matmul %0, %1, %cst {dimension_numbers = #tpu.dot_dimension_numbers<[1], [0], [0], [1], [0, 0, 1, 1], [], []>, precision = #tpu.contract_precision<fp32>} : vector<64x784xf32>, vector<784x128xf32>, vector<64x128xf32> -> vector<64x128xf32>
    %c0_3 = arith.constant 0 : index
    %c0_4 = arith.constant 0 : index
    %3 = vector.load %arg3[%c0_3, %c0_4] : memref<1x128xf32, #tpu.memory_space<vmem>>, vector<1x128xf32>
    %4 = vector.broadcast %3 : vector<1x128xf32> to vector<64x128xf32>
    %5 = arith.addf %2, %4 : vector<64x128xf32>
    %c0_5 = arith.constant 0 : index
    %c0_6 = arith.constant 0 : index
    %6 = vector.load %arg8[%c0_5, %c0_6] : memref<64x128xf32, #tpu.memory_space<vmem>>, vector<64x128xf32>
    tpu.vector_store %arg8[%c0_5, %c0_6], %5 {strides = array<i32>} : memref<64x128xf32, #tpu.memory_space<vmem>>, vector<64x128xf32>,
    %cst_7 = arith.constant 0.000000e+00 : f32
    %7 = vector.broadcast %cst_7 : f32 to vector<8x128xf32>
    %c0_i32 = arith.constant 0 : i32
    %c8_i32 = arith.constant 8 : i32
    %8 = arith.muli %c0_i32, %c8_i32 : i32
    %9 = tpu.assume_multiple %8, 8 : i32
    %10 = arith.index_cast %9 : i32 to index
    %c0_8 = arith.constant 0 : index
    %11 = vector.load %arg8[%10, %c0_8] : memref<64x128xf32, #tpu.memory_space<vmem>>, vector<8x128xf32>
    %cst_9 = arith.constant 1.000000e+00 : f32
    %12 = vector.broadcast %cst_9 : f32 to vector<8x128xf32>
    %13 = arith.subf %7, %12 : vector<8x128xf32>
    %cst_10 = arith.constant 0.000000e+00 : f32
    %14 = vector.broadcast %cst_10 : f32 to vector<8x128xf32>
    %15 = arith.cmpf ogt, %13, %14 : vector<8x128xf32>
    %16 = arith.extui %15 : vector<8x128xi1> to vector<8x128xi32>
    %17 = arith.sitofp %16 : vector<8x128xi32> to vector<8x128xf32>
    %cst_11 = arith.constant 0.899999976 : f32
    %18 = vector.broadcast %cst_11 : f32 to vector<8x128xf32>
    %19 = arith.mulf %18, %7 : vector<8x128xf32>
    %20 = arith.addf %19, %11 : vector<8x128xf32>
    %cst_12 = arith.constant 8.000000e-01 : f32
    %21 = vector.broadcast %cst_12 : f32 to vector<8x128xf32>
    %22 = arith.mulf %21, %7 : vector<8x128xf32>
    %23 = arith.addf %22, %20 : vector<8x128xf32>
    %cst_13 = arith.constant 1.000000e+00 : f32
    %24 = vector.broadcast %cst_13 : f32 to vector<8x128xf32>
    %25 = arith.mulf %17, %24 : vector<8x128xf32>
    %26 = arith.subf %23, %25 : vector<8x128xf32>
    %cst_14 = arith.constant 1.000000e+00 : f32
    %27 = vector.broadcast %cst_14 : f32 to vector<8x128xf32>
    %28 = arith.subf %26, %27 : vector<8x128xf32>
    %cst_15 = arith.constant 0.000000e+00 : f32
    %29 = vector.broadcast %cst_15 : f32 to vector<8x128xf32>
    %30 = arith.cmpf ogt, %28, %29 : vector<8x128xf32>
    %31 = arith.extui %30 : vector<8x128xi1> to vector<8x128xi32>
    %32 = arith.sitofp %31 : vector<8x128xi32> to vector<8x128xf32>
    %33 = arith.index_cast %9 : i32 to index
    %c0_16 = arith.constant 0 : index
    %34 = vector.load %arg8[%33, %c0_16] : memref<64x128xf32, #tpu.memory_space<vmem>>, vector<8x128xf32>
    tpu.vector_store %arg8[%33, %c0_16], %32 {strides = array<i32>} : memref<64x128xf32, #tpu.memory_space<vmem>>, vector<8x128xf32>,
    %c1_i32 = arith.constant 1 : i32
    %c8_i32_17 = arith.constant 8 : i32
    %35 = arith.muli %c1_i32, %c8_i32_17 : i32
    %36 = tpu.assume_multiple %35, 8 : i32
    %37 = arith.index_cast %36 : i32 to index
    %c0_18 = arith.constant 0 : index
    %38 = vector.load %arg8[%37, %c0_18] : memref<64x128xf32, #tpu.memory_space<vmem>>, vector<8x128xf32>
    %cst_19 = arith.constant 1.000000e+00 : f32
    %39 = vector.broadcast %cst_19 : f32 to vector<8x128xf32>
    %40 = arith.subf %26, %39 : vector<8x128xf32>
    %cst_20 = arith.constant 0.000000e+00 : f32
    %41 = vector.broadcast %cst_20 : f32 to vector<8x128xf32>
    %42 = arith.cmpf ogt, %40, %41 : vector<8x128xf32>
    %43 = arith.extui %42 : vector<8x128xi1> to vector<8x128xi32>
    %44 = arith.sitofp %43 : vector<8x128xi32> to vector<8x128xf32>
    %cst_21 = arith.constant 0.899999976 : f32
    %45 = vector.broadcast %cst_21 : f32 to vector<8x128xf32>
    %46 = arith.mulf %45, %20 : vector<8x128xf32>
    %47 = arith.addf %46, %38 : vector<8x128xf32>
    %cst_22 = arith.constant 8.000000e-01 : f32
    %48 = vector.broadcast %cst_22 : f32 to vector<8x128xf32>
    %49 = arith.mulf %48, %26 : vector<8x128xf32>
    %50 = arith.addf %49, %47 : vector<8x128xf32>
    %cst_23 = arith.constant 1.000000e+00 : f32
    %51 = vector.broadcast %cst_23 : f32 to vector<8x128xf32>
    %52 = arith.mulf %44, %51 : vector<8x128xf32>
    %53 = arith.subf %50, %52 : vector<8x128xf32>
    %cst_24 = arith.constant 1.000000e+00 : f32
    %54 = vector.broadcast %cst_24 : f32 to vector<8x128xf32>
    %55 = arith.subf %53, %54 : vector<8x128xf32>
    %cst_25 = arith.constant 0.000000e+00 : f32
    %56 = vector.broadcast %cst_25 : f32 to vector<8x128xf32>
    %57 = arith.cmpf ogt, %55, %56 : vector<8x128xf32>
    %58 = arith.extui %57 : vector<8x128xi1> to vector<8x128xi32>
    %59 = arith.sitofp %58 : vector<8x128xi32> to vector<8x128xf32>
    %60 = arith.index_cast %36 : i32 to index
    %c0_26 = arith.constant 0 : index
    %61 = vector.load %arg8[%60, %c0_26] : memref<64x128xf32, #tpu.memory_space<vmem>>, vector<8x128xf32>
    tpu.vector_store %arg8[%60, %c0_26], %59 {strides = array<i32>} : memref<64x128xf32, #tpu.memory_space<vmem>>, vector<8x128xf32>,
    %c2_i32 = arith.constant 2 : i32
    %c8_i32_27 = arith.constant 8 : i32
    %62 = arith.muli %c2_i32, %c8_i32_27 : i32
    %63 = tpu.assume_multiple %62, 8 : i32
    %64 = arith.index_cast %63 : i32 to index
    %c0_28 = arith.constant 0 : index
    %65 = vector.load %arg8[%64, %c0_28] : memref<64x128xf32, #tpu.memory_space<vmem>>, vector<8x128xf32>
    %cst_29 = arith.constant 1.000000e+00 : f32
    %66 = vector.broadcast %cst_29 : f32 to vector<8x128xf32>
    %67 = arith.subf %53, %66 : vector<8x128xf32>
    %cst_30 = arith.constant 0.000000e+00 : f32
    %68 = vector.broadcast %cst_30 : f32 to vector<8x128xf32>
    %69 = arith.cmpf ogt, %67, %68 : vector<8x128xf32>
    %70 = arith.extui %69 : vector<8x128xi1> to vector<8x128xi32>
    %71 = arith.sitofp %70 : vector<8x128xi32> to vector<8x128xf32>
    %cst_31 = arith.constant 0.899999976 : f32
    %72 = vector.broadcast %cst_31 : f32 to vector<8x128xf32>
    %73 = arith.mulf %72, %47 : vector<8x128xf32>
    %74 = arith.addf %73, %65 : vector<8x128xf32>
    %cst_32 = arith.constant 8.000000e-01 : f32
    %75 = vector.broadcast %cst_32 : f32 to vector<8x128xf32>
    %76 = arith.mulf %75, %53 : vector<8x128xf32>
    %77 = arith.addf %76, %74 : vector<8x128xf32>
    %cst_33 = arith.constant 1.000000e+00 : f32
    %78 = vector.broadcast %cst_33 : f32 to vector<8x128xf32>
    %79 = arith.mulf %71, %78 : vector<8x128xf32>
    %80 = arith.subf %77, %79 : vector<8x128xf32>
    %cst_34 = arith.constant 1.000000e+00 : f32
    %81 = vector.broadcast %cst_34 : f32 to vector<8x128xf32>
    %82 = arith.subf %80, %81 : vector<8x128xf32>
    %cst_35 = arith.constant 0.000000e+00 : f32
    %83 = vector.broadcast %cst_35 : f32 to vector<8x128xf32>
    %84 = arith.cmpf ogt, %82, %83 : vector<8x128xf32>
    %85 = arith.extui %84 : vector<8x128xi1> to vector<8x128xi32>
    %86 = arith.sitofp %85 : vector<8x128xi32> to vector<8x128xf32>
    %87 = arith.index_cast %63 : i32 to index
    %c0_36 = arith.constant 0 : index
    %88 = vector.load %arg8[%87, %c0_36] : memref<64x128xf32, #tpu.memory_space<vmem>>, vector<8x128xf32>
    tpu.vector_store %arg8[%87, %c0_36], %86 {strides = array<i32>} : memref<64x128xf32, #tpu.memory_space<vmem>>, vector<8x128xf32>,
    %c3_i32 = arith.constant 3 : i32
    %c8_i32_37 = arith.constant 8 : i32
    %89 = arith.muli %c3_i32, %c8_i32_37 : i32
    %90 = tpu.assume_multiple %89, 8 : i32
    %91 = arith.index_cast %90 : i32 to index
    %c0_38 = arith.constant 0 : index
    %92 = vector.load %arg8[%91, %c0_38] : memref<64x128xf32, #tpu.memory_space<vmem>>, vector<8x128xf32>
    %cst_39 = arith.constant 1.000000e+00 : f32
    %93 = vector.broadcast %cst_39 : f32 to vector<8x128xf32>
    %94 = arith.subf %80, %93 : vector<8x128xf32>
    %cst_40 = arith.constant 0.000000e+00 : f32
    %95 = vector.broadcast %cst_40 : f32 to vector<8x128xf32>
    %96 = arith.cmpf ogt, %94, %95 : vector<8x128xf32>
    %97 = arith.extui %96 : vector<8x128xi1> to vector<8x128xi32>
    %98 = arith.sitofp %97 : vector<8x128xi32> to vector<8x128xf32>
    %cst_41 = arith.constant 0.899999976 : f32
    %99 = vector.broadcast %cst_41 : f32 to vector<8x128xf32>
    %100 = arith.mulf %99, %74 : vector<8x128xf32>
    %101 = arith.addf %100, %92 : vector<8x128xf32>
    %cst_42 = arith.constant 8.000000e-01 : f32
    %102 = vector.broadcast %cst_42 : f32 to vector<8x128xf32>
    %103 = arith.mulf %102, %80 : vector<8x128xf32>
    %104 = arith.addf %103, %101 : vector<8x128xf32>
    %cst_43 = arith.constant 1.000000e+00 : f32
    %105 = vector.broadcast %cst_43 : f32 to vector<8x128xf32>
    %106 = arith.mulf %98, %105 : vector<8x128xf32>
    %107 = arith.subf %104, %106 : vector<8x128xf32>
    %cst_44 = arith.constant 1.000000e+00 : f32
    %108 = vector.broadcast %cst_44 : f32 to vector<8x128xf32>
    %109 = arith.subf %107, %108 : vector<8x128xf32>
    %cst_45 = arith.constant 0.000000e+00 : f32
    %110 = vector.broadcast %cst_45 : f32 to vector<8x128xf32>
    %111 = arith.cmpf ogt, %109, %110 : vector<8x128xf32>
    %112 = arith.extui %111 : vector<8x128xi1> to vector<8x128xi32>
    %113 = arith.sitofp %112 : vector<8x128xi32> to vector<8x128xf32>
    %114 = arith.index_cast %90 : i32 to index
    %c0_46 = arith.constant 0 : index
    %115 = vector.load %arg8[%114, %c0_46] : memref<64x128xf32, #tpu.memory_space<vmem>>, vector<8x128xf32>
    tpu.vector_store %arg8[%114, %c0_46], %113 {strides = array<i32>} : memref<64x128xf32, #tpu.memory_space<vmem>>, vector<8x128xf32>,
    %c4_i32 = arith.constant 4 : i32
    %c8_i32_47 = arith.constant 8 : i32
    %116 = arith.muli %c4_i32, %c8_i32_47 : i32
    %117 = tpu.assume_multiple %116, 8 : i32
    %118 = arith.index_cast %117 : i32 to index
    %c0_48 = arith.constant 0 : index
    %119 = vector.load %arg8[%118, %c0_48] : memref<64x128xf32, #tpu.memory_space<vmem>>, vector<8x128xf32>
    %cst_49 = arith.constant 1.000000e+00 : f32
    %120 = vector.broadcast %cst_49 : f32 to vector<8x128xf32>
    %121 = arith.subf %107, %120 : vector<8x128xf32>
    %cst_50 = arith.constant 0.000000e+00 : f32
    %122 = vector.broadcast %cst_50 : f32 to vector<8x128xf32>
    %123 = arith.cmpf ogt, %121, %122 : vector<8x128xf32>
    %124 = arith.extui %123 : vector<8x128xi1> to vector<8x128xi32>
    %125 = arith.sitofp %124 : vector<8x128xi32> to vector<8x128xf32>
    %cst_51 = arith.constant 0.899999976 : f32
    %126 = vector.broadcast %cst_51 : f32 to vector<8x128xf32>
    %127 = arith.mulf %126, %101 : vector<8x128xf32>
    %128 = arith.addf %127, %119 : vector<8x128xf32>
    %cst_52 = arith.constant 8.000000e-01 : f32
    %129 = vector.broadcast %cst_52 : f32 to vector<8x128xf32>
    %130 = arith.mulf %129, %107 : vector<8x128xf32>
    %131 = arith.addf %130, %128 : vector<8x128xf32>
    %cst_53 = arith.constant 1.000000e+00 : f32
    %132 = vector.broadcast %cst_53 : f32 to vector<8x128xf32>
    %133 = arith.mulf %125, %132 : vector<8x128xf32>
    %134 = arith.subf %131, %133 : vector<8x128xf32>
    %cst_54 = arith.constant 1.000000e+00 : f32
    %135 = vector.broadcast %cst_54 : f32 to vector<8x128xf32>
    %136 = arith.subf %134, %135 : vector<8x128xf32>
    %cst_55 = arith.constant 0.000000e+00 : f32
    %137 = vector.broadcast %cst_55 : f32 to vector<8x128xf32>
    %138 = arith.cmpf ogt, %136, %137 : vector<8x128xf32>
    %139 = arith.extui %138 : vector<8x128xi1> to vector<8x128xi32>
    %140 = arith.sitofp %139 : vector<8x128xi32> to vector<8x128xf32>
    %141 = arith.index_cast %117 : i32 to index
    %c0_56 = arith.constant 0 : index
    %142 = vector.load %arg8[%141, %c0_56] : memref<64x128xf32, #tpu.memory_space<vmem>>, vector<8x128xf32>
    tpu.vector_store %arg8[%141, %c0_56], %140 {strides = array<i32>} : memref<64x128xf32, #tpu.memory_space<vmem>>, vector<8x128xf32>,
    %c5_i32 = arith.constant 5 : i32
    %c8_i32_57 = arith.constant 8 : i32
    %143 = arith.muli %c5_i32, %c8_i32_57 : i32
    %144 = tpu.assume_multiple %143, 8 : i32
    %145 = arith.index_cast %144 : i32 to index
    %c0_58 = arith.constant 0 : index
    %146 = vector.load %arg8[%145, %c0_58] : memref<64x128xf32, #tpu.memory_space<vmem>>, vector<8x128xf32>
    %cst_59 = arith.constant 1.000000e+00 : f32
    %147 = vector.broadcast %cst_59 : f32 to vector<8x128xf32>
    %148 = arith.subf %134, %147 : vector<8x128xf32>
    %cst_60 = arith.constant 0.000000e+00 : f32
    %149 = vector.broadcast %cst_60 : f32 to vector<8x128xf32>
    %150 = arith.cmpf ogt, %148, %149 : vector<8x128xf32>
    %151 = arith.extui %150 : vector<8x128xi1> to vector<8x128xi32>
    %152 = arith.sitofp %151 : vector<8x128xi32> to vector<8x128xf32>
    %cst_61 = arith.constant 0.899999976 : f32
    %153 = vector.broadcast %cst_61 : f32 to vector<8x128xf32>
    %154 = arith.mulf %153, %128 : vector<8x128xf32>
    %155 = arith.addf %154, %146 : vector<8x128xf32>
    %cst_62 = arith.constant 8.000000e-01 : f32
    %156 = vector.broadcast %cst_62 : f32 to vector<8x128xf32>
    %157 = arith.mulf %156, %134 : vector<8x128xf32>
    %158 = arith.addf %157, %155 : vector<8x128xf32>
    %cst_63 = arith.constant 1.000000e+00 : f32
    %159 = vector.broadcast %cst_63 : f32 to vector<8x128xf32>
    %160 = arith.mulf %152, %159 : vector<8x128xf32>
    %161 = arith.subf %158, %160 : vector<8x128xf32>
    %cst_64 = arith.constant 1.000000e+00 : f32
    %162 = vector.broadcast %cst_64 : f32 to vector<8x128xf32>
    %163 = arith.subf %161, %162 : vector<8x128xf32>
    %cst_65 = arith.constant 0.000000e+00 : f32
    %164 = vector.broadcast %cst_65 : f32 to vector<8x128xf32>
    %165 = arith.cmpf ogt, %163, %164 : vector<8x128xf32>
    %166 = arith.extui %165 : vector<8x128xi1> to vector<8x128xi32>
    %167 = arith.sitofp %166 : vector<8x128xi32> to vector<8x128xf32>
    %168 = arith.index_cast %144 : i32 to index
    %c0_66 = arith.constant 0 : index
    %169 = vector.load %arg8[%168, %c0_66] : memref<64x128xf32, #tpu.memory_space<vmem>>, vector<8x128xf32>
    tpu.vector_store %arg8[%168, %c0_66], %167 {strides = array<i32>} : memref<64x128xf32, #tpu.memory_space<vmem>>, vector<8x128xf32>,
    %c6_i32 = arith.constant 6 : i32
    %c8_i32_67 = arith.constant 8 : i32
    %170 = arith.muli %c6_i32, %c8_i32_67 : i32
    %171 = tpu.assume_multiple %170, 8 : i32
    %172 = arith.index_cast %171 : i32 to index
    %c0_68 = arith.constant 0 : index
    %173 = vector.load %arg8[%172, %c0_68] : memref<64x128xf32, #tpu.memory_space<vmem>>, vector<8x128xf32>
    %cst_69 = arith.constant 1.000000e+00 : f32
    %174 = vector.broadcast %cst_69 : f32 to vector<8x128xf32>
    %175 = arith.subf %161, %174 : vector<8x128xf32>
    %cst_70 = arith.constant 0.000000e+00 : f32
    %176 = vector.broadcast %cst_70 : f32 to vector<8x128xf32>
    %177 = arith.cmpf ogt, %175, %176 : vector<8x128xf32>
    %178 = arith.extui %177 : vector<8x128xi1> to vector<8x128xi32>
    %179 = arith.sitofp %178 : vector<8x128xi32> to vector<8x128xf32>
    %cst_71 = arith.constant 0.899999976 : f32
    %180 = vector.broadcast %cst_71 : f32 to vector<8x128xf32>
    %181 = arith.mulf %180, %155 : vector<8x128xf32>
    %182 = arith.addf %181, %173 : vector<8x128xf32>
    %cst_72 = arith.constant 8.000000e-01 : f32
    %183 = vector.broadcast %cst_72 : f32 to vector<8x128xf32>
    %184 = arith.mulf %183, %161 : vector<8x128xf32>
    %185 = arith.addf %184, %182 : vector<8x128xf32>
    %cst_73 = arith.constant 1.000000e+00 : f32
    %186 = vector.broadcast %cst_73 : f32 to vector<8x128xf32>
    %187 = arith.mulf %179, %186 : vector<8x128xf32>
    %188 = arith.subf %185, %187 : vector<8x128xf32>
    %cst_74 = arith.constant 1.000000e+00 : f32
    %189 = vector.broadcast %cst_74 : f32 to vector<8x128xf32>
    %190 = arith.subf %188, %189 : vector<8x128xf32>
    %cst_75 = arith.constant 0.000000e+00 : f32
    %191 = vector.broadcast %cst_75 : f32 to vector<8x128xf32>
    %192 = arith.cmpf ogt, %190, %191 : vector<8x128xf32>
    %193 = arith.extui %192 : vector<8x128xi1> to vector<8x128xi32>
    %194 = arith.sitofp %193 : vector<8x128xi32> to vector<8x128xf32>
    %195 = arith.index_cast %171 : i32 to index
    %c0_76 = arith.constant 0 : index
    %196 = vector.load %arg8[%195, %c0_76] : memref<64x128xf32, #tpu.memory_space<vmem>>, vector<8x128xf32>
    tpu.vector_store %arg8[%195, %c0_76], %194 {strides = array<i32>} : memref<64x128xf32, #tpu.memory_space<vmem>>, vector<8x128xf32>,
    %c7_i32 = arith.constant 7 : i32
    %c8_i32_77 = arith.constant 8 : i32
    %197 = arith.muli %c7_i32, %c8_i32_77 : i32
    %198 = tpu.assume_multiple %197, 8 : i32
    %199 = arith.index_cast %198 : i32 to index
    %c0_78 = arith.constant 0 : index
    %200 = vector.load %arg8[%199, %c0_78] : memref<64x128xf32, #tpu.memory_space<vmem>>, vector<8x128xf32>
    %cst_79 = arith.constant 1.000000e+00 : f32
    %201 = vector.broadcast %cst_79 : f32 to vector<8x128xf32>
    %202 = arith.subf %188, %201 : vector<8x128xf32>
    %cst_80 = arith.constant 0.000000e+00 : f32
    %203 = vector.broadcast %cst_80 : f32 to vector<8x128xf32>
    %204 = arith.cmpf ogt, %202, %203 : vector<8x128xf32>
    %205 = arith.extui %204 : vector<8x128xi1> to vector<8x128xi32>
    %206 = arith.sitofp %205 : vector<8x128xi32> to vector<8x128xf32>
    %cst_81 = arith.constant 0.899999976 : f32
    %207 = vector.broadcast %cst_81 : f32 to vector<8x128xf32>
    %208 = arith.mulf %207, %182 : vector<8x128xf32>
    %209 = arith.addf %208, %200 : vector<8x128xf32>
    %cst_82 = arith.constant 8.000000e-01 : f32
    %210 = vector.broadcast %cst_82 : f32 to vector<8x128xf32>
    %211 = arith.mulf %210, %188 : vector<8x128xf32>
    %212 = arith.addf %211, %209 : vector<8x128xf32>
    %cst_83 = arith.constant 1.000000e+00 : f32
    %213 = vector.broadcast %cst_83 : f32 to vector<8x128xf32>
    %214 = arith.mulf %206, %213 : vector<8x128xf32>
    %215 = arith.subf %212, %214 : vector<8x128xf32>
    %cst_84 = arith.constant 1.000000e+00 : f32
    %216 = vector.broadcast %cst_84 : f32 to vector<8x128xf32>
    %217 = arith.subf %215, %216 : vector<8x128xf32>
    %cst_85 = arith.constant 0.000000e+00 : f32
    %218 = vector.broadcast %cst_85 : f32 to vector<8x128xf32>
    %219 = arith.cmpf ogt, %217, %218 : vector<8x128xf32>
    %220 = arith.extui %219 : vector<8x128xi1> to vector<8x128xi32>
    %221 = arith.sitofp %220 : vector<8x128xi32> to vector<8x128xf32>
    %222 = arith.index_cast %198 : i32 to index
    %c0_86 = arith.constant 0 : index
    %223 = vector.load %arg8[%222, %c0_86] : memref<64x128xf32, #tpu.memory_space<vmem>>, vector<8x128xf32>
    tpu.vector_store %arg8[%222, %c0_86], %221 {strides = array<i32>} : memref<64x128xf32, #tpu.memory_space<vmem>>, vector<8x128xf32>,
    %c8_i32_87 = arith.constant 8 : i32
    %c0_88 = arith.constant 0 : index
    %c0_89 = arith.constant 0 : index
    %224 = vector.load %arg8[%c0_88, %c0_89] : memref<64x128xf32, #tpu.memory_space<vmem>>, vector<64x128xf32>
    %c0_90 = arith.constant 0 : index
    %c0_91 = arith.constant 0 : index
    %225 = vector.load %arg4[%c0_90, %c0_91] : memref<128x128xf32, #tpu.memory_space<vmem>>, vector<128x128xf32>
    %cst_92 = arith.constant dense<0.000000e+00> : vector<64x128xf32>
    %226 = tpu.matmul %224, %225, %cst_92 {dimension_numbers = #tpu.dot_dimension_numbers<[1], [0], [0], [1], [0, 0, 1, 1], [], []>, precision = #tpu.contract_precision<fp32>} : vector<64x128xf32>, vector<128x128xf32>, vector<64x128xf32> -> vector<64x128xf32>
    %c0_93 = arith.constant 0 : index
    %c0_94 = arith.constant 0 : index
    %227 = vector.load %arg5[%c0_93, %c0_94] : memref<1x128xf32, #tpu.memory_space<vmem>>, vector<1x128xf32>
    %228 = vector.broadcast %227 : vector<1x128xf32> to vector<64x128xf32>
    %229 = arith.addf %226, %228 : vector<64x128xf32>
    %c0_95 = arith.constant 0 : index
    %c0_96 = arith.constant 0 : index
    %230 = vector.load %arg7[%c0_95, %c0_96] : memref<64x128xf32, #tpu.memory_space<vmem>>, vector<64x128xf32>
    tpu.vector_store %arg7[%c0_95, %c0_96], %229 {strides = array<i32>} : memref<64x128xf32, #tpu.memory_space<vmem>>, vector<64x128xf32>,
    %cst_97 = arith.constant 0.000000e+00 : f32
    %231 = vector.broadcast %cst_97 : f32 to vector<8x128xf32>
    %c0_i32_98 = arith.constant 0 : i32
    %c8_i32_99 = arith.constant 8 : i32
    %232 = arith.muli %c0_i32_98, %c8_i32_99 : i32
    %233 = tpu.assume_multiple %232, 8 : i32
    %234 = arith.index_cast %233 : i32 to index
    %c0_100 = arith.constant 0 : index
    %235 = vector.load %arg7[%234, %c0_100] : memref<64x128xf32, #tpu.memory_space<vmem>>, vector<8x128xf32>
    %cst_101 = arith.constant 1.000000e+00 : f32
    %236 = vector.broadcast %cst_101 : f32 to vector<8x128xf32>
    %237 = arith.subf %231, %236 : vector<8x128xf32>
    %cst_102 = arith.constant 0.000000e+00 : f32
    %238 = vector.broadcast %cst_102 : f32 to vector<8x128xf32>
    %239 = arith.cmpf ogt, %237, %238 : vector<8x128xf32>
    %240 = arith.extui %239 : vector<8x128xi1> to vector<8x128xi32>
    %241 = arith.sitofp %240 : vector<8x128xi32> to vector<8x128xf32>
    %cst_103 = arith.constant 0.899999976 : f32
    %242 = vector.broadcast %cst_103 : f32 to vector<8x128xf32>
    %243 = arith.mulf %242, %231 : vector<8x128xf32>
    %244 = arith.addf %243, %235 : vector<8x128xf32>
    %cst_104 = arith.constant 8.000000e-01 : f32
    %245 = vector.broadcast %cst_104 : f32 to vector<8x128xf32>
    %246 = arith.mulf %245, %231 : vector<8x128xf32>
    %247 = arith.addf %246, %244 : vector<8x128xf32>
    %cst_105 = arith.constant 1.000000e+00 : f32
    %248 = vector.broadcast %cst_105 : f32 to vector<8x128xf32>
    %249 = arith.mulf %241, %248 : vector<8x128xf32>
    %250 = arith.subf %247, %249 : vector<8x128xf32>
    %cst_106 = arith.constant 1.000000e+00 : f32
    %251 = vector.broadcast %cst_106 : f32 to vector<8x128xf32>
    %252 = arith.subf %250, %251 : vector<8x128xf32>
    %cst_107 = arith.constant 0.000000e+00 : f32
    %253 = vector.broadcast %cst_107 : f32 to vector<8x128xf32>
    %254 = arith.cmpf ogt, %252, %253 : vector<8x128xf32>
    %255 = arith.extui %254 : vector<8x128xi1> to vector<8x128xi32>
    %256 = arith.sitofp %255 : vector<8x128xi32> to vector<8x128xf32>
    %257 = arith.index_cast %233 : i32 to index
    %c0_108 = arith.constant 0 : index
    %258 = vector.load %arg6[%257, %c0_108] : memref<64x128xf32, #tpu.memory_space<vmem>>, vector<8x128xf32>
    tpu.vector_store %arg6[%257, %c0_108], %256 {strides = array<i32>} : memref<64x128xf32, #tpu.memory_space<vmem>>, vector<8x128xf32>,
    %259 = arith.index_cast %233 : i32 to index
    %c0_109 = arith.constant 0 : index
    %260 = vector.load %arg7[%259, %c0_109] : memref<64x128xf32, #tpu.memory_space<vmem>>, vector<8x128xf32>
    tpu.vector_store %arg7[%259, %c0_109], %250 {strides = array<i32>} : memref<64x128xf32, #tpu.memory_space<vmem>>, vector<8x128xf32>,
    %c1_i32_110 = arith.constant 1 : i32
    %c8_i32_111 = arith.constant 8 : i32
    %261 = arith.muli %c1_i32_110, %c8_i32_111 : i32
    %262 = tpu.assume_multiple %261, 8 : i32
    %263 = arith.index_cast %262 : i32 to index
    %c0_112 = arith.constant 0 : index
    %264 = vector.load %arg7[%263, %c0_112] : memref<64x128xf32, #tpu.memory_space<vmem>>, vector<8x128xf32>
    %cst_113 = arith.constant 1.000000e+00 : f32
    %265 = vector.broadcast %cst_113 : f32 to vector<8x128xf32>
    %266 = arith.subf %250, %265 : vector<8x128xf32>
    %cst_114 = arith.constant 0.000000e+00 : f32
    %267 = vector.broadcast %cst_114 : f32 to vector<8x128xf32>
    %268 = arith.cmpf ogt, %266, %267 : vector<8x128xf32>
    %269 = arith.extui %268 : vector<8x128xi1> to vector<8x128xi32>
    %270 = arith.sitofp %269 : vector<8x128xi32> to vector<8x128xf32>
    %cst_115 = arith.constant 0.899999976 : f32
    %271 = vector.broadcast %cst_115 : f32 to vector<8x128xf32>
    %272 = arith.mulf %271, %244 : vector<8x128xf32>
    %273 = arith.addf %272, %264 : vector<8x128xf32>
    %cst_116 = arith.constant 8.000000e-01 : f32
    %274 = vector.broadcast %cst_116 : f32 to vector<8x128xf32>
    %275 = arith.mulf %274, %250 : vector<8x128xf32>
    %276 = arith.addf %275, %273 : vector<8x128xf32>
    %cst_117 = arith.constant 1.000000e+00 : f32
    %277 = vector.broadcast %cst_117 : f32 to vector<8x128xf32>
    %278 = arith.mulf %270, %277 : vector<8x128xf32>
    %279 = arith.subf %276, %278 : vector<8x128xf32>
    %cst_118 = arith.constant 1.000000e+00 : f32
    %280 = vector.broadcast %cst_118 : f32 to vector<8x128xf32>
    %281 = arith.subf %279, %280 : vector<8x128xf32>
    %cst_119 = arith.constant 0.000000e+00 : f32
    %282 = vector.broadcast %cst_119 : f32 to vector<8x128xf32>
    %283 = arith.cmpf ogt, %281, %282 : vector<8x128xf32>
    %284 = arith.extui %283 : vector<8x128xi1> to vector<8x128xi32>
    %285 = arith.sitofp %284 : vector<8x128xi32> to vector<8x128xf32>
    %286 = arith.index_cast %262 : i32 to index
    %c0_120 = arith.constant 0 : index
    %287 = vector.load %arg6[%286, %c0_120] : memref<64x128xf32, #tpu.memory_space<vmem>>, vector<8x128xf32>
    tpu.vector_store %arg6[%286, %c0_120], %285 {strides = array<i32>} : memref<64x128xf32, #tpu.memory_space<vmem>>, vector<8x128xf32>,
    %288 = arith.index_cast %262 : i32 to index
    %c0_121 = arith.constant 0 : index
    %289 = vector.load %arg7[%288, %c0_121] : memref<64x128xf32, #tpu.memory_space<vmem>>, vector<8x128xf32>
    tpu.vector_store %arg7[%288, %c0_121], %279 {strides = array<i32>} : memref<64x128xf32, #tpu.memory_space<vmem>>, vector<8x128xf32>,
    %c2_i32_122 = arith.constant 2 : i32
    %c8_i32_123 = arith.constant 8 : i32
    %290 = arith.muli %c2_i32_122, %c8_i32_123 : i32
    %291 = tpu.assume_multiple %290, 8 : i32
    %292 = arith.index_cast %291 : i32 to index
    %c0_124 = arith.constant 0 : index
    %293 = vector.load %arg7[%292, %c0_124] : memref<64x128xf32, #tpu.memory_space<vmem>>, vector<8x128xf32>
    %cst_125 = arith.constant 1.000000e+00 : f32
    %294 = vector.broadcast %cst_125 : f32 to vector<8x128xf32>
    %295 = arith.subf %279, %294 : vector<8x128xf32>
    %cst_126 = arith.constant 0.000000e+00 : f32
    %296 = vector.broadcast %cst_126 : f32 to vector<8x128xf32>
    %297 = arith.cmpf ogt, %295, %296 : vector<8x128xf32>
    %298 = arith.extui %297 : vector<8x128xi1> to vector<8x128xi32>
    %299 = arith.sitofp %298 : vector<8x128xi32> to vector<8x128xf32>
    %cst_127 = arith.constant 0.899999976 : f32
    %300 = vector.broadcast %cst_127 : f32 to vector<8x128xf32>
    %301 = arith.mulf %300, %273 : vector<8x128xf32>
    %302 = arith.addf %301, %293 : vector<8x128xf32>
    %cst_128 = arith.constant 8.000000e-01 : f32
    %303 = vector.broadcast %cst_128 : f32 to vector<8x128xf32>
    %304 = arith.mulf %303, %279 : vector<8x128xf32>
    %305 = arith.addf %304, %302 : vector<8x128xf32>
    %cst_129 = arith.constant 1.000000e+00 : f32
    %306 = vector.broadcast %cst_129 : f32 to vector<8x128xf32>
    %307 = arith.mulf %299, %306 : vector<8x128xf32>
    %308 = arith.subf %305, %307 : vector<8x128xf32>
    %cst_130 = arith.constant 1.000000e+00 : f32
    %309 = vector.broadcast %cst_130 : f32 to vector<8x128xf32>
    %310 = arith.subf %308, %309 : vector<8x128xf32>
    %cst_131 = arith.constant 0.000000e+00 : f32
    %311 = vector.broadcast %cst_131 : f32 to vector<8x128xf32>
    %312 = arith.cmpf ogt, %310, %311 : vector<8x128xf32>
    %313 = arith.extui %312 : vector<8x128xi1> to vector<8x128xi32>
    %314 = arith.sitofp %313 : vector<8x128xi32> to vector<8x128xf32>
    %315 = arith.index_cast %291 : i32 to index
    %c0_132 = arith.constant 0 : index
    %316 = vector.load %arg6[%315, %c0_132] : memref<64x128xf32, #tpu.memory_space<vmem>>, vector<8x128xf32>
    tpu.vector_store %arg6[%315, %c0_132], %314 {strides = array<i32>} : memref<64x128xf32, #tpu.memory_space<vmem>>, vector<8x128xf32>,
    %317 = arith.index_cast %291 : i32 to index
    %c0_133 = arith.constant 0 : index
    %318 = vector.load %arg7[%317, %c0_133] : memref<64x128xf32, #tpu.memory_space<vmem>>, vector<8x128xf32>
    tpu.vector_store %arg7[%317, %c0_133], %308 {strides = array<i32>} : memref<64x128xf32, #tpu.memory_space<vmem>>, vector<8x128xf32>,
    %c3_i32_134 = arith.constant 3 : i32
    %c8_i32_135 = arith.constant 8 : i32
    %319 = arith.muli %c3_i32_134, %c8_i32_135 : i32
    %320 = tpu.assume_multiple %319, 8 : i32
    %321 = arith.index_cast %320 : i32 to index
    %c0_136 = arith.constant 0 : index
    %322 = vector.load %arg7[%321, %c0_136] : memref<64x128xf32, #tpu.memory_space<vmem>>, vector<8x128xf32>
    %cst_137 = arith.constant 1.000000e+00 : f32
    %323 = vector.broadcast %cst_137 : f32 to vector<8x128xf32>
    %324 = arith.subf %308, %323 : vector<8x128xf32>
    %cst_138 = arith.constant 0.000000e+00 : f32
    %325 = vector.broadcast %cst_138 : f32 to vector<8x128xf32>
    %326 = arith.cmpf ogt, %324, %325 : vector<8x128xf32>
    %327 = arith.extui %326 : vector<8x128xi1> to vector<8x128xi32>
    %328 = arith.sitofp %327 : vector<8x128xi32> to vector<8x128xf32>
    %cst_139 = arith.constant 0.899999976 : f32
    %329 = vector.broadcast %cst_139 : f32 to vector<8x128xf32>
    %330 = arith.mulf %329, %302 : vector<8x128xf32>
    %331 = arith.addf %330, %322 : vector<8x128xf32>
    %cst_140 = arith.constant 8.000000e-01 : f32
    %332 = vector.broadcast %cst_140 : f32 to vector<8x128xf32>
    %333 = arith.mulf %332, %308 : vector<8x128xf32>
    %334 = arith.addf %333, %331 : vector<8x128xf32>
    %cst_141 = arith.constant 1.000000e+00 : f32
    %335 = vector.broadcast %cst_141 : f32 to vector<8x128xf32>
    %336 = arith.mulf %328, %335 : vector<8x128xf32>
    %337 = arith.subf %334, %336 : vector<8x128xf32>
    %cst_142 = arith.constant 1.000000e+00 : f32
    %338 = vector.broadcast %cst_142 : f32 to vector<8x128xf32>
    %339 = arith.subf %337, %338 : vector<8x128xf32>
    %cst_143 = arith.constant 0.000000e+00 : f32
    %340 = vector.broadcast %cst_143 : f32 to vector<8x128xf32>
    %341 = arith.cmpf ogt, %339, %340 : vector<8x128xf32>
    %342 = arith.extui %341 : vector<8x128xi1> to vector<8x128xi32>
    %343 = arith.sitofp %342 : vector<8x128xi32> to vector<8x128xf32>
    %344 = arith.index_cast %320 : i32 to index
    %c0_144 = arith.constant 0 : index
    %345 = vector.load %arg6[%344, %c0_144] : memref<64x128xf32, #tpu.memory_space<vmem>>, vector<8x128xf32>
    tpu.vector_store %arg6[%344, %c0_144], %343 {strides = array<i32>} : memref<64x128xf32, #tpu.memory_space<vmem>>, vector<8x128xf32>,
    %346 = arith.index_cast %320 : i32 to index
    %c0_145 = arith.constant 0 : index
    %347 = vector.load %arg7[%346, %c0_145] : memref<64x128xf32, #tpu.memory_space<vmem>>, vector<8x128xf32>
    tpu.vector_store %arg7[%346, %c0_145], %337 {strides = array<i32>} : memref<64x128xf32, #tpu.memory_space<vmem>>, vector<8x128xf32>,
    %c4_i32_146 = arith.constant 4 : i32
    %c8_i32_147 = arith.constant 8 : i32
    %348 = arith.muli %c4_i32_146, %c8_i32_147 : i32
    %349 = tpu.assume_multiple %348, 8 : i32
    %350 = arith.index_cast %349 : i32 to index
    %c0_148 = arith.constant 0 : index
    %351 = vector.load %arg7[%350, %c0_148] : memref<64x128xf32, #tpu.memory_space<vmem>>, vector<8x128xf32>
    %cst_149 = arith.constant 1.000000e+00 : f32
    %352 = vector.broadcast %cst_149 : f32 to vector<8x128xf32>
    %353 = arith.subf %337, %352 : vector<8x128xf32>
    %cst_150 = arith.constant 0.000000e+00 : f32
    %354 = vector.broadcast %cst_150 : f32 to vector<8x128xf32>
    %355 = arith.cmpf ogt, %353, %354 : vector<8x128xf32>
    %356 = arith.extui %355 : vector<8x128xi1> to vector<8x128xi32>
    %357 = arith.sitofp %356 : vector<8x128xi32> to vector<8x128xf32>
    %cst_151 = arith.constant 0.899999976 : f32
    %358 = vector.broadcast %cst_151 : f32 to vector<8x128xf32>
    %359 = arith.mulf %358, %331 : vector<8x128xf32>
    %360 = arith.addf %359, %351 : vector<8x128xf32>
    %cst_152 = arith.constant 8.000000e-01 : f32
    %361 = vector.broadcast %cst_152 : f32 to vector<8x128xf32>
    %362 = arith.mulf %361, %337 : vector<8x128xf32>
    %363 = arith.addf %362, %360 : vector<8x128xf32>
    %cst_153 = arith.constant 1.000000e+00 : f32
    %364 = vector.broadcast %cst_153 : f32 to vector<8x128xf32>
    %365 = arith.mulf %357, %364 : vector<8x128xf32>
    %366 = arith.subf %363, %365 : vector<8x128xf32>
    %cst_154 = arith.constant 1.000000e+00 : f32
    %367 = vector.broadcast %cst_154 : f32 to vector<8x128xf32>
    %368 = arith.subf %366, %367 : vector<8x128xf32>
    %cst_155 = arith.constant 0.000000e+00 : f32
    %369 = vector.broadcast %cst_155 : f32 to vector<8x128xf32>
    %370 = arith.cmpf ogt, %368, %369 : vector<8x128xf32>
    %371 = arith.extui %370 : vector<8x128xi1> to vector<8x128xi32>
    %372 = arith.sitofp %371 : vector<8x128xi32> to vector<8x128xf32>
    %373 = arith.index_cast %349 : i32 to index
    %c0_156 = arith.constant 0 : index
    %374 = vector.load %arg6[%373, %c0_156] : memref<64x128xf32, #tpu.memory_space<vmem>>, vector<8x128xf32>
    tpu.vector_store %arg6[%373, %c0_156], %372 {strides = array<i32>} : memref<64x128xf32, #tpu.memory_space<vmem>>, vector<8x128xf32>,
    %375 = arith.index_cast %349 : i32 to index
    %c0_157 = arith.constant 0 : index
    %376 = vector.load %arg7[%375, %c0_157] : memref<64x128xf32, #tpu.memory_space<vmem>>, vector<8x128xf32>
    tpu.vector_store %arg7[%375, %c0_157], %366 {strides = array<i32>} : memref<64x128xf32, #tpu.memory_space<vmem>>, vector<8x128xf32>,
    %c5_i32_158 = arith.constant 5 : i32
    %c8_i32_159 = arith.constant 8 : i32
    %377 = arith.muli %c5_i32_158, %c8_i32_159 : i32
    %378 = tpu.assume_multiple %377, 8 : i32
    %379 = arith.index_cast %378 : i32 to index
    %c0_160 = arith.constant 0 : index
    %380 = vector.load %arg7[%379, %c0_160] : memref<64x128xf32, #tpu.memory_space<vmem>>, vector<8x128xf32>
    %cst_161 = arith.constant 1.000000e+00 : f32
    %381 = vector.broadcast %cst_161 : f32 to vector<8x128xf32>
    %382 = arith.subf %366, %381 : vector<8x128xf32>
    %cst_162 = arith.constant 0.000000e+00 : f32
    %383 = vector.broadcast %cst_162 : f32 to vector<8x128xf32>
    %384 = arith.cmpf ogt, %382, %383 : vector<8x128xf32>
    %385 = arith.extui %384 : vector<8x128xi1> to vector<8x128xi32>
    %386 = arith.sitofp %385 : vector<8x128xi32> to vector<8x128xf32>
    %cst_163 = arith.constant 0.899999976 : f32
    %387 = vector.broadcast %cst_163 : f32 to vector<8x128xf32>
    %388 = arith.mulf %387, %360 : vector<8x128xf32>
    %389 = arith.addf %388, %380 : vector<8x128xf32>
    %cst_164 = arith.constant 8.000000e-01 : f32
    %390 = vector.broadcast %cst_164 : f32 to vector<8x128xf32>
    %391 = arith.mulf %390, %366 : vector<8x128xf32>
    %392 = arith.addf %391, %389 : vector<8x128xf32>
    %cst_165 = arith.constant 1.000000e+00 : f32
    %393 = vector.broadcast %cst_165 : f32 to vector<8x128xf32>
    %394 = arith.mulf %386, %393 : vector<8x128xf32>
    %395 = arith.subf %392, %394 : vector<8x128xf32>
    %cst_166 = arith.constant 1.000000e+00 : f32
    %396 = vector.broadcast %cst_166 : f32 to vector<8x128xf32>
    %397 = arith.subf %395, %396 : vector<8x128xf32>
    %cst_167 = arith.constant 0.000000e+00 : f32
    %398 = vector.broadcast %cst_167 : f32 to vector<8x128xf32>
    %399 = arith.cmpf ogt, %397, %398 : vector<8x128xf32>
    %400 = arith.extui %399 : vector<8x128xi1> to vector<8x128xi32>
    %401 = arith.sitofp %400 : vector<8x128xi32> to vector<8x128xf32>
    %402 = arith.index_cast %378 : i32 to index
    %c0_168 = arith.constant 0 : index
    %403 = vector.load %arg6[%402, %c0_168] : memref<64x128xf32, #tpu.memory_space<vmem>>, vector<8x128xf32>
    tpu.vector_store %arg6[%402, %c0_168], %401 {strides = array<i32>} : memref<64x128xf32, #tpu.memory_space<vmem>>, vector<8x128xf32>,
    %404 = arith.index_cast %378 : i32 to index
    %c0_169 = arith.constant 0 : index
    %405 = vector.load %arg7[%404, %c0_169] : memref<64x128xf32, #tpu.memory_space<vmem>>, vector<8x128xf32>
    tpu.vector_store %arg7[%404, %c0_169], %395 {strides = array<i32>} : memref<64x128xf32, #tpu.memory_space<vmem>>, vector<8x128xf32>,
    %c6_i32_170 = arith.constant 6 : i32
    %c8_i32_171 = arith.constant 8 : i32
    %406 = arith.muli %c6_i32_170, %c8_i32_171 : i32
    %407 = tpu.assume_multiple %406, 8 : i32
    %408 = arith.index_cast %407 : i32 to index
    %c0_172 = arith.constant 0 : index
    %409 = vector.load %arg7[%408, %c0_172] : memref<64x128xf32, #tpu.memory_space<vmem>>, vector<8x128xf32>
    %cst_173 = arith.constant 1.000000e+00 : f32
    %410 = vector.broadcast %cst_173 : f32 to vector<8x128xf32>
    %411 = arith.subf %395, %410 : vector<8x128xf32>
    %cst_174 = arith.constant 0.000000e+00 : f32
    %412 = vector.broadcast %cst_174 : f32 to vector<8x128xf32>
    %413 = arith.cmpf ogt, %411, %412 : vector<8x128xf32>
    %414 = arith.extui %413 : vector<8x128xi1> to vector<8x128xi32>
    %415 = arith.sitofp %414 : vector<8x128xi32> to vector<8x128xf32>
    %cst_175 = arith.constant 0.899999976 : f32
    %416 = vector.broadcast %cst_175 : f32 to vector<8x128xf32>
    %417 = arith.mulf %416, %389 : vector<8x128xf32>
    %418 = arith.addf %417, %409 : vector<8x128xf32>
    %cst_176 = arith.constant 8.000000e-01 : f32
    %419 = vector.broadcast %cst_176 : f32 to vector<8x128xf32>
    %420 = arith.mulf %419, %395 : vector<8x128xf32>
    %421 = arith.addf %420, %418 : vector<8x128xf32>
    %cst_177 = arith.constant 1.000000e+00 : f32
    %422 = vector.broadcast %cst_177 : f32 to vector<8x128xf32>
    %423 = arith.mulf %415, %422 : vector<8x128xf32>
    %424 = arith.subf %421, %423 : vector<8x128xf32>
    %cst_178 = arith.constant 1.000000e+00 : f32
    %425 = vector.broadcast %cst_178 : f32 to vector<8x128xf32>
    %426 = arith.subf %424, %425 : vector<8x128xf32>
    %cst_179 = arith.constant 0.000000e+00 : f32
    %427 = vector.broadcast %cst_179 : f32 to vector<8x128xf32>
    %428 = arith.cmpf ogt, %426, %427 : vector<8x128xf32>
    %429 = arith.extui %428 : vector<8x128xi1> to vector<8x128xi32>
    %430 = arith.sitofp %429 : vector<8x128xi32> to vector<8x128xf32>
    %431 = arith.index_cast %407 : i32 to index
    %c0_180 = arith.constant 0 : index
    %432 = vector.load %arg6[%431, %c0_180] : memref<64x128xf32, #tpu.memory_space<vmem>>, vector<8x128xf32>
    tpu.vector_store %arg6[%431, %c0_180], %430 {strides = array<i32>} : memref<64x128xf32, #tpu.memory_space<vmem>>, vector<8x128xf32>,
    %433 = arith.index_cast %407 : i32 to index
    %c0_181 = arith.constant 0 : index
    %434 = vector.load %arg7[%433, %c0_181] : memref<64x128xf32, #tpu.memory_space<vmem>>, vector<8x128xf32>
    tpu.vector_store %arg7[%433, %c0_181], %424 {strides = array<i32>} : memref<64x128xf32, #tpu.memory_space<vmem>>, vector<8x128xf32>,
    %c7_i32_182 = arith.constant 7 : i32
    %c8_i32_183 = arith.constant 8 : i32
    %435 = arith.muli %c7_i32_182, %c8_i32_183 : i32
    %436 = tpu.assume_multiple %435, 8 : i32
    %437 = arith.index_cast %436 : i32 to index
    %c0_184 = arith.constant 0 : index
    %438 = vector.load %arg7[%437, %c0_184] : memref<64x128xf32, #tpu.memory_space<vmem>>, vector<8x128xf32>
    %cst_185 = arith.constant 1.000000e+00 : f32
    %439 = vector.broadcast %cst_185 : f32 to vector<8x128xf32>
    %440 = arith.subf %424, %439 : vector<8x128xf32>
    %cst_186 = arith.constant 0.000000e+00 : f32
    %441 = vector.broadcast %cst_186 : f32 to vector<8x128xf32>
    %442 = arith.cmpf ogt, %440, %441 : vector<8x128xf32>
    %443 = arith.extui %442 : vector<8x128xi1> to vector<8x128xi32>
    %444 = arith.sitofp %443 : vector<8x128xi32> to vector<8x128xf32>
    %cst_187 = arith.constant 0.899999976 : f32
    %445 = vector.broadcast %cst_187 : f32 to vector<8x128xf32>
    %446 = arith.mulf %445, %418 : vector<8x128xf32>
    %447 = arith.addf %446, %438 : vector<8x128xf32>
    %cst_188 = arith.constant 8.000000e-01 : f32
    %448 = vector.broadcast %cst_188 : f32 to vector<8x128xf32>
    %449 = arith.mulf %448, %424 : vector<8x128xf32>
    %450 = arith.addf %449, %447 : vector<8x128xf32>
    %cst_189 = arith.constant 1.000000e+00 : f32
    %451 = vector.broadcast %cst_189 : f32 to vector<8x128xf32>
    %452 = arith.mulf %444, %451 : vector<8x128xf32>
    %453 = arith.subf %450, %452 : vector<8x128xf32>
    %cst_190 = arith.constant 1.000000e+00 : f32
    %454 = vector.broadcast %cst_190 : f32 to vector<8x128xf32>
    %455 = arith.subf %453, %454 : vector<8x128xf32>
    %cst_191 = arith.constant 0.000000e+00 : f32
    %456 = vector.broadcast %cst_191 : f32 to vector<8x128xf32>
    %457 = arith.cmpf ogt, %455, %456 : vector<8x128xf32>
    %458 = arith.extui %457 : vector<8x128xi1> to vector<8x128xi32>
    %459 = arith.sitofp %458 : vector<8x128xi32> to vector<8x128xf32>
    %460 = arith.index_cast %436 : i32 to index
    %c0_192 = arith.constant 0 : index
    %461 = vector.load %arg6[%460, %c0_192] : memref<64x128xf32, #tpu.memory_space<vmem>>, vector<8x128xf32>
    tpu.vector_store %arg6[%460, %c0_192], %459 {strides = array<i32>} : memref<64x128xf32, #tpu.memory_space<vmem>>, vector<8x128xf32>,
    %462 = arith.index_cast %436 : i32 to index
    %c0_193 = arith.constant 0 : index
    %463 = vector.load %arg7[%462, %c0_193] : memref<64x128xf32, #tpu.memory_space<vmem>>, vector<8x128xf32>
    tpu.vector_store %arg7[%462, %c0_193], %453 {strides = array<i32>} : memref<64x128xf32, #tpu.memory_space<vmem>>, vector<8x128xf32>,
    %c8_i32_194 = arith.constant 8 : i32
    return
  }
  func.func @transform_0(%arg0: i32) -> (i32, i32) {
    %c0_i32 = arith.constant 0 : i32
    %c0_i32_0 = arith.constant 0 : i32
    %c0_i32_1 = arith.constant 0 : i32
    return %c0_i32, %c0_i32_0 : i32, i32
  }
  func.func @transform_1(%arg0: i32) -> (i32, i32) {
    %c0_i32 = arith.constant 0 : i32
    %c0_i32_0 = arith.constant 0 : i32
    %c0_i32_1 = arith.constant 0 : i32
    return %c0_i32, %c0_i32_0 : i32, i32
  }
  func.func @transform_2(%arg0: i32) -> (i32, i32) {
    %c0_i32 = arith.constant 0 : i32
    %c0_i32_0 = arith.constant 0 : i32
    %c0_i32_1 = arith.constant 0 : i32
    return %c0_i32, %c0_i32_0 : i32, i32
  }
  func.func @transform_3(%arg0: i32) -> (i32, i32) {
    %c0_i32 = arith.constant 0 : i32
    %c0_i32_0 = arith.constant 0 : i32
    %c0_i32_1 = arith.constant 0 : i32
    return %c0_i32, %c0_i32_0 : i32, i32
  }
  func.func @transform_4(%arg0: i32) -> (i32, i32) {
    %c0_i32 = arith.constant 0 : i32
    %c0_i32_0 = arith.constant 0 : i32
    %c0_i32_1 = arith.constant 0 : i32
    return %c0_i32, %c0_i32_0 : i32, i32
  }
  func.func @transform_5(%arg0: i32) -> (i32, i32) {
    %c0_i32 = arith.constant 0 : i32
    %c0_i32_0 = arith.constant 0 : i32
    %c0_i32_1 = arith.constant 0 : i32
    return %c0_i32, %c0_i32_0 : i32, i32
  }
  func.func @transform_6(%arg0: i32) -> (i32, i32) {
    %c0_i32 = arith.constant 0 : i32
    %c0_i32_0 = arith.constant 0 : i32
    %c0_i32_1 = arith.constant 0 : i32
    return %c0_i32, %c0_i32_0 : i32, i32
  }
}

</mosaic_0001>

<bundles_post_ra>
// kernel: tpu_custom_call.1
= control target key start
LH: loop header
LB: loop body
LE: loop exit
PB: predicated region body
PF: predicated region fallthrough
CT: control target
= control target key end

     0   :  { %12 = vsyncpa [#allocation4], 0  ;;  %s8087_s0 = inlined_call_operand.hbm [shape: f32[64,784], index: 0, kind: input, shape index: {}]   ;;  %s8088_s1 = inlined_call_operand.hbm [shape: f32[784,128], index: 1, kind: input, shape index: {}]   ;;  %s8089_s2 = inlined_call_operand.vmem [shape: f32[1,128], index: 2, kind: input, shape index: {}]   ;;  %s8090_s3 = inlined_call_operand.hbm [shape: f32[128,128], index: 3, kind: input, shape index: {}]   ;;  %s8091_s4 = inlined_call_operand.vmem [shape: f32[1,128], index: 4, kind: input, shape index: {}]   ;;  %s8092_s5 = inlined_call_operand.hbm [shape: f32[64,128], index: 5, kind: output, shape index: {0}]   ;;  %s8093_s6 = inlined_call_operand.hbm [shape: f32[64,128], index: 6, kind: output, shape index: {1}]  }
   0x1   :  { %13 = vsyncpa [#allocation7], 0 }
   0x2   :  { %14 = vsyncpa [#allocation5], 0  ;;  %s33_s23 = sshll.u32 %s8088_s1, 4  ;;  %s34_s23 = int_to_ptr.hbm [resolvable:$true] %s33_s23 }
   0x3   :  { %15 = vsyncpa [#allocation11], 0  ;;  %s5019_s24 = smov [#allocation6]   ;;  %s20_s28 = sshll.u32 %s8087_s0, 4  ;;  %s21_s28 = int_to_ptr.hbm [resolvable:$true] %s20_s28 }
   0x4   :  { %s35_s25 = sshll.u32 %s5019_s24, 4  ;;  %s5020_s29 = smov 128   ;;  %s36_s25 = int_to_ptr.vmem [resolvable:$true] %s35_s25 }
   0x5   :  { %s5021_s30 = smov 8   ;;  %s5022_s7 = smov [#allocation3]  }
   0x6   :  { %41 = dma.hbm_to_vmem [thread:$0]  %s34_s23, 12544, %s36_s25, [#allocation7], %s5020_s29, %s5020_s29, %s5021_s30  }
   0x7   :  { %s22_s8 = sshll.u32 %s5022_s7, 4  ;;  %s5023_s1 = smov 896   ;;  %s23_s8 = int_to_ptr.vmem [resolvable:$true] %s22_s8 }
   0x8   :  { %s5024_s9 = smov 56   ;;  %s48_s12 = sshll.u32 %s8090_s3, 4  ;;  %s49_s12 = int_to_ptr.hbm [resolvable:$true] %s48_s12 }
   0x9   :  { %28 = dma.hbm_to_vmem [thread:$0]  %s21_s28, 7168, %s23_s8, [#allocation4], %s5023_s1, %s5023_s1, %s5024_s9  }
   0xa   :  { %s5025_s13 = smov [#allocation8]  }
   0xb   :  { %s50_s0 = sshll.u32 %s5025_s13, 4  ;;  %s51_s0 = int_to_ptr.vmem [resolvable:$true] %s50_s0 }
   0xc   :  { %56 = dma.hbm_to_vmem [thread:$0]  %s49_s12, 2048, %s51_s0, [#allocation7], %s5020_s29, %s5020_s29, %s5021_s30  }
   0xd   :  { %5011 = dma.done.wait [#allocation4], 7168  }
   0xe   :  { %5012 = vsyncadd [#allocation4], 4294960128 }
   0xf   :  { %5013 = dma.done.wait [#allocation7], 14592  }
  0x10   :  { %5014 = vsyncadd [#allocation7], 4294952704  ;;  %v142_v0 = vld [vmem:[#allocation6 + $0x78] sm:$0xff]  ;;  %v141_v1 = vld [vmem:[#allocation6 + $0x70] sm:$0xff]  ;;  %vm229_vm0 = vcmask 130048   ;;  %s4803_s19 = sshll.u32 %s8093_s6, 4  ;;  %s4804_s19 = int_to_ptr.hbm [resolvable:$true] %s4803_s19 }
  0x11   :  { %v140_v2 = vld [vmem:[#allocation6 + $0x68] sm:$0xff]  ;;  %v5080_v3 = vand.u32 4294901760, %v142_v0  ;;  %v5082_v4 = vand.u32 4294901760, %v141_v1  ;;  %v139_v6 = vld [vmem:[#allocation6 + $0x60] sm:$0xff]  ;;  %v138_v7 = vld [vmem:[#allocation6 + $0x58] sm:$0xff]  ;;  %s5029_s20 = smov [#allocation9]  }
  0x12   :  { %v5084_v5 = vand.u32 4294901760, %v140_v2  ;;  %v137_v8 = vld [vmem:[#allocation6 + $0x50] sm:$0xff]  ;;  %v5086_v9 = vand.u32 4294901760, %v139_v6  ;;  %v5088_v10 = vand.u32 4294901760, %v138_v7  ;;  %v136_v12 = vld [vmem:[#allocation6 + $0x48] sm:$0xff]  ;;  %v135_v13 = vld [vmem:[#allocation6 + $0x40] sm:$0xff] }
  0x13   :  { %v5090_v11 = vand.u32 4294901760, %v137_v8  ;;  %255 = vmatpush.msra.mxu0 %v5080_v3  ;;  %v5094_v14 = vsub.f32 %v142_v0, %v5080_v3  ;;  %v5097_v15 = vsub.f32 %v141_v1, %v5082_v4  ;;  %570 = vmatpush.msra.mxu3 %v5080_v3  ;;  %v5103_v17 = vand.u32 4294901760, %v136_v12  ;;  %v134_v18 = vld [vmem:[#allocation6 + $0x38] sm:$0xff]  ;;  %v133_v29 = vld [vmem:[#allocation6 + $0x30] sm:$0xff]  ;;  %v132_v36 = vld [vmem:[#allocation6 + $0x28] sm:$0xff]  ;;  %s4788_s21 = sshll.u32 %s5029_s20, 4  ;;  %s4789_s21 = int_to_ptr.vmem [resolvable:$true] %s4788_s21 }
  0x14   :  { %v5101_v16 = vsub.f32 %v140_v2, %v5084_v5  ;;  %v5106_v19 = vsub.f32 %v139_v6, %v5086_v9  ;;  %v5109_v20 = vsub.f32 %v138_v7, %v5088_v10  ;;  %v5111_v21 = vand.u32 4294901760, %v135_v13  ;;  %v131_v43 = vld [vmem:[#allocation6 + $0x20] sm:$0xff]  ;;  %v130_v49 = vld [vmem:[#allocation6 + $0x18] sm:$0xff]  ;;  %v129_v55 = vld [vmem:[#allocation6 + $0x10] sm:$0xff]  ;;  %s4790_s24 = sshll.u32 %s8092_s5, 4  ;;  %s4791_s24 = int_to_ptr.hbm [resolvable:$true] %s4790_s24 }
  0x15   :  { %v5114_v22 = vsub.f32 %v137_v8, %v5090_v11  ;;  %257 = vmatpush.msra.mxu0 %v5082_v4  ;;  %482 = vmatpush.msra.mxu2 %v5094_v14  ;;  %v353_v23 = vand.u32 4294901760, %v5094_v14  ;;  %v359_v24 = vand.u32 4294901760, %v5097_v15  ;;  %v5123_v27 = vand.u32 4294901760, %v134_v18  ;;  %v71_v56 = vld [vmem:[#allocation3] sm:$0xff]  ;;  %v128_v62 = vld [vmem:[#allocation6 + $0x8] sm:$0xff] }
  0x16   :  { %v365_v25 = vand.u32 4294901760, %v5101_v16  ;;  %572 = vmatpush.msra.mxu3 %v5082_v4  ;;  %v8107_v26 = vand.u32 4294901760, %v5106_v19  ;;  %v5126_v28 = vsub.f32 %v136_v12, %v5103_v17  ;;  %v8106_v33 = vand.u32 4294901760, %v5109_v20  ;;  %v127_v2 = vld [vmem:[#allocation6] sm:$0xff] }
  0x17   :  { %259 = vmatpush.msra.mxu0 %v5084_v5  ;;  %485 = vmatpush.msra.mxu2 %v5097_v15  ;;  %v354_v30 = vsub.f32 %v5094_v14, %v353_v23  ;;  %v360_v31 = vsub.f32 %v5097_v15, %v359_v24  ;;  %v8104_v34 = vand.u32 4294901760, %v5114_v22  ;;  %v5143_v35 = vsub.f32 %v135_v13, %v5111_v21 }
  0x18   :  { %v366_v32 = vsub.f32 %v5101_v16, %v365_v25  ;;  %574 = vmatpush.msra.mxu3 %v5084_v5  ;;  %v372_v39 = vsub.f32 %v5106_v19, %v8107_v26  ;;  %v5150_v40 = vand.u32 4294901760, %v133_v29  ;;  %v8103_v41 = vand.u32 4294901760, %v5126_v28 }
  0x19   :  { %261 = vmatpush.msra.mxu0 %v5086_v9  ;;  %v355_v37 = vand.u32 4294901760, %v354_v30  ;;  %488 = vmatpush.msra.mxu2 %v5101_v16  ;;  %v361_v38 = vand.u32 4294901760, %v360_v31  ;;  %v5155_v42 = vsub.f32 %v134_v18, %v5123_v27  ;;  %v378_v45 = vsub.f32 %v5109_v20, %v8106_v33  ;;  %v78_v30 = vld [vmem:[#allocation3 + $0x38] sm:$0xff] }
  0x1a   :  { %576 = vmatpush.msra.mxu3 %v5086_v9  ;;  %v367_v44 = vand.u32 4294901760, %v366_v32  ;;  %v5161_v46 = vand.u32 4294901760, %v132_v36  ;;  %v384_v47 = vsub.f32 %v5114_v22, %v8104_v34  ;;  %v8102_v48 = vand.u32 4294901760, %v5143_v35 }
  0x1b   :  { %263 = vmatpush.msra.mxu0 %v5088_v10  ;;  %356 = vmatpush.msra.mxu1 %v355_v37  ;;  %v373_v50 = vand.u32 4294901760, %v372_v39  ;;  %v5170_v51 = vand.u32 4294901760, %v131_v43  ;;  %v5173_v52 = vsub.f32 %v133_v29, %v5150_v40  ;;  %v390_v53 = vsub.f32 %v5126_v28, %v8103_v41  ;;  %v155_v41 = vld [vmem:[#allocation6 + $0xe0] sm:$0xff] }
  0x1c   :  { %491 = vmatpush.msra.mxu2 %v5106_v19  ;;  %578 = vmatpush.msra.mxu3 %v5088_v10  ;;  %v8101_v54 = vand.u32 4294901760, %v5155_v42  ;;  %v379_v57 = vand.u32 4294901760, %v378_v45  ;;  %v5182_v58 = vand.u32 4294901760, %v130_v49  ;;  %v5185_v59 = vsub.f32 %v132_v36, %v5161_v46 }
  0x1d   :  { %265 = vmatpush.msra.mxu0 %v5090_v11  ;;  %362 = vmatpush.msra.mxu1 %v361_v38  ;;  %v385_v60 = vand.u32 4294901760, %v384_v47  ;;  %v396_v61 = vsub.f32 %v5143_v35, %v8102_v48  ;;  %v5193_v63 = vand.u32 4294901760, %v129_v55  ;;  %v8099_v0 = vand.u32 4294901760, %v5173_v52 }
  0x1e   :  { %494 = vmatpush.msra.mxu2 %v5109_v20  ;;  %580 = vmatpush.msra.mxu3 %v5090_v11  ;;  %v5197_v1 = vsub.f32 %v131_v43, %v5170_v51  ;;  %v5199_v6 = vand.u32 4294901760, %v71_v56  ;;  %v391_v7 = vand.u32 4294901760, %v390_v53  ;;  %v402_v8 = vsub.f32 %v5155_v42, %v8101_v54  ;;  %v156_v54 = vld [vmem:[#allocation6 + $0xe8] sm:$0xff] }
  0x1f   :  { %267 = vmatpush.msra.mxu0 %v5103_v17  ;;  %368 = vmatpush.msra.mxu1 %v367_v44  ;;  %v5207_v12 = vand.u32 4294901760, %v128_v62  ;;  %v8097_v13 = vand.u32 4294901760, %v5185_v59  ;;  %v5211_v18 = vsub.f32 %v130_v49, %v5182_v58  ;;  %v5218_v31 = vand.u32 4294901760, %v127_v2 }
  0x20   :  { %497 = vmatpush.msra.mxu2 %v5114_v22  ;;  %582 = vmatpush.msra.mxu3 %v5103_v17  ;;  %v5214_v29 = vsub.f32 %v71_v56, %v5199_v6  ;;  %v397_v32 = vand.u32 4294901760, %v396_v61  ;;  %v408_v36 = vsub.f32 %v5173_v52, %v8099_v0  ;;  %v8095_v37 = vand.u32 4294901760, %v5197_v1 }
  0x21   :  { %269 = vmatpush.msra.mxu0 %v5111_v21  ;;  %374 = vmatpush.msra.mxu1 %v373_v50  ;;  %v5226_v38 = vsub.f32 %v129_v55, %v5193_v63  ;;  %v5231_v43 = vand.u32 4294901760, %v78_v30  ;;  %v403_v44 = vand.u32 4294901760, %v402_v8  ;;  %v414_v45 = vsub.f32 %v5185_v59, %v8097_v13 }
  0x22   :  { %500 = vmatpush.msra.mxu2 %v5126_v28  ;;  %584 = vmatpush.msra.mxu3 %v5111_v21  ;;  %v288_v39 = vand.u32 4294901760, %v5214_v29  ;;  %v8094_v47 = vand.u32 4294901760, %v5211_v18  ;;  %v5239_v49 = vsub.f32 %v128_v62, %v5207_v12  ;;  %v5244_v50 = vsub.f32 %v127_v2, %v5218_v31 }
  0x23   :  { %271 = vmatpush.msra.mxu0 %v5123_v27  ;;  %380 = vmatpush.msra.mxu1 %v379_v57  ;;  %8205 = vst [vmem:[#allocation16_spill] sm:$0xff] %v5231_v43  ;;  %v409_v53 = vand.u32 4294901760, %v408_v36  ;;  %v420_v55 = vsub.f32 %v5197_v1, %v8095_v37  ;;  %v8096_v56 = vand.u32 4294901760, %v5226_v38  ;;  %v415_v61 = vand.u32 4294901760, %v414_v45 }
  0x24   :  { %503 = vmatpush.msra.mxu2 %v5143_v35  ;;  %586 = vmatpush.msra.mxu3 %v5123_v27  ;;  %v289_v57 = vsub.f32 %v5214_v29, %v288_v39  ;;  %v426_v62 = vsub.f32 %v5211_v18, %v8094_v47  ;;  %v8098_v2 = vand.u32 4294901760, %v5239_v49  ;;  %v8100_v8 = vand.u32 4294901760, %v5244_v50  ;;  %v158_v47 = vld [vmem:[#allocation6 + $0xf8] sm:$0xff] }
  0x25   :  { %273 = vmatpush.msra.mxu0 %v5150_v40  ;;  %386 = vmatpush.msra.mxu1 %v385_v60  ;;  %v5257_v60 = vsub.f32 %v78_v30, %v5231_v43  ;;  %v421_v30 = vand.u32 4294901760, %v420_v55  ;;  %v5280_v55 = vand.u32 4294901760, %v158_v47  ;;  %v5302_v48 = vand.u32 4294901760, %v156_v54 }
  0x26   :  { %506 = vmatpush.msra.mxu2 %v5155_v42  ;;  %588 = vmatpush.msra.mxu3 %v5150_v40  ;;  %v290_v36 = vand.u32 4294901760, %v289_v57  ;;  %v427_v37 = vand.u32 4294901760, %v426_v62  ;;  %v444_v57 = vsub.f32 %v5244_v50, %v8100_v8  ;;  %v92_v62 = vld [vmem:[#allocation3 + $0xa8] sm:$0xff] }
  0x27   :  { %275 = vmatpush.msra.mxu0 %v5161_v46  ;;  %392 = vmatpush.msra.mxu1 %v391_v7  ;;  %v85_v7 = vld [vmem:[#allocation3 + $0x70] sm:$0xff]  ;;  %v5320_v34 = vsub.f32 %v156_v54, %v5302_v48 }
  0x28   :  { %509 = vmatpush.msra.mxu2 %v5173_v52  ;;  %590 = vmatpush.msra.mxu3 %v5161_v46  ;;  %v5274_v45 = vand.u32 4294901760, %v85_v7 }
  0x29   :  { %277 = vmatpush.msra.mxu0 %v5170_v51  ;;  %398 = vmatpush.msra.mxu1 %v397_v32  ;;  %v432_v32 = vsub.f32 %v5226_v38, %v8096_v56  ;;  %v157_v56 = vld [vmem:[#allocation6 + $0xf0] sm:$0xff]  ;;  %v8108_v33 = vand.u32 4294901760, %v5320_v34 }
  0x2a   :  { %512 = vmatpush.msra.mxu2 %v5185_v59  ;;  %592 = vmatpush.msra.mxu3 %v5170_v51  ;;  %8206 = vst [vmem:[#allocation17_spill] sm:$0xff] %v5274_v45  ;;  %v5288_v13 = vand.u32 4294901760, %v157_v56  ;;  %v5298_v8 = vsub.f32 %v85_v7, %v5274_v45  ;;  %v5310_v7 = vand.u32 4294901760, %v92_v62 }
  0x2b   :  { %279 = vmatpush.msra.mxu0 %v5182_v58  ;;  %404 = vmatpush.msra.mxu1 %v403_v44  ;;  %v296_v44 = vand.u32 4294901760, %v5257_v60 }
  0x2c   :  { %515 = vmatpush.msra.mxu2 %v5197_v1  ;;  %594 = vmatpush.msra.mxu3 %v5182_v58  ;;  %v5339_v54 = vsub.f32 %v92_v62, %v5310_v7 }
  0x2d   :  { %281 = vmatpush.msra.mxu0 %v5193_v63  ;;  %410 = vmatpush.msra.mxu1 %v409_v53  ;;  %v438_v53 = vsub.f32 %v5239_v49, %v8098_v2  ;;  %v5291_v2 = vsub.f32 %v158_v47, %v5280_v55  ;;  %v297_v0 = vsub.f32 %v5257_v60, %v296_v44 }
  0x2e   :  { %518 = vmatpush.msra.mxu2 %v5211_v18  ;;  %596 = vmatpush.msra.mxu3 %v5193_v63  ;;  %v5305_v47 = vsub.f32 %v157_v56, %v5288_v13  ;;  %v5317_v56 = vand.u32 4294901760, %v155_v41 }
  0x2f   :  { %283 = vmatpush.msra.mxu0 %v5207_v12  ;;  %416 = vmatpush.msra.mxu1 %v415_v61  ;;  %v433_v61 = vand.u32 4294901760, %v432_v32  ;;  %v8105_v32 = vand.u32 4294901760, %v5291_v2 }
  0x30   :  { %521 = vmatpush.msra.mxu2 %v5226_v38  ;;  %598 = vmatpush.msra.mxu3 %v5207_v12  ;;  %v5336_v14 = vsub.f32 %v155_v41, %v5317_v56 }
  0x31   :  { %285 = vmatpush.msra.mxu0 %v5218_v31  ;;  %422 = vmatpush.msra.mxu1 %v421_v30  ;;  %v439_v30 = vand.u32 4294901760, %v438_v53  ;;  %v8109_v53 = vand.u32 4294901760, %v5305_v47 }
  0x32   :  { %291 = vmatmul.f32.vlgmr.msra.gmra.mxu0 %v290_v36  ;;  %524 = vmatpush.msra.mxu2 %v5239_v49  ;;  %v445_v36 = vand.u32 4294901760, %v444_v57  ;;  %v304_v57 = vand.u32 4294901760, %v5298_v8  ;;  %v8111_v62 = vand.u32 4294901760, %v5336_v14 }
  0x33   :  { %428 = vmatpush.msra.mxu1 %v427_v37  ;;  %600 = vmatpush.msra.mxu3 %v5218_v31  ;;  %v912_v37 = vsub.f32 %v5291_v2, %v8105_v32  ;;  %v918_v32 = vsub.f32 %v5305_v47, %v8109_v53 }
  0x34   :  { %527 = vmatpush.msra.mxu2 %v5244_v50  ;;  %604 = vmatmul.f32.vlgmr.msra.gmra.mxu3 %v288_v39  ;;  %v298_v39 = vand.u32 4294901760, %v297_v0  ;;  %v924_v0 = vsub.f32 %v5320_v34, %v8108_v33  ;;  %v305_v15 = vsub.f32 %v5298_v8, %v304_v57 }
  0x35   :  { %434 = vmatpush.msra.mxu1 %v433_v61  ;;  %530 = vmatmul.f32.vlgmr.msra.gmra.mxu2 %v5214_v29  ;;  %v154_v29 = vld [vmem:[#allocation6 + $0xd8] sm:$0xff]  ;;  %v913_v61 = vand.u32 4294901760, %v912_v37  ;;  %v919_v41 = vand.u32 4294901760, %v918_v32  ;;  %v152_v37 = vld [vmem:[#allocation6 + $0xc8] sm:$0xff]  ;;  %v151_v32 = vld [vmem:[#allocation6 + $0xc0] sm:$0xff] }
  0x36   :  { %653 = vmatpush.msrb.mxu0 %v353_v23  ;;  %813 = vmatpush.msrb.mxu2 %v5280_v55  ;;  %v5330_v26 = vand.u32 4294901760, %v154_v29  ;;  %v153_v23 = vld [vmem:[#allocation6 + $0xd0] sm:$0xff]  ;;  %v306_v16 = vand.u32 4294901760, %v305_v15  ;;  %v5376_v53 = vand.u32 4294901760, %v151_v32 }
  0x37   :  { %440 = vmatpush.msra.mxu1 %v439_v30  ;;  %914 = vmatpush.msrb.mxu3 %v913_v61  ;;  %v5361_v61 = vand.u32 4294901760, %v152_v37 }
  0x38   :  { %657 = vmatpush.msrb.mxu0 %v359_v24  ;;  %815 = vmatpush.msrb.mxu2 %v5288_v13  ;;  %v5345_v30 = vsub.f32 %v154_v29, %v5330_v26  ;;  %v99_v24 = vld [vmem:[#allocation3 + $0xe0] sm:$0xff] }
  0x39   :  { %446 = vmatpush.msra.mxu1 %v445_v36  ;;  %v5352_v36 = vand.u32 4294901760, %v153_v23  ;;  %v5366_v33 = vand.u32 4294901760, %v99_v24  ;;  %920 = vmatpush.msrb.mxu3 %v919_v41  ;;  %v5386_v15 = vsub.f32 %v152_v37, %v5361_v61 }
  0x3a   :  { %299 = vmatmul.f32.gmra.mxu0 %v298_v39  ;;  %448 = vmatmul.f32.vlgmr.msra.gmra.mxu1 %v5199_v6  ;;  %v925_v39 = vand.u32 4294901760, %v924_v0  ;;  %v8110_v29 = vand.u32 4294901760, %v5345_v30 }
  0x3b   :  { %748 = vmatpush.msrb.mxu1 %v5080_v3  ;;  %661 = vmatpush.msrb.mxu0 %v365_v25  ;;  %v8112_v3 = vand.u32 4294901760, %v5339_v54  ;;  %v8207_v25 = vand.u32 4294901760, %v5106_v19  ;;  %v5374_v0 = vsub.f32 %v153_v23, %v5352_v36  ;;  %v149_v23 = vld [vmem:[#allocation6 + $0xb0] sm:$0xff]  ;;  %v5390_v41 = vsub.f32 %v99_v24, %v5366_v33 }
  0x3c   :  { %610 = vmatmul.f32.gmra.mxu3 %v296_v44  ;;  %817 = vmatpush.msrb.mxu2 %v5302_v48  ;;  %v930_v44 = vsub.f32 %v5336_v14, %v8111_v62  ;;  %v936_v19 = vsub.f32 %v5345_v30, %v8110_v29  ;;  %v8210_v24 = vand.u32 4294901760, %v5114_v22  ;;  %v8114_v29 = vand.u32 4294901760, %v5386_v15  ;;  %v147_v62 = vld [vmem:[#allocation6 + $0xa0] sm:$0xff] }
  0x3d   :  { %535 = vmatmul.f32.gmra.mxu2 %v5257_v60  ;;  %750 = vmatpush.msrb.mxu1 %v5082_v4  ;;  %v150_v60 = vld [vmem:[#allocation6 + $0xb8] sm:$0xff]  ;;  %v8208_v4 = vand.u32 4294901760, %v5109_v20  ;;  %v313_v20 = vsub.f32 %v5339_v54, %v8112_v3  ;;  %v8113_v37 = vand.u32 4294901760, %v5374_v0 }
  0x3e   :  { %665 = vmatpush.msrb.mxu0 %v8207_v25  ;;  %819 = vmatpush.msrb.mxu2 %v5317_v56  ;;  %v5401_v25 = vsub.f32 %v151_v32, %v5376_v53 }
  0x3f   :  { %752 = vmatpush.msrb.mxu1 %v5084_v5  ;;  %926 = vmatpush.msrb.mxu3 %v925_v39  ;;  %v5393_v5 = vand.u32 4294901760, %v150_v60  ;;  %v931_v39 = vand.u32 4294901760, %v930_v44  ;;  %v937_v44 = vand.u32 4294901760, %v936_v19  ;;  %v146_v19 = vld [vmem:[#allocation6 + $0x98] sm:$0xff] }
  0x40   :  { %669 = vmatpush.msrb.mxu0 %v8208_v4  ;;  %821 = vmatpush.msrb.mxu2 %v5330_v26  ;;  %v106_v4 = vld [vmem:[#allocation3 + $0x118] sm:$0xff] }
  0x41   :  { %754 = vmatpush.msrb.mxu1 %v5086_v9  ;;  %8209 = vst [vmem:[#allocation18_spill] sm:$0xff] %v5393_v5  ;;  %v148_v9 = vld [vmem:[#allocation6 + $0xa8] sm:$0xff]  ;;  %v5416_v22 = vsub.f32 %v150_v60, %v5393_v5  ;;  %v5422_v3 = vand.u32 4294901760, %v106_v4  ;;  %932 = vmatpush.msrb.mxu3 %v931_v39  ;;  %v948_v39 = vsub.f32 %v5386_v15, %v8114_v29 }
  0x42   :  { %307 = vmatmul.f32.gmra.mxu0 %v306_v16  ;;  %452 = vmatmul.f32.gmra.mxu1 %v5231_v43  ;;  %v5406_v16 = vand.u32 4294901760, %v149_v23  ;;  %v5418_v32 = vand.u32 4294901760, %v148_v9  ;;  %v144_v29 = vld [vmem:[#allocation6 + $0x88] sm:$0xff] }
  0x43   :  { %756 = vmatpush.msrb.mxu1 %v5088_v10  ;;  %673 = vmatpush.msrb.mxu0 %v8210_v24  ;;  %v8117_v10 = vand.u32 4294901760, %v5390_v41  ;;  %v314_v24 = vand.u32 4294901760, %v313_v20  ;;  %v5433_v20 = vand.u32 4294901760, %v147_v62  ;;  %v5480_v43 = vand.u32 4294901760, %v144_v29 }
  0x44   :  { %616 = vmatmul.f32.gmra.mxu3 %v304_v57  ;;  %823 = vmatpush.msrb.mxu2 %v5352_v36  ;;  %v8211_v57 = vand.u32 4294901760, %v5126_v28  ;;  %v5431_v60 = vsub.f32 %v149_v23, %v5406_v16  ;;  %v8212_v28 = vand.u32 4294901760, %v5143_v35  ;;  %v5444_v23 = vsub.f32 %v148_v9, %v5418_v32 }
  0x45   :  { %540 = vmatmul.f32.gmra.mxu2 %v5298_v8  ;;  %758 = vmatpush.msrb.mxu1 %v5090_v11  ;;  %v942_v8 = vsub.f32 %v5374_v0, %v8113_v37  ;;  %v8118_v11 = vand.u32 4294901760, %v5401_v25  ;;  %v5446_v37 = vand.u32 4294901760, %v146_v19  ;;  %v321_v35 = vsub.f32 %v5390_v41, %v8117_v10 }
  0x46   :  { %677 = vmatpush.msrb.mxu0 %v8211_v57  ;;  %825 = vmatpush.msrb.mxu2 %v5361_v61  ;;  %v145_v57 = vld [vmem:[#allocation6 + $0x90] sm:$0xff]  ;;  %v8213_v9 = vand.u32 4294901760, %v5155_v42  ;;  %v8215_v42 = vand.u32 4294901760, %v5173_v52 }
  0x47   :  { %760 = vmatpush.msrb.mxu1 %v5103_v17  ;;  %938 = vmatpush.msrb.mxu3 %v937_v44  ;;  %v5453_v44 = vsub.f32 %v106_v4, %v5422_v3  ;;  %v5465_v10 = vand.u32 4294901760, %v145_v57  ;;  %v8214_v4 = vand.u32 4294901760, %v5339_v54  ;;  %v5478_v17 = vsub.f32 %v146_v19, %v5446_v37 }
  0x48   :  { %681 = vmatpush.msrb.mxu0 %v8212_v28  ;;  %827 = vmatpush.msrb.mxu2 %v5376_v53  ;;  %v954_v28 = vsub.f32 %v5401_v25, %v8118_v11  ;;  %v143_v11 = vld [vmem:[#allocation6 + $0x80] sm:$0xff] }
  0x49   :  { %762 = vmatpush.msrb.mxu1 %v5111_v21  ;;  %v943_v21 = vand.u32 4294901760, %v942_v8  ;;  %v949_v8 = vand.u32 4294901760, %v948_v39  ;;  %v322_v39 = vand.u32 4294901760, %v321_v35  ;;  %v5494_v35 = vsub.f32 %v145_v57, %v5465_v10 }
  0x4a   :  { %315 = vmatmul.f32.gmra.mxu0 %v314_v24  ;;  %456 = vmatmul.f32.gmra.mxu1 %v5274_v45  ;;  %v113_v24 = vld [vmem:[#allocation3 + $0x150] sm:$0xff]  ;;  %v5463_v45 = vsub.f32 %v147_v62, %v5433_v20  ;;  %v955_v52 = vand.u32 4294901760, %v954_v28  ;;  %v5507_v57 = vsub.f32 %v144_v29, %v5480_v43 }
  0x4b   :  { %685 = vmatpush.msrb.mxu0 %v8213_v9  ;;  %764 = vmatpush.msrb.mxu1 %v5123_v27  ;;  %v8216_v27 = vand.u32 4294901760, %v5416_v22  ;;  %v989_v29 = vand.u32 4294901760, %v5494_v35 }
  0x4c   :  { %622 = vmatmul.f32.gmra.mxu3 %v8214_v4  ;;  %829 = vmatpush.msrb.mxu2 %v5393_v5  ;;  %v328_v4 = vand.u32 4294901760, %v5453_v44  ;;  %v8123_v62 = vand.u32 4294901760, %v5463_v45  ;;  %v5496_v5 = vand.u32 4294901760, %v143_v11 }
  0x4d   :  { %545 = vmatmul.f32.gmra.mxu2 %v5339_v54  ;;  %689 = vmatpush.msrb.mxu0 %v8215_v42  ;;  %v960_v9 = vsub.f32 %v5416_v22, %v8216_v27  ;;  %v5484_v54 = vand.u32 4294901760, %v113_v24  ;;  %v8217_v42 = vand.u32 4294901760, %v5185_v59  ;;  %v8218_v27 = vand.u32 4294901760, %v5431_v60 }
  0x4e   :  { %766 = vmatpush.msrb.mxu1 %v5150_v40  ;;  %944 = vmatpush.msrb.mxu3 %v943_v21  ;;  %v8219_v40 = vand.u32 4294901760, %v5197_v1  ;;  %v8220_v21 = vand.u32 4294901760, %v5444_v23 }
  0x4f   :  { %693 = vmatpush.msrb.mxu0 %v8217_v42  ;;  %831 = vmatpush.msrb.mxu2 %v5406_v16  ;;  %v966_v19 = vsub.f32 %v5431_v60, %v8218_v27  ;;  %v961_v59 = vand.u32 4294901760, %v960_v9  ;;  %v983_v42 = vand.u32 4294901760, %v5478_v17  ;;  %v5512_v1 = vsub.f32 %v113_v24, %v5484_v54 }
  0x50   :  { %768 = vmatpush.msrb.mxu1 %v5161_v46  ;;  %950 = vmatpush.msrb.mxu3 %v949_v8  ;;  %v972_v28 = vsub.f32 %v5444_v23, %v8220_v21  ;;  %v329_v46 = vsub.f32 %v5453_v44, %v328_v4  ;;  %v120_v8 = vld [vmem:[#allocation3 + $0x188] sm:$0xff]  ;;  %v978_v27 = vsub.f32 %v5463_v45, %v8123_v62  ;;  %v8222_v24 = vand.u32 4294901760, %v5211_v18 }
  0x51   :  { %697 = vmatpush.msrb.mxu0 %v8219_v40  ;;  %833 = vmatpush.msrb.mxu2 %v5418_v32  ;;  %v967_v9 = vand.u32 4294901760, %v966_v19  ;;  %v8221_v40 = vand.u32 4294901760, %v5390_v41  ;;  %v995_v19 = vand.u32 4294901760, %v5507_v57  ;;  %v5532_v62 = vand.u32 4294901760, %v120_v8 }
  0x52   :  { %323 = vmatmul.f32.gmra.mxu0 %v322_v39  ;;  %460 = vmatmul.f32.gmra.mxu1 %v5310_v7  ;;  %v5520_v39 = vsub.f32 %v143_v11, %v5496_v5  ;;  %v330_v21 = vand.u32 4294901760, %v329_v46  ;;  %v336_v11 = vand.u32 4294901760, %v5512_v1  ;;  %v8223_v18 = vand.u32 4294901760, %v5226_v38 }
  0x53   :  { %770 = vmatpush.msrb.mxu1 %v5170_v51  ;;  %956 = vmatpush.msrb.mxu3 %v955_v52  ;;  %v973_v51 = vand.u32 4294901760, %v972_v28  ;;  %v984_v52 = vsub.f32 %v5478_v17, %v983_v42  ;;  %v8224_v46 = vand.u32 4294901760, %v5239_v49  ;;  %v996_v38 = vsub.f32 %v5507_v57, %v995_v19 }
  0x54   :  { %628 = vmatmul.f32.gmra.mxu3 %v8221_v40  ;;  %701 = vmatpush.msrb.mxu0 %v8222_v24  ;;  %v1001_v28 = vand.u32 4294901760, %v5520_v39 }
  0x55   :  { %550 = vmatmul.f32.gmra.mxu2 %v5390_v41  ;;  %962 = vmatpush.msrb.mxu3 %v961_v59  ;;  %v979_v41 = vand.u32 4294901760, %v978_v27  ;;  %v990_v59 = vsub.f32 %v5494_v35, %v989_v29  ;;  %v343_v27 = vsub.f32 %v120_v8, %v5532_v62  ;;  %v997_v24 = vand.u32 4294901760, %v996_v38 }
  0x56   :  { %772 = vmatpush.msrb.mxu1 %v5182_v58  ;;  %705 = vmatpush.msrb.mxu0 %v8223_v18  ;;  %v985_v58 = vand.u32 4294901760, %v984_v52  ;;  %v1002_v40 = vsub.f32 %v5520_v39, %v1001_v28  ;;  %v8226_v18 = vand.u32 4294901760, %v5291_v2 }
  0x57   :  { %968 = vmatpush.msrb.mxu3 %v967_v9  ;;  %835 = vmatpush.msrb.mxu2 %v5433_v20  ;;  %v337_v9 = vsub.f32 %v5512_v1, %v336_v11  ;;  %v991_v49 = vand.u32 4294901760, %v990_v59  ;;  %v344_v52 = vand.u32 4294901760, %v343_v27  ;;  %v8229_v59 = vand.u32 4294901760, %v5336_v14 }
  0x58   :  { %774 = vmatpush.msrb.mxu1 %v5193_v63  ;;  %709 = vmatpush.msrb.mxu0 %v8224_v46  ;;  %v8225_v63 = vand.u32 4294901760, %v5244_v50  ;;  %v72_v50 = vld [vmem:[#allocation3 + $0x8] sm:$0xff]  ;;  %v1003_v8 = vand.u32 4294901760, %v1002_v40  ;;  %v8234_v40 = vand.u32 4294901760, %v5401_v25 }
  0x59   :  { %974 = vmatpush.msrb.mxu3 %v973_v51  ;;  %837 = vmatpush.msrb.mxu2 %v5446_v37  ;;  %v338_v51 = vand.u32 4294901760, %v337_v9  ;;  %v93_v9 = vld [vmem:[#allocation3 + $0xb0] sm:$0xff] }
  0x5a   :  { %331 = vmatmul.f32.gmra.mxu0 %v330_v21  ;;  %464 = vmatmul.f32.gmra.mxu1 %v5366_v33  ;;  %v79_v21 = vld [vmem:[#allocation3 + $0x40] sm:$0xff] }
  0x5b   :  { %980 = vmatpush.msrb.mxu3 %v979_v41  ;;  %713 = vmatpush.msrb.mxu0 %v8225_v63  ;;  %v5584_v41 = vand.u32 4294901760, %v79_v21 }
  0x5c   :  { %634 = vmatmul.f32.gmra.mxu3 %v328_v4  ;;  %839 = vmatpush.msrb.mxu2 %v5465_v10  ;;  %v5564_v4 = vand.u32 4294901760, %v72_v50 }
  0x5d   :  { %555 = vmatmul.f32.gmra.mxu2 %v5453_v44  ;;  %986 = vmatpush.msrb.mxu3 %v985_v58 }
  0x5e   :  { %776 = vmatpush.msrb.mxu1 %v5207_v12  ;;  %841 = vmatpush.msrb.mxu2 %v5480_v43  ;;  %v345_v12 = vsub.f32 %v343_v27, %v344_v52  ;;  %v5572_v44 = vsub.f32 %v72_v50, %v5564_v4  ;;  %v107_v50 = vld [vmem:[#allocation3 + $0x120] sm:$0xff] }
  0x5f   :  { %992 = vmatpush.msrb.mxu3 %v991_v49  ;;  %1040 = vmatpush.msra.mxu0 %v5291_v2  ;;  %v8228_v2 = vand.u32 4294901760, %v5320_v34  ;;  %v5635_v49 = vand.u32 4294901760, %v93_v9 }
  0x60   :  { %843 = vmatpush.msrb.mxu2 %v5496_v5  ;;  %778 = vmatpush.msrb.mxu1 %v5218_v31  ;;  %v346_v31 = vand.u32 4294901760, %v345_v12 }
  0x61   :  { %998 = vmatpush.msrb.mxu3 %v997_v24  ;;  %1043 = vmatpush.msra.mxu0 %v5305_v47 }
  0x62   :  { %1128 = vmatpush.msra.mxu1 %v5280_v55  ;;  %339 = vmatmul.f32.gmra.mxu0 %v338_v51 }
  0x63   :  { %468 = vmatmul.f32.gmra.mxu1 %v5422_v3  ;;  %1004 = vmatpush.msrb.mxu3 %v1003_v8  ;;  %v5689_v8 = vand.u32 4294901760, %v107_v50 }
  0x64   :  { %640 = vmatmul.f32.gmra.mxu3 %v336_v11  ;;  %1130 = vmatpush.msra.mxu1 %v5288_v13  ;;  %v846_v11 = vand.u32 4294901760, %v5572_v44 }
  0x65   :  { %560 = vmatmul.f32.gmra.mxu2 %v5512_v1  ;;  %1046 = vmatpush.msra.mxu0 %v5320_v34  ;;  %v8227_v1 = vand.u32 4294901760, %v5305_v47  ;;  %v5597_v47 = vsub.f32 %v79_v21, %v5584_v41  ;;  %v8230_v34 = vand.u32 4294901760, %v5345_v30  ;;  %v173_v21 = vld [vmem:[#allocation6 + $0x170] sm:$0xff] }
  0x66   :  { %1132 = vmatpush.msra.mxu1 %v5302_v48  ;;  %1211 = vmatpush.msra.mxu2 %v8226_v18 }
  0x67   :  { %1049 = vmatpush.msra.mxu0 %v5336_v14  ;;  %1306 = vmatpush.msra.mxu3 %v5280_v55  ;;  %v847_v55 = vsub.f32 %v5572_v44, %v846_v11  ;;  %v854_v58 = vand.u32 4294901760, %v5597_v47  ;;  %v8232_v14 = vand.u32 4294901760, %v5374_v0 }
  0x68   :  { %1134 = vmatpush.msra.mxu1 %v5317_v56  ;;  %1215 = vmatpush.msra.mxu2 %v8227_v1  ;;  %v5740_v1 = vand.u32 4294901760, %v173_v21 }
  0x69   :  { %1052 = vmatpush.msra.mxu0 %v5345_v30  ;;  %1308 = vmatpush.msra.mxu3 %v5288_v13  ;;  %v86_v13 = vld [vmem:[#allocation3 + $0x78] sm:$0xff]  ;;  %v848_v46 = vand.u32 4294901760, %v847_v55  ;;  %v855_v30 = vsub.f32 %v5597_v47, %v854_v58 }
  0x6a   :  { %347 = vmatmul.f32.gmra.mxu0 %v346_v31  ;;  %1136 = vmatpush.msra.mxu1 %v5330_v26  ;;  %v5609_v38 = vand.u32 4294901760, %v86_v13  ;;  %v5748_v55 = vsub.f32 %v173_v21, %v5740_v1 }
  0x6b   :  { %472 = vmatmul.f32.gmra.mxu1 %v5484_v54  ;;  %1055 = vmatpush.msra.mxu0 %v5374_v0  ;;  %v8233_v0 = vand.u32 4294901760, %v5386_v15 }
  0x6c   :  { %646 = vmatmul.f32.gmra.mxu3 %v344_v52  ;;  %1219 = vmatpush.msra.mxu2 %v8228_v2 }
  0x6d   :  { %565 = vmatmul.f32.gmra.mxu2 %v343_v27  ;;  %1138 = vmatpush.msra.mxu1 %v5352_v36  ;;  %v856_v27 = vand.u32 4294901760, %v855_v30 }
  0x6e   :  { %1058 = vmatpush.msra.mxu0 %v5386_v15  ;;  %1223 = vmatpush.msra.mxu2 %v8229_v59  ;;  %v172_v59 = vld [vmem:[#allocation6 + $0x168] sm:$0xff] }
  0x6f   :  { %1140 = vmatpush.msra.mxu1 %v5361_v61  ;;  %1310 = vmatpush.msra.mxu3 %v5302_v48  ;;  %v8231_v48 = vld [vmem:[#allocation18_spill] sm:$0xff] }
  0x70   :  { %1061 = vmatpush.msra.mxu0 %v5401_v25  ;;  %1227 = vmatpush.msra.mxu2 %v8230_v34  ;;  %v5651_v25 = vsub.f32 %v93_v9, %v5635_v49 }
  0x71   :  { %1142 = vmatpush.msra.mxu1 %v5376_v53  ;;  %1312 = vmatpush.msra.mxu3 %v5317_v56  ;;  %v5624_v56 = vsub.f32 %v86_v13, %v5609_v38 }
  0x72   :  { %715 = vmatmul.f32.vlgmr.msrb.gmra.mxu0 %v5199_v6  ;;  %1231 = vmatpush.msra.mxu2 %v8232_v14  ;;  %v870_v51 = vand.u32 4294901760, %v5651_v25  ;;  %v5753_v14 = vand.u32 4294901760, %v172_v59 }
  0x73   :  { %476 = vmatmul.f32.gmra.mxu1 %v5532_v62  ;;  %1064 = vmatpush.msra.mxu0 %v5416_v22  ;;  %v862_v63 = vand.u32 4294901760, %v5624_v56 }
  0x74   :  { %1144 = vmatpush.msra.mxu1 %v8231_v48  ;;  %1006 = vmatmul.f32.vlgmr.msrb.gmra.mxu3 %v5564_v4  ;;  %v5763_v9 = vsub.f32 %v172_v59, %v5753_v14 }
  0x75   :  { %849 = vmatmul.f32.vlgmr.msrb.gmra.mxu2 %v848_v46  ;;  %1067 = vmatpush.msra.mxu0 %v5431_v60  ;;  %v863_v15 = vsub.f32 %v5624_v56, %v862_v63 }
  0x76   :  { %1146 = vmatpush.msra.mxu1 %v5406_v16  ;;  %1314 = vmatpush.msra.mxu3 %v5330_v26  ;;  %v8235_v26 = vld [vmem:[#allocation16_spill] sm:$0xff] }
  0x77   :  { %1070 = vmatpush.msra.mxu0 %v5444_v23  ;;  %1235 = vmatpush.msra.mxu2 %v8233_v0  ;;  %v864_v24 = vand.u32 4294901760, %v863_v15  ;;  %v171_v0 = vld [vmem:[#allocation6 + $0x160] sm:$0xff] }
  0x78   :  { %1148 = vmatpush.msra.mxu1 %v5418_v32  ;;  %1316 = vmatpush.msra.mxu3 %v5352_v36  ;;  %v8236_v36 = vand.u32 4294901760, %v5416_v22  ;;  %v8238_v22 = vand.u32 4294901760, %v5444_v23 }
  0x79   :  { %1073 = vmatpush.msra.mxu0 %v5463_v45  ;;  %1239 = vmatpush.msra.mxu2 %v8234_v40 }
  0x7a   :  { %719 = vmatmul.f32.gmra.mxu0 %v8235_v26  ;;  %1318 = vmatpush.msra.mxu3 %v5361_v61  ;;  %v8237_v61 = vand.u32 4294901760, %v5431_v60  ;;  %v8240_v60 = vand.u32 4294901760, %v5463_v45 }
  0x7b   :  { %780 = vmatmul.f32.vlgmr.msrb.gmra.mxu1 %v5199_v6  ;;  %1243 = vmatpush.msra.mxu2 %v8236_v36  ;;  %v100_v6 = vld [vmem:[#allocation3 + $0xe8] sm:$0xff] }
  0x7c   :  { %1150 = vmatpush.msra.mxu1 %v5433_v20  ;;  %1010 = vmatmul.f32.gmra.mxu3 %v5584_v41  ;;  %v5663_v52 = vand.u32 4294901760, %v100_v6 }
  0x7d   :  { %857 = vmatmul.f32.gmra.mxu2 %v856_v27  ;;  %1320 = vmatpush.msra.mxu3 %v5376_v53  ;;  %v8239_v53 = vld [vmem:[#allocation17_spill] sm:$0xff] }
  0x7e   :  { %1076 = vmatpush.msra.mxu0 %v5478_v17  ;;  %1247 = vmatpush.msra.mxu2 %v8237_v61  ;;  %v5678_v23 = vsub.f32 %v100_v6, %v5663_v52  ;;  %v170_v6 = vld [vmem:[#allocation6 + $0x158] sm:$0xff] }
  0x7f   :  { %1322 = vmatpush.msra.mxu3 %v8231_v48  ;;  %1152 = vmatpush.msra.mxu1 %v5446_v37  ;;  %v1475_v48 = vand.u32 4294901760, %v5748_v55 }
  0x80   :  { %1251 = vmatpush.msra.mxu2 %v8238_v22  ;;  %1079 = vmatpush.msra.mxu0 %v5494_v35 }
  0x81   :  { %1324 = vmatpush.msra.mxu3 %v5406_v16  ;;  %1154 = vmatpush.msra.mxu1 %v5465_v10  ;;  %v871_v16 = vsub.f32 %v5651_v25, %v870_v51  ;;  %v1476_v30 = vsub.f32 %v5748_v55, %v1475_v48 }
  0x82   :  { %723 = vmatmul.f32.gmra.mxu0 %v8239_v53  ;;  %1255 = vmatpush.msra.mxu2 %v8240_v60 }
  0x83   :  { %784 = vmatmul.f32.gmra.mxu1 %v8235_v26  ;;  %1326 = vmatpush.msra.mxu3 %v5418_v32  ;;  %v872_v45 = vand.u32 4294901760, %v871_v16  ;;  %v878_v32 = vand.u32 4294901760, %v5678_v23  ;;  %v1477_v40 = vand.u32 4294901760, %v1476_v30  ;;  %v5770_v26 = vand.u32 4294901760, %v171_v0 }
  0x84   :  { %1014 = vmatmul.f32.gmra.mxu3 %v5609_v38  ;;  %1082 = vmatpush.msra.mxu0 %v5507_v57  ;;  %v121_v57 = vld [vmem:[#allocation3 + $0x190] sm:$0xff] }
  0x85   :  { %865 = vmatmul.f32.gmra.mxu2 %v864_v24  ;;  %1328 = vmatpush.msra.mxu3 %v5433_v20  ;;  %v114_v20 = vld [vmem:[#allocation3 + $0x158] sm:$0xff]  ;;  %v5779_v15 = vsub.f32 %v171_v0, %v5770_v26 }
  0x86   :  { %1259 = vmatpush.msra.mxu2 %v983_v42  ;;  %1085 = vmatpush.msra.mxu0 %v5520_v39  ;;  %v5708_v17 = vand.u32 4294901760, %v114_v20  ;;  %v174_v39 = vld [vmem:[#allocation6 + $0x178] sm:$0xff] }
  0x87   :  { %1330 = vmatpush.msra.mxu3 %v5446_v37  ;;  %1156 = vmatpush.msra.mxu1 %v5480_v43  ;;  %v879_v37 = vsub.f32 %v5678_v23, %v878_v32  ;;  %v5723_v12 = vand.u32 4294901760, %v174_v39  ;;  %v1487_v24 = vand.u32 4294901760, %v5779_v15 }
  0x88   :  { %1263 = vmatpush.msra.mxu2 %v989_v29  ;;  %v5715_v42 = vsub.f32 %v114_v20, %v5708_v17 }
  0x89   :  { %1332 = vmatpush.msra.mxu3 %v5465_v10  ;;  %1158 = vmatpush.msra.mxu1 %v5496_v5  ;;  %v5703_v10 = vsub.f32 %v107_v50, %v5689_v8  ;;  %v880_v35 = vand.u32 4294901760, %v879_v37  ;;  %v1488_v60 = vsub.f32 %v5779_v15, %v1487_v24  ;;  %v169_v50 = vld [vmem:[#allocation6 + $0x150] sm:$0xff] }
  0x8a   :  { %727 = vmatmul.f32.gmra.mxu0 %v5310_v7  ;;  %1267 = vmatpush.msra.mxu2 %v995_v19  ;;  %v8126_v29 = vand.u32 4294901760, %v5715_v42  ;;  %v5797_v20 = vand.u32 4294901760, %v169_v50 }
  0x8b   :  { %788 = vmatmul.f32.gmra.mxu1 %v8239_v53  ;;  %1334 = vmatpush.msra.mxu3 %v5480_v43  ;;  %v8132_v43 = vand.u32 4294901760, %v5703_v10  ;;  %v5783_v53 = vand.u32 4294901760, %v170_v6 }
  0x8c   :  { %1018 = vmatmul.f32.gmra.mxu3 %v5635_v49  ;;  %1271 = vmatpush.msra.mxu2 %v1001_v28  ;;  %v5721_v28 = vand.u32 4294901760, %v121_v57  ;;  %v895_v31 = vsub.f32 %v5715_v42, %v8126_v29 }
  0x8d   :  { %873 = vmatmul.f32.gmra.mxu2 %v872_v45  ;;  %1336 = vmatpush.msra.mxu3 %v5496_v5  ;;  %v887_v5 = vsub.f32 %v5703_v10, %v8132_v43  ;;  %v5793_v16 = vsub.f32 %v170_v6, %v5783_v53  ;;  %v1489_v45 = vand.u32 4294901760, %v1488_v60  ;;  %v166_v60 = vld [vmem:[#allocation6 + $0x138] sm:$0xff] }
  0x8e   :  { %1371 = vmatpush.msrb.mxu0 %v5723_v12  ;;  %v5737_v18 = vsub.f32 %v121_v57, %v5721_v28  ;;  %v896_v13 = vand.u32 4294901760, %v895_v31  ;;  %v5811_v57 = vld [vmem:[%s8089_s2] ss:$0 sm:$0xff] }
  0x8f   :  { %v888_v19 = vand.u32 4294901760, %v887_v5  ;;  %1686 = vmatpush.msrb.mxu3 %v5723_v12  ;;  %v8135_v37 = vand.u32 4294901760, %v5793_v16  ;;  %v5806_v5 = vsub.f32 %v169_v50, %v5797_v20 }
  0x90   :  { %1373 = vmatpush.msrb.mxu0 %v5740_v1  ;;  %v8124_v34 = vand.u32 4294901760, %v5737_v18 }
  0x91   :  { %1688 = vmatpush.msrb.mxu3 %v5740_v1  ;;  %v8134_v31 = vand.u32 4294901760, %v5806_v5 }
  0x92   :  { %731 = vmatmul.f32.gmra.mxu0 %v5366_v33  ;;  %v903_v27 = vsub.f32 %v5737_v18, %v8124_v34  ;;  %v162_v34 = vld [vmem:[#allocation6 + $0x118] sm:$0xff] }
  0x93   :  { %792 = vmatmul.f32.gmra.mxu1 %v5310_v7  ;;  %v5729_v7 = vsub.f32 %v174_v39, %v5723_v12  ;;  %1375 = vmatpush.msrb.mxu0 %v5753_v14  ;;  %v168_v39 = vld [vmem:[#allocation6 + $0x148] sm:$0xff] }
  0x94   :  { %1022 = vmatmul.f32.gmra.mxu3 %v5663_v52  ;;  %v904_v61 = vand.u32 4294901760, %v903_v27  ;;  %v5815_v21 = vand.u32 4294901760, %v168_v39 }
  0x95   :  { %881 = vmatmul.f32.gmra.mxu2 %v880_v35  ;;  %1690 = vmatpush.msrb.mxu3 %v5753_v14  ;;  %v1494_v35 = vsub.f32 %v5793_v16, %v8135_v37 }
  0x96   :  { %1598 = vmatpush.msrb.mxu2 %v5729_v7  ;;  %1377 = vmatpush.msrb.mxu0 %v5770_v26 }
  0x97   :  { %1692 = vmatpush.msrb.mxu3 %v5770_v26 }
  0x98   :  { %1601 = vmatpush.msrb.mxu2 %v5748_v55  ;;  %1379 = vmatpush.msrb.mxu0 %v5783_v53 }
  0x99   :  { %1694 = vmatpush.msrb.mxu3 %v5783_v53 }
  0x9a   :  { %735 = vmatmul.f32.gmra.mxu0 %v5422_v3  ;;  %1604 = vmatpush.msrb.mxu2 %v5763_v9 }
  0x9b   :  { %796 = vmatmul.f32.gmra.mxu1 %v5366_v33  ;;  %v1469_v33 = vand.u32 4294901760, %v5729_v7  ;;  %1381 = vmatpush.msrb.mxu0 %v5797_v20 }
  0x9c   :  { %1026 = vmatmul.f32.gmra.mxu3 %v5689_v8  ;;  %1607 = vmatpush.msrb.mxu2 %v5779_v15 }
  0x9d   :  { %889 = vmatmul.f32.gmra.mxu2 %v888_v19  ;;  %v1470_v2 = vsub.f32 %v5729_v7, %v1469_v33  ;;  %1696 = vmatpush.msrb.mxu3 %v5797_v20  ;;  %v1495_v19 = vand.u32 4294901760, %v1494_v35 }
  0x9e   :  { %1610 = vmatpush.msrb.mxu2 %v5793_v16  ;;  %1383 = vmatpush.msrb.mxu0 %v5815_v21 }
  0x9f   :  { %v1471_v46 = vand.u32 4294901760, %v1470_v2  ;;  %v1500_v2 = vsub.f32 %v5806_v5, %v8134_v31  ;;  %1698 = vmatpush.msrb.mxu3 %v5815_v21 }
  0xa0   :  { %1613 = vmatpush.msrb.mxu2 %v5806_v5 }
  0xa1   :  { %1472 = vmatpush.msrb.mxu1 %v1471_v46  ;;  %v167_v46 = vld [vmem:[#allocation6 + $0x140] sm:$0xff] }
  0xa2   :  { %739 = vmatmul.f32.gmra.mxu0 %v5484_v54  ;;  %v5831_v0 = vand.u32 4294901760, %v167_v46 }
  0xa3   :  { %800 = vmatmul.f32.gmra.mxu1 %v5422_v3  ;;  %v1481_v3 = vand.u32 4294901760, %v5763_v9 }
  0xa4   :  { %1030 = vmatmul.f32.gmra.mxu3 %v5708_v17  ;;  %1478 = vmatpush.msrb.mxu1 %v1477_v40 }
  0xa5   :  { %897 = vmatmul.f32.gmra.mxu2 %v896_v13  ;;  %v1482_v36 = vsub.f32 %v5763_v9, %v1481_v3  ;;  %v5825_v13 = vsub.f32 %v168_v39, %v5815_v21  ;;  %1385 = vmatpush.msrb.mxu0 %v5831_v0 }
  0xa6   :  { %1700 = vmatpush.msrb.mxu3 %v5831_v0 }
  0xa7   :  { %v1483_v22 = vand.u32 4294901760, %v1482_v36  ;;  %v8131_v30 = vand.u32 4294901760, %v5825_v13  ;;  %1616 = vmatpush.msrb.mxu2 %v5825_v13 }
  0xa9   :  { %1484 = vmatpush.msrb.mxu1 %v1483_v22  ;;  %v1506_v36 = vsub.f32 %v5825_v13, %v8131_v30 }
  0xaa   :  { %743 = vmatmul.f32.gmra.mxu0 %v5532_v62 }
  0xab   :  { %804 = vmatmul.f32.gmra.mxu1 %v5484_v54  ;;  %v1507_v50 = vand.u32 4294901760, %v1506_v36 }
  0xac   :  { %1034 = vmatmul.f32.gmra.mxu3 %v5721_v28  ;;  %1490 = vmatpush.msrb.mxu1 %v1489_v45 }
  0xad   :  { %905 = vmatmul.f32.gmra.mxu2 %v904_v61 }
  0xae   :  { %1496 = vmatpush.msrb.mxu1 %v1495_v19 }
  0xaf   :  { %v292_v54 = vpop.f32.mrf.mxu0 }
  0xb0   :  { %v293_v59 = vadd.f32 %v5811_v57, %v292_v54  ;;  %v5844_v54 = vand.u32 4294901760, %v166_v60 }
  0xb2   :  { %1088 = vmatmul.f32.vlgmr.msra.gmra.mxu0 %v5572_v44  ;;  %v5855_v19 = vsub.f32 %v166_v60, %v5844_v54  ;;  %1702 = vmatpush.msrb.mxu3 %v5844_v54  ;;  %v164_v60 = vld [vmem:[#allocation6 + $0x128] sm:$0xff] }
  0xb3   :  { %808 = vmatmul.f32.gmra.mxu1 %v5532_v62  ;;  %v1501_v62 = vand.u32 4294901760, %v1500_v2  ;;  %1387 = vmatpush.msrb.mxu0 %v5844_v54 }
  0xb4   :  { %1338 = vmatmul.f32.vlgmr.msra.gmra.mxu3 %v5564_v4 }
  0xb5   :  { %1273 = vmatmul.f32.vlgmr.msra.gmra.mxu2 %v5564_v4  ;;  %1502 = vmatpush.msrb.mxu1 %v1501_v62  ;;  %v5840_v4 = vsub.f32 %v167_v46, %v5831_v0  ;;  %v165_v46 = vld [vmem:[#allocation6 + $0x130] sm:$0xff] }
  0xb6   :  { %v5863_v62 = vand.u32 4294901760, %v165_v46 }
  0xb7   :  { %v300_v27 = vpop.f32.mrf.mxu0  ;;  %v449_v40 = vpop.f32.mrf.mxu1  ;;  %v8130_v45 = vand.u32 4294901760, %v5840_v4  ;;  %1619 = vmatpush.msrb.mxu2 %v5840_v4  ;;  %1508 = vmatpush.msrb.mxu1 %v1507_v50 }
  0xb8   :  { %v450_v6 = vadd.f32 %v449_v40, %v293_v59  ;;  %v531_v61 = vpop.f32.mrf.mxu2  ;;  %v605_v22 = vpop.f32.mrf.mxu3  ;;  %v301_v2 = vadd.f32 %v5811_v57, %v300_v27  ;;  %1389 = vmatpush.msrb.mxu0 %v5863_v62  ;;  %1704 = vmatpush.msrb.mxu3 %v5863_v62 }
  0xb9   :  { %v1512_v39 = vsub.f32 %v5840_v4, %v8130_v45  ;;  %1622 = vmatpush.msrb.mxu2 %v5855_v19 }
  0xba   :  { %v532_v35 = vadd.f32 %v531_v61, %v450_v6  ;;  %1093 = vmatmul.f32.gmra.mxu0 %v5597_v47 }
  0xbb   :  { %1162 = vmatmul.f32.vlgmr.msra.gmra.mxu1 %v846_v11  ;;  %v1513_v44 = vand.u32 4294901760, %v1512_v39  ;;  %v8127_v11 = vand.u32 4294901760, %v5855_v19  ;;  %v5876_v39 = vand.u32 4294901760, %v164_v60 }
  0xbc   :  { %v5858_v59 = vadd.f32 %v605_v22, %v532_v35  ;;  %1342 = vmatmul.f32.gmra.mxu3 %v5584_v41 }
  0xbd   :  { %1277 = vmatmul.f32.gmra.mxu2 %v5584_v41  ;;  %1514 = vmatpush.msrb.mxu1 %v1513_v44  ;;  %v1518_v27 = vsub.f32 %v5855_v19, %v8127_v11  ;;  %v5872_v41 = vsub.f32 %v165_v46, %v5863_v62  ;;  %v5887_v46 = vsub.f32 %v164_v60, %v5876_v39  ;;  %v5908_v11 = vand.u32 4294901760, %v162_v34 }
  0xbe   :  { %1391 = vmatpush.msrb.mxu0 %v5876_v39  ;;  %1706 = vmatpush.msrb.mxu3 %v5876_v39 }
  0xbf   :  { %v308_v40 = vpop.f32.mrf.mxu0  ;;  %v453_v36 = vpop.f32.mrf.mxu1  ;;  %v1519_v50 = vand.u32 4294901760, %v1518_v27  ;;  %v8125_v35 = vand.u32 4294901760, %v5872_v41  ;;  %1625 = vmatpush.msrb.mxu2 %v5872_v41 }
  0xc0   :  { %v454_v6 = vadd.f32 %v453_v36, %v301_v2  ;;  %v536_v61 = vpop.f32.mrf.mxu2  ;;  %v611_v22 = vpop.f32.mrf.mxu3  ;;  %v309_v36 = vadd.f32 %v5811_v57, %v308_v40 }
  0xc1   :  { %1520 = vmatpush.msrb.mxu1 %v1519_v50  ;;  %v1524_v2 = vsub.f32 %v5872_v41, %v8125_v35  ;;  %1628 = vmatpush.msrb.mxu2 %v5887_v46 }
  0xc2   :  { %v537_v44 = vadd.f32 %v536_v61, %v454_v6  ;;  %1098 = vmatmul.f32.gmra.mxu0 %v5624_v56  ;;  %v163_v6 = vld [vmem:[#allocation6 + $0x120] sm:$0xff]  ;;  %v160_v56 = vld [vmem:[#allocation6 + $0x108] sm:$0xff] }
  0xc3   :  { %1168 = vmatmul.f32.gmra.mxu1 %v854_v58  ;;  %v1525_v47 = vand.u32 4294901760, %v1524_v2  ;;  %v8129_v58 = vand.u32 4294901760, %v5887_v46  ;;  %v5895_v61 = vand.u32 4294901760, %v163_v6 }
  0xc4   :  { %v5890_v27 = vadd.f32 %v611_v22, %v537_v44  ;;  %1346 = vmatmul.f32.gmra.mxu3 %v5609_v38 }
  0xc5   :  { %1281 = vmatmul.f32.gmra.mxu2 %v5609_v38  ;;  %1526 = vmatpush.msrb.mxu1 %v1525_v47  ;;  %v1530_v40 = vsub.f32 %v5887_v46, %v8129_v58  ;;  %v5904_v38 = vsub.f32 %v163_v6, %v5895_v61  ;;  %v161_v6 = vld [vmem:[#allocation6 + $0x110] sm:$0xff] }
  0xc6   :  { %1393 = vmatpush.msrb.mxu0 %v5895_v61  ;;  %1708 = vmatpush.msrb.mxu3 %v5895_v61 }
  0xc7   :  { %v316_v60 = vpop.f32.mrf.mxu0  ;;  %v457_v50 = vpop.f32.mrf.mxu1  ;;  %v1531_v35 = vand.u32 4294901760, %v1530_v40  ;;  %v8128_v29 = vand.u32 4294901760, %v5904_v38  ;;  %1631 = vmatpush.msrb.mxu2 %v5904_v38  ;;  %v5921_v40 = vand.u32 4294901760, %v161_v6 }
  0xc8   :  { %v458_v22 = vadd.f32 %v457_v50, %v309_v36  ;;  %v541_v44 = vpop.f32.mrf.mxu2  ;;  %v617_v2 = vpop.f32.mrf.mxu3  ;;  %1395 = vmatpush.msrb.mxu0 %v5908_v11  ;;  %v5919_v50 = vsub.f32 %v162_v34, %v5908_v11  ;;  %v5933_v34 = vand.u32 4294901760, %v160_v56  ;;  %1710 = vmatpush.msrb.mxu3 %v5908_v11 }
  0xc9   :  { %1532 = vmatpush.msrb.mxu1 %v1531_v35  ;;  %v1536_v36 = vsub.f32 %v5904_v38, %v8128_v29  ;;  %v5931_v29 = vsub.f32 %v161_v6, %v5921_v40 }
  0xca   :  { %v542_v47 = vadd.f32 %v541_v44, %v458_v22  ;;  %1103 = vmatmul.f32.gmra.mxu0 %v5651_v25  ;;  %v317_v22 = vadd.f32 %v5811_v57, %v316_v60  ;;  %v8133_v35 = vand.u32 4294901760, %v5919_v50  ;;  %1634 = vmatpush.msrb.mxu2 %v5919_v50  ;;  %v159_v60 = vld [vmem:[#allocation6 + $0x100] sm:$0xff]  ;;  %v5945_v58 = vsub.f32 %v160_v56, %v5933_v34 }
  0xcb   :  { %1174 = vmatmul.f32.gmra.mxu1 %v862_v63  ;;  %v1537_v63 = vand.u32 4294901760, %v1536_v36  ;;  %1397 = vmatpush.msrb.mxu0 %v5921_v40  ;;  %v8136_v36 = vand.u32 4294901760, %v5931_v29  ;;  %v5942_v6 = vand.u32 4294901760, %v159_v60 }
  0xcc   :  { %v5924_v44 = vadd.f32 %v617_v2, %v542_v47  ;;  %1350 = vmatmul.f32.gmra.mxu3 %v5635_v49  ;;  %1637 = vmatpush.msrb.mxu2 %v5931_v29  ;;  %v1553_v31 = vand.u32 4294901760, %v5945_v58 }
  0xcd   :  { %1285 = vmatmul.f32.gmra.mxu2 %v5635_v49  ;;  %1538 = vmatpush.msrb.mxu1 %v1537_v63  ;;  %v1542_v49 = vsub.f32 %v5919_v50, %v8133_v35  ;;  %v1548_v35 = vsub.f32 %v5931_v29, %v8136_v36  ;;  %v5955_v37 = vsub.f32 %v159_v60, %v5942_v6 }
  0xce   :  { %1399 = vmatpush.msrb.mxu0 %v5933_v34  ;;  %1712 = vmatpush.msrb.mxu3 %v5921_v40 }
  0xcf   :  { %v324_v2 = vpop.f32.mrf.mxu0  ;;  %v461_v47 = vpop.f32.mrf.mxu1  ;;  %v1543_v63 = vand.u32 4294901760, %v1542_v49  ;;  %1640 = vmatpush.msrb.mxu2 %v5945_v58  ;;  %v1559_v49 = vand.u32 4294901760, %v5955_v37 }
  0xd0   :  { %v462_v45 = vadd.f32 %v461_v47, %v317_v22  ;;  %v546_v30 = vpop.f32.mrf.mxu2  ;;  %v623_v43 = vpop.f32.mrf.mxu3  ;;  %1401 = vmatpush.msrb.mxu0 %v5942_v6  ;;  %v1549_v22 = vand.u32 4294901760, %v1548_v35  ;;  %v1554_v47 = vsub.f32 %v5945_v58, %v1553_v31  ;;  %v325_v36 = vadd.f32 %v5811_v57, %v324_v2  ;;  %1714 = vmatpush.msrb.mxu3 %v5933_v34  ;;  %v73_v2 = vld [vmem:[#allocation3 + $0x10] sm:$0xff] }
  0xd1   :  { %1544 = vmatpush.msrb.mxu1 %v1543_v63  ;;  %1643 = vmatpush.msrb.mxu2 %v5955_v37  ;;  %v5994_v9 = vand.u32 4294901760, %v73_v2  ;;  %v80_v63 = vld [vmem:[#allocation3 + $0x48] sm:$0xff] }
  0xd2   :  { %v547_v56 = vadd.f32 %v546_v30, %v462_v45  ;;  %1108 = vmatmul.f32.gmra.mxu0 %v5678_v23  ;;  %v1555_v25 = vand.u32 4294901760, %v1554_v47  ;;  %1716 = vmatpush.msrb.mxu3 %v5942_v6  ;;  %v8241_v23 = vand.u32 4294901760, %v5793_v16 }
  0xd3   :  { %1180 = vmatmul.f32.gmra.mxu1 %v870_v51  ;;  %1769 = vmatpush.msra.mxu0 %v1469_v33  ;;  %v1560_v51 = vsub.f32 %v5955_v37, %v1559_v49  ;;  %v6006_v16 = vsub.f32 %v73_v2, %v5994_v9 }
  0xd4   :  { %v5966_v60 = vadd.f32 %v623_v43, %v547_v56  ;;  %1354 = vmatmul.f32.gmra.mxu3 %v5663_v52  ;;  %1550 = vmatpush.msrb.mxu1 %v1549_v22  ;;  %v8245_v22 = vand.u32 4294901760, %v5840_v4 }
  0xd5   :  { %1289 = vmatmul.f32.gmra.mxu2 %v5663_v52  ;;  %v1561_v45 = vand.u32 4294901760, %v1560_v51  ;;  %1773 = vmatpush.msra.mxu0 %v1475_v48 }
  0xd6   :  { %1556 = vmatpush.msrb.mxu1 %v1555_v25 }
  0xd7   :  { %v332_v30 = vpop.f32.mrf.mxu0  ;;  %v465_v43 = vpop.f32.mrf.mxu1  ;;  %1777 = vmatpush.msra.mxu0 %v1481_v3 }
  0xd8   :  { %v466_v7 = vadd.f32 %v465_v43, %v325_v36  ;;  %v551_v33 = vpop.f32.mrf.mxu2  ;;  %v629_v52 = vpop.f32.mrf.mxu3  ;;  %1562 = vmatpush.msrb.mxu1 %v1561_v45  ;;  %v333_v55 = vadd.f32 %v5811_v57, %v332_v30  ;;  %v8242_v36 = vand.u32 4294901760, %v5806_v5  ;;  %v8246_v30 = vand.u32 4294901760, %v5855_v19 }
  0xd9   :  { %1781 = vmatpush.msra.mxu0 %v1487_v24  ;;  %v8248_v45 = vand.u32 4294901760, %v5872_v41 }
  0xda   :  { %v552_v35 = vadd.f32 %v551_v33, %v466_v7  ;;  %1113 = vmatmul.f32.gmra.mxu0 %v5703_v10  ;;  %1864 = vmatpush.msra.mxu1 %v5723_v12 }
  0xdb   :  { %1186 = vmatmul.f32.gmra.mxu1 %v878_v32  ;;  %1785 = vmatpush.msra.mxu0 %v8241_v23  ;;  %v189_v23 = vld [vmem:[#allocation6 + $0x1f0] sm:$0xff] }
  0xdc   :  { %v5989_v48 = vadd.f32 %v629_v52, %v552_v35  ;;  %1358 = vmatmul.f32.gmra.mxu3 %v5689_v8  ;;  %1866 = vmatpush.msra.mxu1 %v5740_v1  ;;  %v8243_v1 = vand.u32 4294901760, %v5703_v10  ;;  %v1404_v10 = vand.u32 4294901760, %v6006_v16  ;;  %v190_v52 = vld [vmem:[#allocation6 + $0x1f8] sm:$0xff] }
  0xdd   :  { %1293 = vmatmul.f32.gmra.mxu2 %v5689_v8  ;;  %1789 = vmatpush.msra.mxu0 %v8242_v36 }
  0xde   :  { %1868 = vmatpush.msra.mxu1 %v5753_v14  ;;  %v8244_v14 = vand.u32 4294901760, %v5825_v13  ;;  %v1405_v4 = vsub.f32 %v6006_v16, %v1404_v10 }
  0xdf   :  { %v340_v32 = vpop.f32.mrf.mxu0 }
  0xe0   :  { %v469_v12 = vpop.f32.mrf.mxu1  ;;  %v556_v15 = vpop.f32.mrf.mxu2  ;;  %1870 = vmatpush.msra.mxu1 %v5770_v26  ;;  %1793 = vmatpush.msra.mxu0 %v8244_v14  ;;  %v341_v5 = vadd.f32 %v5811_v57, %v340_v32  ;;  %v6018_v26 = vand.u32 4294901760, %v80_v63 }
  0xe1   :  { %v470_v3 = vadd.f32 %v469_v12, %v333_v55  ;;  %v635_v24 = vpop.f32.mrf.mxu3 }
  0xe2   :  { %1118 = vmatmul.f32.gmra.mxu0 %v5715_v42  ;;  %1872 = vmatpush.msra.mxu1 %v5783_v53  ;;  %v6031_v43 = vsub.f32 %v80_v63, %v6018_v26  ;;  %v187_v63 = vld [vmem:[#allocation6 + $0x1e0] sm:$0xff] }
  0xe3   :  { %v557_v8 = vadd.f32 %v556_v15, %v470_v3  ;;  %1192 = vmatmul.f32.gmra.mxu1 %v8243_v1  ;;  %1797 = vmatpush.msra.mxu0 %v8245_v22  ;;  %v8251_v3 = vand.u32 4294901760, %v5737_v18  ;;  %v188_v15 = vld [vmem:[#allocation6 + $0x1e8] sm:$0xff]  ;;  %v6084_v22 = vand.u32 4294901760, %v187_v63 }
  0xe4   :  { %1362 = vmatmul.f32.gmra.mxu3 %v5708_v17  ;;  %1874 = vmatpush.msra.mxu1 %v5797_v20  ;;  %v8247_v20 = vand.u32 4294901760, %v5715_v42  ;;  %v1406_v42 = vand.u32 4294901760, %v1405_v4  ;;  %v1412_v7 = vand.u32 4294901760, %v6031_v43 }
  0xe5   :  { %v6012_v56 = vadd.f32 %v635_v24, %v557_v8  ;;  %1297 = vmatmul.f32.gmra.mxu2 %v5708_v17  ;;  %1801 = vmatpush.msra.mxu0 %v8246_v30  ;;  %v94_v24 = vld [vmem:[#allocation3 + $0xb8] sm:$0xff]  ;;  %v6069_v8 = vand.u32 4294901760, %v188_v15 }
  0xe6   :  { %1876 = vmatpush.msra.mxu1 %v5815_v21  ;;  %v87_v21 = vld [vmem:[#allocation3 + $0x80] sm:$0xff] }
  0xe7   :  { %v348_v53 = vpop.f32.mrf.mxu0  ;;  %1805 = vmatpush.msra.mxu0 %v8248_v45  ;;  %v6043_v33 = vand.u32 4294901760, %v87_v21  ;;  %v185_v45 = vld [vmem:[#allocation6 + $0x1d0] sm:$0xff] }
  0xe8   :  { %v473_v13 = vpop.f32.mrf.mxu1  ;;  %v561_v25 = vpop.f32.mrf.mxu2  ;;  %1878 = vmatpush.msra.mxu1 %v5831_v0  ;;  %v349_v19 = vadd.f32 %v5811_v57, %v348_v53  ;;  %v6047_v57 = vand.u32 4294901760, %v190_v52  ;;  %v6087_v53 = vsub.f32 %v188_v15, %v6069_v8  ;;  %v6113_v58 = vand.u32 4294901760, %v185_v45 }
  0xe9   :  { %v474_v47 = vadd.f32 %v473_v13, %v341_v5  ;;  %v641_v51 = vpop.f32.mrf.mxu3 }
  0xea   :  { %1123 = vmatmul.f32.gmra.mxu0 %v5737_v18  ;;  %1880 = vmatpush.msra.mxu1 %v5844_v54  ;;  %v8249_v54 = vand.u32 4294901760, %v5887_v46  ;;  %v6054_v32 = vsub.f32 %v190_v52, %v6047_v57  ;;  %v6056_v46 = vand.u32 4294901760, %v189_v23  ;;  %v8252_v18 = vand.u32 4294901760, %v5919_v50 }
  0xeb   :  { %v562_v17 = vadd.f32 %v561_v25, %v474_v47  ;;  %1198 = vmatmul.f32.gmra.mxu1 %v8247_v20  ;;  %1929 = vmatpush.msra.mxu2 %v6047_v57  ;;  %v8253_v50 = vand.u32 4294901760, %v5931_v29  ;;  %v186_v47 = vld [vmem:[#allocation6 + $0x1d8] sm:$0xff] }
  0xec   :  { %1366 = vmatmul.f32.gmra.mxu3 %v5721_v28  ;;  %1882 = vmatpush.msra.mxu1 %v5863_v62  ;;  %v8250_v62 = vand.u32 4294901760, %v5904_v38  ;;  %v6065_v38 = vsub.f32 %v87_v21, %v6043_v33  ;;  %v8148_v36 = vand.u32 4294901760, %v6054_v32 }
  0xed   :  { %v6037_v0 = vadd.f32 %v641_v51, %v562_v17  ;;  %1301 = vmatmul.f32.gmra.mxu2 %v5721_v28  ;;  %1809 = vmatpush.msra.mxu0 %v8249_v54  ;;  %v8144_v17 = vand.u32 4294901760, %v6087_v53 }
  0xee   :  { %1884 = vmatpush.msra.mxu1 %v5876_v39  ;;  %v1413_v39 = vsub.f32 %v6031_v43, %v1412_v7  ;;  %1931 = vmatpush.msra.mxu2 %v6056_v46  ;;  %v2028_v14 = vsub.f32 %v6054_v32, %v8148_v36 }
  0xef   :  { %v716_v35 = vpop.f32.mrf.mxu0  ;;  %1813 = vmatpush.msra.mxu0 %v8250_v62  ;;  %v2040_v52 = vsub.f32 %v6087_v53, %v8144_v17  ;;  %v115_v17 = vld [vmem:[#allocation3 + $0x160] sm:$0xff] }
  0xf0   :  { %v477_v41 = vpop.f32.mrf.mxu1  ;;  %v566_v55 = vpop.f32.mrf.mxu2  ;;  %1886 = vmatpush.msra.mxu1 %v5895_v61  ;;  %v6072_v61 = vsub.f32 %v189_v23, %v6056_v46  ;;  %v1414_v13 = vand.u32 4294901760, %v1413_v39  ;;  %1933 = vmatpush.msra.mxu2 %v6069_v8  ;;  %v2029_v30 = vand.u32 4294901760, %v2028_v14 }
  0xf1   :  { %v478_v2 = vadd.f32 %v477_v41, %v349_v19  ;;  %v647_v28 = vpop.f32.mrf.mxu3  ;;  %1817 = vmatpush.msra.mxu0 %v8252_v18  ;;  %v101_v19 = vld [vmem:[#allocation3 + $0xf0] sm:$0xff] }
  0xf2   :  { %1407 = vmatmul.f32.vlgmr.msrb.gmra.mxu0 %v1406_v42  ;;  %1888 = vmatpush.msra.mxu1 %v5908_v11  ;;  %v8146_v5 = vand.u32 4294901760, %v6072_v61  ;;  %v1420_v11 = vand.u32 4294901760, %v6065_v38  ;;  %v6139_v62 = vand.u32 4294901760, %v101_v19 }
  0xf3   :  { %v567_v12 = vadd.f32 %v566_v55, %v478_v2  ;;  %1204 = vmatmul.f32.gmra.mxu1 %v8251_v3  ;;  %1821 = vmatpush.msra.mxu0 %v8253_v50  ;;  %v184_v2 = vld [vmem:[#allocation6 + $0x1c8] sm:$0xff]  ;;  %v2041_v55 = vand.u32 4294901760, %v2040_v52  ;;  %v183_v3 = vld [vmem:[#allocation6 + $0x1c0] sm:$0xff] }
  0xf4   :  { %1720 = vmatmul.f32.vlgmr.msrb.gmra.mxu3 %v1404_v10  ;;  %v717_v10 = vadd.f32 %v716_v35, %v5858_v59  ;;  %1890 = vmatpush.msra.mxu1 %v5921_v40  ;;  %v2034_v29 = vsub.f32 %v6072_v61, %v8146_v5  ;;  %v6101_v59 = vand.u32 4294901760, %v186_v47  ;;  %v6107_v40 = vsub.f32 %v187_v63, %v6084_v22 }
  0xf5   :  { %v6076_v1 = vadd.f32 %v647_v28, %v567_v12  ;;  %1646 = vmatmul.f32.vlgmr.msrb.gmra.mxu2 %v6006_v16  ;;  %v6093_v16 = vand.u32 4294901760, %v94_v24  ;;  %1825 = vmatpush.msra.mxu0 %v1553_v31  ;;  %v6133_v28 = vsub.f32 %v185_v45, %v6113_v58 }
  0xf6   :  { %1935 = vmatpush.msra.mxu2 %v6084_v22  ;;  %1892 = vmatpush.msra.mxu1 %v5933_v34  ;;  %v2035_v42 = vand.u32 4294901760, %v2034_v29  ;;  %v6116_v31 = vsub.f32 %v186_v47, %v6101_v59  ;;  %v1421_v34 = vsub.f32 %v6065_v38, %v1420_v11  ;;  %v8143_v35 = vand.u32 4294901760, %v6107_v40 }
  0xf7   :  { %v720_v25 = vpop.f32.mrf.mxu0  ;;  %2030 = vmatpush.msra.mxu3 %v2029_v30  ;;  %1829 = vmatpush.msra.mxu0 %v1559_v49  ;;  %v6125_v41 = vsub.f32 %v94_v24, %v6093_v16  ;;  %v6130_v49 = vand.u32 4294901760, %v184_v2  ;;  %v8140_v15 = vand.u32 4294901760, %v6133_v28  ;;  %v6150_v24 = vand.u32 4294901760, %v183_v3 }
  0xf8   :  { %v781_v51 = vpop.f32.mrf.mxu1  ;;  %v850_v4 = vpop.f32.mrf.mxu2  ;;  %1937 = vmatpush.msra.mxu2 %v6101_v59  ;;  %v8142_v37 = vand.u32 4294901760, %v6116_v31  ;;  %v2046_v12 = vsub.f32 %v6107_v40, %v8143_v35  ;;  %1894 = vmatpush.msra.mxu1 %v5942_v6  ;;  %v721_v18 = vadd.f32 %v720_v25, %v5890_v27  ;;  %v1422_v63 = vand.u32 4294901760, %v1421_v34 }
  0xf9   :  { %v782_v20 = vadd.f32 %v781_v51, %v717_v10  ;;  %v1007_v21 = vpop.f32.mrf.mxu3  ;;  %2036 = vmatpush.msra.mxu3 %v2035_v42  ;;  %v1428_v14 = vand.u32 4294901760, %v6125_v41  ;;  %2156 = vmatpush.msrb.mxu0 %v6054_v32  ;;  %v2058_v47 = vsub.f32 %v6133_v28, %v8140_v15  ;;  %v6174_v42 = vsub.f32 %v183_v3, %v6150_v24 }
  0xfa   :  { %1415 = vmatmul.f32.gmra.mxu0 %v1414_v13  ;;  %v2052_v39 = vsub.f32 %v6116_v31, %v8142_v37  ;;  %v2047_v6 = vand.u32 4294901760, %v2046_v12  ;;  %1939 = vmatpush.msra.mxu2 %v6113_v58 }
  0xfb   :  { %v851_v54 = vadd.f32 %v850_v4, %v782_v20  ;;  %1564 = vmatmul.f32.vlgmr.msrb.gmra.mxu1 %v5994_v9  ;;  %2042 = vmatpush.msra.mxu3 %v2041_v55  ;;  %v6167_v20 = vsub.f32 %v101_v19, %v6139_v62  ;;  %v181_v4 = vld [vmem:[#allocation6 + $0x1b0] sm:$0xff]  ;;  %v108_v55 = vld [vmem:[#allocation3 + $0x128] sm:$0xff]  ;;  %v8137_v3 = vand.u32 4294901760, %v6174_v42 }
  0xfc   :  { %1726 = vmatmul.f32.gmra.mxu3 %v1412_v7  ;;  %v6153_v7 = vsub.f32 %v184_v2, %v6130_v49  ;;  %v2053_v13 = vand.u32 4294901760, %v2052_v39  ;;  %2244 = vmatpush.msrb.mxu1 %v6047_v57  ;;  %v6176_v52 = vand.u32 4294901760, %v181_v4  ;;  %v180_v2 = vld [vmem:[#allocation6 + $0x1a8] sm:$0xff] }
  0xfd   :  { %v6135_v23 = vadd.f32 %v1007_v21, %v851_v54  ;;  %1651 = vmatmul.f32.gmra.mxu2 %v6031_v43  ;;  %v182_v43 = vld [vmem:[#allocation6 + $0x1b8] sm:$0xff]  ;;  %2048 = vmatpush.msra.mxu3 %v2047_v6  ;;  %v2059_v21 = vand.u32 4294901760, %v2058_v47  ;;  %v1429_v54 = vsub.f32 %v6125_v41, %v1428_v14  ;;  %v6189_v39 = vand.u32 4294901760, %v180_v2 }
  0xfe   :  { %v8138_v51 = vand.u32 4294901760, %v6153_v7  ;;  %v6163_v30 = vand.u32 4294901760, %v182_v43  ;;  %1941 = vmatpush.msra.mxu2 %v6130_v49  ;;  %2159 = vmatpush.msrb.mxu0 %v6072_v61  ;;  %v8149_v6 = vand.u32 4294901760, %v6167_v20 }
  0xff   :  { %v724_v50 = vpop.f32.mrf.mxu0  ;;  %2246 = vmatpush.msrb.mxu1 %v6056_v46  ;;  %2054 = vmatpush.msra.mxu3 %v2053_v13  ;;  %v2070_v13 = vsub.f32 %v6174_v42, %v8137_v3 }
 0x100   :  { %v785_v10 = vpop.f32.mrf.mxu1  ;;  %v858_v25 = vpop.f32.mrf.mxu2  ;;  %v2064_v45 = vsub.f32 %v6153_v7, %v8138_v51  ;;  %v6185_v34 = vsub.f32 %v182_v43, %v6163_v30  ;;  %1943 = vmatpush.msra.mxu2 %v6150_v24  ;;  %2162 = vmatpush.msrb.mxu0 %v6087_v53  ;;  %v1437_v15 = vsub.f32 %v6167_v20, %v8149_v6 }
 0x101   :  { %v786_v27 = vadd.f32 %v785_v10, %v721_v18  ;;  %v1011_v29 = vpop.f32.mrf.mxu3  ;;  %v6192_v18 = vsub.f32 %v181_v4, %v6176_v52  ;;  %v179_v10 = vld [vmem:[#allocation6 + $0x1a0] sm:$0xff]  ;;  %2060 = vmatpush.msra.mxu3 %v2059_v21  ;;  %v6212_v4 = vand.u32 4294901760, %v108_v55  ;;  %v178_v21 = vld [vmem:[#allocation6 + $0x198] sm:$0xff]  ;;  %2248 = vmatpush.msrb.mxu1 %v6069_v8  ;;  %v2071_v3 = vand.u32 4294901760, %v2070_v13  ;;  %v177_v13 = vld [vmem:[#allocation6 + $0x190] sm:$0xff] }
 0x102   :  { %1423 = vmatmul.f32.gmra.mxu0 %v1422_v63  ;;  %v2065_v12 = vand.u32 4294901760, %v2064_v45  ;;  %v8139_v43 = vand.u32 4294901760, %v6185_v34  ;;  %1945 = vmatpush.msra.mxu2 %v6163_v30 }
 0x103   :  { %v859_v19 = vadd.f32 %v858_v25, %v786_v27  ;;  %1568 = vmatmul.f32.gmra.mxu1 %v6018_v26  ;;  %v8141_v47 = vand.u32 4294901760, %v6192_v18  ;;  %v6206_v27 = vand.u32 4294901760, %v179_v10  ;;  %v725_v25 = vadd.f32 %v724_v50, %v5924_v44  ;;  %2165 = vmatpush.msrb.mxu0 %v6107_v40 }
 0x104   :  { %1732 = vmatmul.f32.gmra.mxu3 %v1420_v11  ;;  %v6209_v11 = vsub.f32 %v180_v2, %v6189_v39  ;;  %1947 = vmatpush.msra.mxu2 %v6176_v52 }
 0x105   :  { %v6194_v63 = vadd.f32 %v1011_v29, %v859_v19  ;;  %1656 = vmatmul.f32.gmra.mxu2 %v6065_v38  ;;  %v1430_v29 = vand.u32 4294901760, %v1429_v54  ;;  %v2076_v38 = vsub.f32 %v6185_v34, %v8139_v43  ;;  %2066 = vmatpush.msra.mxu3 %v2065_v12  ;;  %v2082_v44 = vsub.f32 %v6192_v18, %v8141_v47 }
 0x106   :  { %v8145_v50 = vand.u32 4294901760, %v6209_v11  ;;  %v6223_v54 = vand.u32 4294901760, %v178_v21  ;;  %2250 = vmatpush.msrb.mxu1 %v6084_v22  ;;  %2168 = vmatpush.msrb.mxu0 %v6116_v31 }
 0x107   :  { %v728_v45 = vpop.f32.mrf.mxu0  ;;  %v2077_v12 = vand.u32 4294901760, %v2076_v38  ;;  %2072 = vmatpush.msra.mxu3 %v2071_v3  ;;  %v2083_v47 = vand.u32 4294901760, %v2082_v44  ;;  %v6242_v38 = vsub.f32 %v108_v55, %v6212_v4  ;;  %v176_v44 = vld [vmem:[#allocation6 + $0x188] sm:$0xff]  ;;  %1949 = vmatpush.msra.mxu2 %v6189_v39  ;;  %v1438_v55 = vand.u32 4294901760, %v1437_v15 }
 0x108   :  { %v789_v19 = vpop.f32.mrf.mxu1  ;;  %v866_v51 = vpop.f32.mrf.mxu2  ;;  %v2088_v37 = vsub.f32 %v6209_v11, %v8145_v50  ;;  %v6245_v3 = vsub.f32 %v178_v21, %v6223_v54  ;;  %v6249_v5 = vand.u32 4294901760, %v176_v44  ;;  %2252 = vmatpush.msrb.mxu1 %v6101_v59  ;;  %v729_v15 = vadd.f32 %v728_v45, %v5966_v60  ;;  %2171 = vmatpush.msrb.mxu0 %v6133_v28 }
 0x109   :  { %v790_v2 = vadd.f32 %v789_v19, %v725_v25  ;;  %v1015_v43 = vpop.f32.mrf.mxu3  ;;  %v6235_v25 = vsub.f32 %v179_v10, %v6206_v27  ;;  %v6237_v19 = vand.u32 4294901760, %v177_v13  ;;  %2078 = vmatpush.msra.mxu3 %v2077_v12  ;;  %1951 = vmatpush.msra.mxu2 %v6206_v27 }
 0x10a   :  { %1431 = vmatmul.f32.gmra.mxu0 %v1430_v29  ;;  %v2089_v10 = vand.u32 4294901760, %v2088_v37  ;;  %v8150_v21 = vand.u32 4294901760, %v6245_v3  ;;  %2254 = vmatpush.msrb.mxu1 %v6113_v58 }
 0x10b   :  { %v867_v35 = vadd.f32 %v866_v51, %v790_v2  ;;  %1572 = vmatmul.f32.gmra.mxu1 %v6043_v33  ;;  %v8147_v50 = vand.u32 4294901760, %v6235_v25  ;;  %v6252_v51 = vsub.f32 %v177_v13, %v6237_v19  ;;  %v175_v2 = vld [vmem:[#allocation6 + $0x180] sm:$0xff]  ;;  %2084 = vmatpush.msra.mxu3 %v2083_v47  ;;  %v6272_v13 = vand.u32 4294901760, %v115_v17 }
 0x10c   :  { %1738 = vmatmul.f32.gmra.mxu3 %v1428_v14  ;;  %1953 = vmatpush.msra.mxu2 %v6223_v54 }
 0x10d   :  { %v6254_v29 = vadd.f32 %v1015_v43, %v867_v35  ;;  %1661 = vmatmul.f32.gmra.mxu2 %v6125_v41  ;;  %v2094_v37 = vsub.f32 %v6235_v25, %v8147_v50  ;;  %v8151_v12 = vand.u32 4294901760, %v6252_v51  ;;  %v6265_v35 = vand.u32 4294901760, %v175_v2  ;;  %2090 = vmatpush.msra.mxu3 %v2089_v10 }
 0x10e   :  { %v6268_v43 = vsub.f32 %v176_v44, %v6249_v5  ;;  %v2100_v41 = vsub.f32 %v6245_v3, %v8150_v21  ;;  %2174 = vmatpush.msrb.mxu0 %v6153_v7  ;;  %2256 = vmatpush.msrb.mxu1 %v6130_v49 }
 0x10f   :  { %8254 = vst [vmem:[#allocation18_spill] sm:$0xff] %v6254_v29  ;;  %v732_v47 = vpop.f32.mrf.mxu0  ;;  %v2095_v36 = vand.u32 4294901760, %v2094_v37  ;;  %v2106_v60 = vsub.f32 %v6252_v51, %v8151_v12  ;;  %v6284_v44 = vsub.f32 %v175_v2, %v6265_v35  ;;  %1955 = vmatpush.msra.mxu2 %v6237_v19 }
 0x110   :  { %v793_v50 = vpop.f32.mrf.mxu1  ;;  %v8152_v45 = vand.u32 4294901760, %v6268_v43  ;;  %v874_v14 = vpop.f32.mrf.mxu2  ;;  %v2101_v29 = vand.u32 4294901760, %v2100_v41  ;;  %v6299_v41 = vsub.f32 %v115_v17, %v6272_v13  ;;  %2177 = vmatpush.msrb.mxu0 %v6174_v42  ;;  %2258 = vmatpush.msrb.mxu1 %v6150_v24 }
 0x111   :  { %v794_v6 = vadd.f32 %v793_v50, %v729_v15  ;;  %v1019_v21 = vpop.f32.mrf.mxu3  ;;  %2096 = vmatpush.msra.mxu3 %v2095_v36  ;;  %v2107_v10 = vand.u32 4294901760, %v2106_v60  ;;  %v2117_v12 = vand.u32 4294901760, %v6284_v44  ;;  %v8255_v50 = vand.u32 4294901760, %v6242_v38  ;;  %v122_v36 = vld [vmem:[#allocation3 + $0x198] sm:$0xff]  ;;  %1957 = vmatpush.msra.mxu2 %v6249_v5 }
 0x112   :  { %v2112_v37 = vsub.f32 %v6268_v43, %v8152_v45  ;;  %1439 = vmatmul.f32.gmra.mxu0 %v1438_v55  ;;  %v8256_v55 = vand.u32 4294901760, %v6167_v20  ;;  %2260 = vmatpush.msrb.mxu1 %v6163_v30 }
 0x113   :  { %v875_v2 = vadd.f32 %v874_v14, %v794_v6  ;;  %1576 = vmatmul.f32.gmra.mxu1 %v6093_v16  ;;  %v1445_v15 = vsub.f32 %v6242_v38, %v8255_v50  ;;  %2102 = vmatpush.msra.mxu3 %v2101_v29  ;;  %v2118_v45 = vsub.f32 %v6284_v44, %v2117_v12  ;;  %v1452_v29 = vand.u32 4294901760, %v6299_v41 }
 0x114   :  { %v2113_v60 = vand.u32 4294901760, %v2112_v37  ;;  %1744 = vmatmul.f32.gmra.mxu3 %v8256_v55  ;;  %v733_v14 = vadd.f32 %v732_v47, %v5989_v48  ;;  %v6313_v37 = vand.u32 4294901760, %v122_v36  ;;  %2180 = vmatpush.msrb.mxu0 %v6185_v34  ;;  %v8257_v48 = vand.u32 4294901760, %v6054_v32 }
 0x115   :  { %v6305_v6 = vadd.f32 %v1019_v21, %v875_v2  ;;  %1666 = vmatmul.f32.gmra.mxu2 %v6167_v20  ;;  %2108 = vmatpush.msra.mxu3 %v2107_v10  ;;  %v2119_v17 = vand.u32 4294901760, %v2118_v45  ;;  %v1446_v50 = vand.u32 4294901760, %v1445_v15  ;;  %v1453_v45 = vsub.f32 %v6299_v41, %v1452_v29 }
 0x116   :  { %1959 = vmatpush.msra.mxu2 %v6265_v35  ;;  %v6325_v15 = vsub.f32 %v122_v36, %v6313_v37  ;;  %2183 = vmatpush.msrb.mxu0 %v6192_v18 }
 0x117   :  { %v736_v21 = vpop.f32.mrf.mxu0  ;;  %2114 = vmatpush.msra.mxu3 %v2113_v60  ;;  %v8258_v60 = vand.u32 4294901760, %v6072_v61  ;;  %v1454_v36 = vand.u32 4294901760, %v1453_v45  ;;  %v74_v61 = vld [vmem:[#allocation3 + $0x18] sm:$0xff]  ;;  %2262 = vmatpush.msrb.mxu1 %v6176_v52  ;;  %v81_v45 = vld [vmem:[#allocation3 + $0x50] sm:$0xff] }
 0x118   :  { %v797_v2 = vpop.f32.mrf.mxu1  ;;  %v882_v20 = vpop.f32.mrf.mxu2  ;;  %2327 = vmatpush.msrb.mxu2 %v8257_v48  ;;  %v737_v32 = vadd.f32 %v736_v21, %v6012_v56  ;;  %2186 = vmatpush.msrb.mxu0 %v6209_v11  ;;  %v8261_v56 = vand.u32 4294901760, %v6107_v40  ;;  %v6347_v21 = vand.u32 4294901760, %v74_v61 }
 0x119   :  { %v798_v55 = vadd.f32 %v797_v2, %v733_v14  ;;  %v1023_v10 = vpop.f32.mrf.mxu3  ;;  %2120 = vmatpush.msra.mxu3 %v2119_v17  ;;  %v8259_v17 = vand.u32 4294901760, %v6242_v38  ;;  %v8260_v2 = vand.u32 4294901760, %v6087_v53  ;;  %2264 = vmatpush.msrb.mxu1 %v6189_v39 }
 0x11a   :  { %1447 = vmatmul.f32.gmra.mxu0 %v1446_v50  ;;  %2331 = vmatpush.msrb.mxu2 %v8258_v60  ;;  %v1460_v50 = vand.u32 4294901760, %v6325_v15 }
 0x11b   :  { %v883_v47 = vadd.f32 %v882_v20, %v798_v55  ;;  %1580 = vmatmul.f32.gmra.mxu1 %v6139_v62  ;;  %2422 = vmatpush.msrb.mxu3 %v6047_v57 }
 0x11c   :  { %1750 = vmatmul.f32.gmra.mxu3 %v8259_v17  ;;  %2335 = vmatpush.msrb.mxu2 %v8260_v2 }
 0x11d   :  { %v6330_v14 = vadd.f32 %v1023_v10, %v883_v47  ;;  %1671 = vmatmul.f32.gmra.mxu2 %v6242_v38  ;;  %2424 = vmatpush.msrb.mxu3 %v6056_v46  ;;  %v8262_v10 = vand.u32 4294901760, %v6116_v31  ;;  %v8263_v31 = vand.u32 4294901760, %v6133_v28  ;;  %v6374_v28 = vand.u32 4294901760, %v81_v45 }
 0x11e   :  { %2339 = vmatpush.msrb.mxu2 %v8261_v56  ;;  %2189 = vmatpush.msrb.mxu0 %v6235_v25 }
 0x11f   :  { %v740_v57 = vpop.f32.mrf.mxu0  ;;  %2426 = vmatpush.msrb.mxu3 %v6069_v8  ;;  %v1461_v8 = vsub.f32 %v6325_v15, %v1460_v50  ;;  %2266 = vmatpush.msrb.mxu1 %v6206_v27 }
 0x120   :  { %v801_v55 = vpop.f32.mrf.mxu1  ;;  %v890_v20 = vpop.f32.mrf.mxu2  ;;  %2343 = vmatpush.msrb.mxu2 %v8262_v10  ;;  %v741_v48 = vadd.f32 %v740_v57, %v6037_v0  ;;  %2192 = vmatpush.msrb.mxu0 %v6245_v3 }
 0x121   :  { %v802_v38 = vadd.f32 %v801_v55, %v737_v32  ;;  %v1027_v46 = vpop.f32.mrf.mxu3  ;;  %2428 = vmatpush.msrb.mxu3 %v6084_v22  ;;  %v6361_v22 = vsub.f32 %v74_v61, %v6347_v21  ;;  %v1462_v47 = vand.u32 4294901760, %v1461_v8  ;;  %2268 = vmatpush.msrb.mxu1 %v6223_v54  ;;  %v88_v61 = vld [vmem:[#allocation3 + $0x88] sm:$0xff] }
 0x122   :  { %1455 = vmatmul.f32.gmra.mxu0 %v1454_v36  ;;  %2347 = vmatpush.msrb.mxu2 %v8263_v31  ;;  %v6390_v36 = vsub.f32 %v81_v45, %v6374_v28  ;;  %v8270_v45 = vand.u32 4294901760, %v6245_v3 }
 0x123   :  { %v891_v53 = vadd.f32 %v890_v20, %v802_v38  ;;  %1584 = vmatmul.f32.gmra.mxu1 %v6212_v4  ;;  %2430 = vmatpush.msrb.mxu3 %v6101_v59  ;;  %v1962_v0 = vand.u32 4294901760, %v6361_v22  ;;  %v8267_v38 = vand.u32 4294901760, %v6192_v18  ;;  %v6402_v20 = vand.u32 4294901760, %v88_v61 }
 0x124   :  { %1756 = vmatmul.f32.gmra.mxu3 %v1452_v29  ;;  %2195 = vmatpush.msrb.mxu0 %v6252_v51 }
 0x125   :  { %v6356_v40 = vadd.f32 %v1027_v46, %v891_v53  ;;  %1676 = vmatmul.f32.gmra.mxu2 %v6299_v41  ;;  %2432 = vmatpush.msrb.mxu3 %v6113_v58  ;;  %v8264_v58 = vand.u32 4294901760, %v6153_v7  ;;  %v6418_v46 = vsub.f32 %v88_v61, %v6402_v20  ;;  %v8269_v53 = vand.u32 4294901760, %v6235_v25 }
 0x126   :  { %2270 = vmatpush.msrb.mxu1 %v6237_v19  ;;  %2198 = vmatpush.msrb.mxu0 %v6268_v43 }
 0x127   :  { %v744_v59 = vpop.f32.mrf.mxu0  ;;  %2434 = vmatpush.msrb.mxu3 %v6130_v49  ;;  %2351 = vmatpush.msrb.mxu2 %v8264_v58  ;;  %v8265_v49 = vand.u32 4294901760, %v6174_v42 }
 0x128   :  { %v805_v29 = vpop.f32.mrf.mxu1  ;;  %v898_v60 = vpop.f32.mrf.mxu2  ;;  %v745_v42 = vadd.f32 %v744_v59, %v6076_v1  ;;  %2201 = vmatpush.msrb.mxu0 %v6284_v44  ;;  %2272 = vmatpush.msrb.mxu1 %v6249_v5  ;;  %v1970_v1 = vand.u32 4294901760, %v6390_v36  ;;  %v1978_v59 = vand.u32 4294901760, %v6418_v46  ;;  %v8273_v44 = vld [vmem:[#allocation18_spill] sm:$0xff] }
 0x129   :  { %v806_v41 = vadd.f32 %v805_v29, %v741_v48  ;;  %v1031_v17 = vpop.f32.mrf.mxu3  ;;  %2436 = vmatpush.msrb.mxu3 %v6150_v24  ;;  %2355 = vmatpush.msrb.mxu2 %v8265_v49  ;;  %v1963_v24 = vsub.f32 %v6361_v22, %v1962_v0 }
 0x12a   :  { %1463 = vmatmul.f32.gmra.mxu0 %v1462_v47  ;;  %2274 = vmatpush.msrb.mxu1 %v6265_v35  ;;  %v1979_v3 = vsub.f32 %v6418_v46, %v1978_v59 }
 0x12b   :  { %v899_v32 = vadd.f32 %v898_v60, %v806_v41  ;;  %1588 = vmatmul.f32.gmra.mxu1 %v6272_v13  ;;  %2438 = vmatpush.msrb.mxu3 %v6163_v30  ;;  %v8266_v30 = vand.u32 4294901760, %v6185_v34  ;;  %v102_v41 = vld [vmem:[#allocation3 + $0xf8] sm:$0xff] }
 0x12c   :  { %1762 = vmatmul.f32.gmra.mxu3 %v1460_v50  ;;  %v1980_v49 = vand.u32 4294901760, %v1979_v3 }
 0x12d   :  { %v6382_v7 = vadd.f32 %v1031_v17, %v899_v32  ;;  %1681 = vmatmul.f32.gmra.mxu2 %v6325_v15  ;;  %2440 = vmatpush.msrb.mxu3 %v6176_v52  ;;  %v1964_v52 = vand.u32 4294901760, %v1963_v24 }
 0x12e   :  { %2359 = vmatpush.msrb.mxu2 %v8266_v30 }
 0x12f   :  { %v1089_v2 = vpop.f32.mrf.mxu0  ;;  %2442 = vmatpush.msrb.mxu3 %v6189_v39  ;;  %v8268_v39 = vand.u32 4294901760, %v6209_v11  ;;  %v95_v11 = vld [vmem:[#allocation3 + $0xc0] sm:$0xff] }
 0x130   :  { %v809_v50 = vpop.f32.mrf.mxu1  ;;  %v906_v57 = vpop.f32.mrf.mxu2  ;;  %2363 = vmatpush.msrb.mxu2 %v8267_v38  ;;  %v1090_v56 = vadd.f32 %v1089_v2, %v6135_v23 }
 0x131   :  { %v810_v15 = vadd.f32 %v809_v50, %v745_v42  ;;  %v1035_v55 = vpop.f32.mrf.mxu3  ;;  %2444 = vmatpush.msrb.mxu3 %v6206_v27  ;;  %v1971_v27 = vsub.f32 %v6390_v36, %v1970_v1  ;;  %v6450_v42 = vand.u32 4294901760, %v102_v41  ;;  %v109_v50 = vld [vmem:[#allocation3 + $0x130] sm:$0xff] }
 0x132   :  { %1831 = vmatmul.f32.vlgmr.msra.gmra.mxu0 %v5994_v9  ;;  %2367 = vmatpush.msrb.mxu2 %v8268_v39 }
 0x133   :  { %v907_v34 = vadd.f32 %v906_v57, %v810_v15  ;;  %1592 = vmatmul.f32.gmra.mxu1 %v6313_v37  ;;  %2446 = vmatpush.msrb.mxu3 %v6223_v54  ;;  %v1972_v31 = vand.u32 4294901760, %v1971_v27 }
 0x134   :  { %2122 = vmatmul.f32.vlgmr.msra.gmra.mxu3 %v6347_v21  ;;  %2371 = vmatpush.msrb.mxu2 %v8269_v53  ;;  %v116_v53 = vld [vmem:[#allocation3 + $0x168] sm:$0xff] }
 0x135   :  { %v6411_v18 = vadd.f32 %v1035_v55, %v907_v34  ;;  %1965 = vmatmul.f32.vlgmr.msra.gmra.mxu2 %v1964_v52  ;;  %2448 = vmatpush.msrb.mxu3 %v6237_v19  ;;  %v6428_v19 = vand.u32 4294901760, %v95_v11  ;;  %v6465_v34 = vand.u32 4294901760, %v109_v50 }
 0x136   :  { %2375 = vmatpush.msrb.mxu2 %v8270_v45  ;;  %v6479_v45 = vand.u32 4294901760, %v116_v53 }
 0x137   :  { %v1094_v54 = vpop.f32.mrf.mxu0  ;;  %2450 = vmatpush.msrb.mxu3 %v6249_v5  ;;  %v8271_v5 = vand.u32 4294901760, %v6252_v51  ;;  %v6442_v29 = vsub.f32 %v95_v11, %v6428_v19  ;;  %v6476_v11 = vsub.f32 %v109_v50, %v6465_v34 }
 0x138   :  { %v1163_v8 = vpop.f32.mrf.mxu1  ;;  %v1274_v48 = vpop.f32.mrf.mxu2 }
 0x139   :  { %v1164_v10 = vadd.f32 %v1163_v8, %v1090_v56  ;;  %v1339_v47 = vpop.f32.mrf.mxu3  ;;  %2452 = vmatpush.msrb.mxu3 %v6265_v35  ;;  %2379 = vmatpush.msrb.mxu2 %v8271_v5  ;;  %v1095_v35 = vadd.f32 %v1094_v54, %v6194_v63  ;;  %v1986_v24 = vand.u32 4294901760, %v6442_v29 }
 0x13a   :  { %1835 = vmatmul.f32.gmra.mxu0 %v6018_v26 }
 0x13b   :  { %v1275_v23 = vadd.f32 %v1274_v48, %v1164_v10  ;;  %1896 = vmatmul.f32.vlgmr.msra.gmra.mxu1 %v5994_v9  ;;  %v8272_v9 = vand.u32 4294901760, %v6268_v43  ;;  %v1987_v43 = vsub.f32 %v6442_v29, %v1986_v24 }
 0x13c   :  { %2126 = vmatmul.f32.gmra.mxu3 %v6374_v28 }
 0x13d   :  { %v6435_v25 = vadd.f32 %v1339_v47, %v1275_v23  ;;  %1973 = vmatmul.f32.gmra.mxu2 %v1972_v31  ;;  %v1988_v38 = vand.u32 4294901760, %v1987_v43  ;;  %v8157_v23 = vand.u32 4294901760, %v6476_v11 }
 0x13e   :  { %2383 = vmatpush.msrb.mxu2 %v8272_v9  ;;  %v123_v9 = vld [vmem:[#allocation3 + $0x1a0] sm:$0xff] }
 0x13f   :  { %v1099_v51 = vpop.f32.mrf.mxu0  ;;  %v6495_v43 = vand.u32 4294901760, %v123_v9 }
 0x140   :  { %v1169_v60 = vpop.f32.mrf.mxu1  ;;  %v1278_v58 = vpop.f32.mrf.mxu2  ;;  %2387 = vmatpush.msrb.mxu2 %v2117_v12  ;;  %v6461_v12 = vsub.f32 %v102_v41, %v6450_v42  ;;  %v1100_v30 = vadd.f32 %v1099_v51, %v8273_v44 }
 0x141   :  { %v1170_v17 = vadd.f32 %v1169_v60, %v1095_v35  ;;  %v1343_v32 = vpop.f32.mrf.mxu3  ;;  %v2003_v35 = vsub.f32 %v6476_v11, %v8157_v23 }
 0x142   :  { %1839 = vmatmul.f32.gmra.mxu0 %v6043_v33  ;;  %v8166_v52 = vand.u32 4294901760, %v6461_v12 }
 0x143   :  { %v1279_v61 = vadd.f32 %v1278_v58, %v1170_v17  ;;  %1900 = vmatmul.f32.gmra.mxu1 %v6018_v26 }
 0x144   :  { %2130 = vmatmul.f32.gmra.mxu3 %v6402_v20  ;;  %v1995_v56 = vsub.f32 %v6461_v12, %v8166_v52 }
 0x145   :  { %v6454_v63 = vadd.f32 %v1343_v32, %v1279_v61  ;;  %1981 = vmatmul.f32.gmra.mxu2 %v1980_v49  ;;  %v206_v49 = vld [vmem:[#allocation6 + $0x278] sm:$0xff]  ;;  %v2004_v61 = vand.u32 4294901760, %v2003_v35 }
 0x146   :  { %v1996_v31 = vand.u32 4294901760, %v1995_v56  ;;  %v6497_v44 = vand.u32 4294901760, %v206_v49 }
 0x147   :  { %v1104_v2 = vpop.f32.mrf.mxu0 }
 0x148   :  { %v1175_v15 = vpop.f32.mrf.mxu1  ;;  %v1282_v55 = vpop.f32.mrf.mxu2  ;;  %v1105_v54 = vadd.f32 %v1104_v2, %v6305_v6  ;;  %v6488_v6 = vsub.f32 %v116_v53, %v6479_v45  ;;  %2487 = vmatpush.msra.mxu0 %v6497_v44  ;;  %2802 = vmatpush.msra.mxu3 %v6497_v44 }
 0x149   :  { %v1176_v57 = vadd.f32 %v1175_v15, %v1100_v30  ;;  %v1347_v26 = vpop.f32.mrf.mxu3  ;;  %v205_v15 = vld [vmem:[#allocation6 + $0x270] sm:$0xff] }
 0x14a   :  { %1843 = vmatmul.f32.gmra.mxu0 %v6093_v16  ;;  %v8154_v32 = vand.u32 4294901760, %v6488_v6 }
 0x14b   :  { %v1283_v39 = vadd.f32 %v1282_v55, %v1176_v57  ;;  %1904 = vmatmul.f32.gmra.mxu1 %v6043_v33  ;;  %v6513_v57 = vsub.f32 %v123_v9, %v6495_v43  ;;  %v6516_v55 = vand.u32 4294901760, %v205_v15 }
 0x14c   :  { %2134 = vmatmul.f32.gmra.mxu3 %v6428_v19  ;;  %v2011_v2 = vsub.f32 %v6488_v6, %v8154_v32 }
 0x14d   :  { %v6469_v27 = vadd.f32 %v1347_v26, %v1283_v39  ;;  %1989 = vmatmul.f32.gmra.mxu2 %v1988_v38  ;;  %2489 = vmatpush.msra.mxu0 %v6516_v55  ;;  %v6525_v53 = vsub.f32 %v205_v15, %v6516_v55 }
 0x14e   :  { %2804 = vmatpush.msra.mxu3 %v6516_v55 }
 0x14f   :  { %v1109_v8 = vpop.f32.mrf.mxu0 }
 0x150   :  { %v1181_v10 = vpop.f32.mrf.mxu1  ;;  %v1286_v47 = vpop.f32.mrf.mxu2  ;;  %v1110_v41 = vadd.f32 %v1109_v8, %v6330_v14  ;;  %v6503_v14 = vsub.f32 %v206_v49, %v6497_v44 }
 0x151   :  { %v1182_v48 = vadd.f32 %v1181_v10, %v1105_v54  ;;  %v1351_v33 = vpop.f32.mrf.mxu3 }
 0x152   :  { %1847 = vmatmul.f32.gmra.mxu0 %v6139_v62  ;;  %2714 = vmatpush.msra.mxu2 %v6503_v14 }
 0x153   :  { %v1287_v5 = vadd.f32 %v1286_v47, %v1182_v48  ;;  %1908 = vmatmul.f32.gmra.mxu1 %v6093_v16  ;;  %v2012_v48 = vand.u32 4294901760, %v2011_v2  ;;  %v8153_v47 = vand.u32 4294901760, %v6513_v57 }
 0x154   :  { %2138 = vmatmul.f32.gmra.mxu3 %v6450_v42  ;;  %2717 = vmatpush.msra.mxu2 %v6525_v53 }
 0x155   :  { %v6484_v3 = vadd.f32 %v1351_v33, %v1287_v5  ;;  %1997 = vmatmul.f32.gmra.mxu2 %v1996_v31  ;;  %v2591_v31 = vand.u32 4294901760, %v6525_v53 }
 0x157   :  { %v1114_v51 = vpop.f32.mrf.mxu0 }
 0x158   :  { %v1187_v60 = vpop.f32.mrf.mxu1  ;;  %v1290_v58 = vpop.f32.mrf.mxu2  ;;  %v1115_v26 = vadd.f32 %v1114_v51, %v6356_v40  ;;  %v204_v40 = vld [vmem:[#allocation6 + $0x268] sm:$0xff] }
 0x159   :  { %v1188_v17 = vadd.f32 %v1187_v60, %v1110_v41  ;;  %v1355_v16 = vpop.f32.mrf.mxu3  ;;  %v6530_v5 = vand.u32 4294901760, %v204_v40  ;;  %v2592_v41 = vsub.f32 %v6525_v53, %v2591_v31  ;;  %v203_v60 = vld [vmem:[#allocation6 + $0x260] sm:$0xff] }
 0x15a   :  { %1851 = vmatmul.f32.gmra.mxu0 %v6212_v4 }
 0x15b   :  { %v1291_v30 = vadd.f32 %v1290_v58, %v1188_v17  ;;  %1912 = vmatmul.f32.gmra.mxu1 %v6139_v62  ;;  %v2585_v62 = vand.u32 4294901760, %v6503_v14  ;;  %2491 = vmatpush.msra.mxu0 %v6530_v5  ;;  %v6540_v9 = vsub.f32 %v204_v40, %v6530_v5  ;;  %v2593_v17 = vand.u32 4294901760, %v2592_v41  ;;  %v201_v41 = vld [vmem:[#allocation6 + $0x250] sm:$0xff] }
 0x15c   :  { %2142 = vmatmul.f32.gmra.mxu3 %v6465_v34 }
 0x15d   :  { %v6506_v50 = vadd.f32 %v1355_v16, %v1291_v30  ;;  %2005 = vmatmul.f32.gmra.mxu2 %v2004_v61  ;;  %v2586_v56 = vsub.f32 %v6503_v14, %v2585_v62  ;;  %v8167_v58 = vand.u32 4294901760, %v6540_v9  ;;  %v6549_v16 = vand.u32 4294901760, %v203_v60  ;;  %2806 = vmatpush.msra.mxu3 %v6530_v5 }
 0x15e   :  { %2720 = vmatpush.msra.mxu2 %v6540_v9 }
 0x15f   :  { %v1119_v38 = vpop.f32.mrf.mxu0  ;;  %v2587_v33 = vand.u32 4294901760, %v2586_v56  ;;  %v2598_v2 = vsub.f32 %v6540_v9, %v8167_v58  ;;  %2493 = vmatpush.msra.mxu0 %v6549_v16  ;;  %v6559_v15 = vsub.f32 %v203_v60, %v6549_v16  ;;  %2808 = vmatpush.msra.mxu3 %v6549_v16 }
 0x160   :  { %v1193_v39 = vpop.f32.mrf.mxu1  ;;  %v1294_v8 = vpop.f32.mrf.mxu2  ;;  %v1120_v49 = vadd.f32 %v1119_v38, %v6382_v7 }
 0x161   :  { %v1194_v54 = vadd.f32 %v1193_v39, %v1115_v26  ;;  %v1359_v10 = vpop.f32.mrf.mxu3  ;;  %2588 = vmatpush.msra.mxu1 %v2587_v33  ;;  %v2599_v38 = vand.u32 4294901760, %v2598_v2  ;;  %2723 = vmatpush.msra.mxu2 %v6559_v15  ;;  %v8276_v53 = vand.u32 4294901760, %v6559_v15 }
 0x162   :  { %1855 = vmatmul.f32.gmra.mxu0 %v6272_v13 }
 0x163   :  { %v1295_v35 = vadd.f32 %v1294_v8, %v1194_v54  ;;  %1916 = vmatmul.f32.gmra.mxu1 %v6212_v4  ;;  %v2019_v4 = vsub.f32 %v6513_v57, %v8153_v47  ;;  %v202_v54 = vld [vmem:[#allocation6 + $0x258] sm:$0xff]  ;;  %v8164_v8 = vand.u32 4294901760, %v6559_v15 }
 0x164   :  { %2146 = vmatmul.f32.gmra.mxu3 %v6479_v45  ;;  %2594 = vmatpush.msra.mxu1 %v2593_v17  ;;  %v198_v47 = vld [vmem:[#allocation6 + $0x238] sm:$0xff] }
 0x165   :  { %v6542_v51 = vadd.f32 %v1359_v10, %v1295_v35  ;;  %2013 = vmatmul.f32.gmra.mxu2 %v2012_v48  ;;  %v2020_v7 = vand.u32 4294901760, %v2019_v4  ;;  %v6563_v10 = vand.u32 4294901760, %v202_v54  ;;  %v2604_v40 = vsub.f32 %v6559_v15, %v8164_v8 }
 0x166   :  { %2600 = vmatpush.msra.mxu1 %v2599_v38  ;;  %v6624_v32 = vand.u32 4294901760, %v198_v47 }
 0x167   :  { %v1124_v61 = vpop.f32.mrf.mxu0  ;;  %2495 = vmatpush.msra.mxu0 %v6563_v10  ;;  %v6573_v33 = vsub.f32 %v202_v54, %v6563_v10  ;;  %v2605_v60 = vand.u32 4294901760, %v2604_v40  ;;  %2810 = vmatpush.msra.mxu3 %v6563_v10 }
 0x168   :  { %v1199_v30 = vpop.f32.mrf.mxu1  ;;  %v1298_v39 = vpop.f32.mrf.mxu2  ;;  %v1125_v17 = vadd.f32 %v1124_v61, %v6411_v18 }
 0x169   :  { %v1200_v26 = vadd.f32 %v1199_v30, %v1120_v49  ;;  %v1363_v56 = vpop.f32.mrf.mxu3  ;;  %v8163_v4 = vand.u32 4294901760, %v6573_v33  ;;  %2726 = vmatpush.msra.mxu2 %v6573_v33  ;;  %2606 = vmatpush.msra.mxu1 %v2605_v60 }
 0x16a   :  { %1859 = vmatmul.f32.gmra.mxu0 %v6313_v37 }
 0x16b   :  { %v1299_v48 = vadd.f32 %v1298_v39, %v1200_v26  ;;  %1920 = vmatmul.f32.gmra.mxu1 %v6272_v13  ;;  %v6579_v13 = vand.u32 4294901760, %v201_v41  ;;  %v2610_v2 = vsub.f32 %v6573_v33, %v8163_v4 }
 0x16c   :  { %2150 = vmatmul.f32.gmra.mxu3 %v6495_v43 }
 0x16d   :  { %v6575_v35 = vadd.f32 %v1363_v56, %v1299_v48  ;;  %2021 = vmatmul.f32.gmra.mxu2 %v2020_v7  ;;  %2497 = vmatpush.msra.mxu0 %v6579_v13  ;;  %v6589_v26 = vsub.f32 %v201_v41, %v6579_v13  ;;  %v200_v7 = vld [vmem:[#allocation6 + $0x248] sm:$0xff]  ;;  %v2611_v18 = vand.u32 4294901760, %v2610_v2 }
 0x16e   :  { %2812 = vmatpush.msra.mxu3 %v6579_v13  ;;  %v6593_v38 = vand.u32 4294901760, %v200_v7 }
 0x16f   :  { %v1408_v30 = vpop.f32.mrf.mxu0  ;;  %v8160_v61 = vand.u32 4294901760, %v6589_v26  ;;  %2729 = vmatpush.msra.mxu2 %v6589_v26  ;;  %2612 = vmatpush.msra.mxu1 %v2611_v18 }
 0x170   :  { %v1205_v49 = vpop.f32.mrf.mxu1  ;;  %v1302_v56 = vpop.f32.mrf.mxu2  ;;  %2499 = vmatpush.msra.mxu0 %v6593_v38  ;;  %v6603_v41 = vsub.f32 %v200_v7, %v6593_v38  ;;  %2814 = vmatpush.msra.mxu3 %v6593_v38 }
 0x171   :  { %v1206_v39 = vadd.f32 %v1205_v49, %v1125_v17  ;;  %v1367_v54 = vpop.f32.mrf.mxu3  ;;  %v2616_v40 = vsub.f32 %v6589_v26, %v8160_v61  ;;  %v199_v17 = vld [vmem:[#allocation6 + $0x240] sm:$0xff] }
 0x172   :  { %2204 = vmatmul.f32.vlgmr.msrb.gmra.mxu0 %v6361_v22  ;;  %v8156_v49 = vand.u32 4294901760, %v6603_v41  ;;  %v6610_v2 = vand.u32 4294901760, %v199_v17  ;;  %2732 = vmatpush.msra.mxu2 %v6603_v41 }
 0x173   :  { %v1303_v48 = vadd.f32 %v1302_v56, %v1206_v39  ;;  %1924 = vmatmul.f32.gmra.mxu1 %v6313_v37  ;;  %v2617_v37 = vand.u32 4294901760, %v2616_v40  ;;  %v1409_v39 = vadd.f32 %v1408_v30, %v6435_v25 }
 0x174   :  { %2454 = vmatmul.f32.vlgmr.msrb.gmra.mxu3 %v6347_v21  ;;  %2501 = vmatpush.msra.mxu0 %v6610_v2 }
 0x175   :  { %v6605_v60 = vadd.f32 %v1367_v54, %v1303_v48  ;;  %2389 = vmatmul.f32.vlgmr.msrb.gmra.mxu2 %v6347_v21  ;;  %2618 = vmatpush.msra.mxu1 %v2617_v37  ;;  %v2622_v54 = vsub.f32 %v6603_v41, %v8156_v49  ;;  %v6620_v21 = vsub.f32 %v199_v17, %v6610_v2  ;;  %v196_v49 = vld [vmem:[#allocation6 + $0x228] sm:$0xff] }
 0x176   :  { %2816 = vmatpush.msra.mxu3 %v6610_v2  ;;  %2503 = vmatpush.msra.mxu0 %v6624_v32  ;;  %v6656_v23 = vand.u32 4294901760, %v196_v49 }
 0x177   :  { %v1416_v56 = vpop.f32.mrf.mxu0  ;;  %v2623_v25 = vand.u32 4294901760, %v2622_v54  ;;  %v8155_v30 = vand.u32 4294901760, %v6620_v21  ;;  %2735 = vmatpush.msra.mxu2 %v6620_v21  ;;  %v197_v54 = vld [vmem:[#allocation6 + $0x230] sm:$0xff] }
 0x178   :  { %v1565_v7 = vpop.f32.mrf.mxu1  ;;  %v1647_v48 = vpop.f32.mrf.mxu2  ;;  %2818 = vmatpush.msra.mxu3 %v6624_v32 }
 0x179   :  { %v1566_v18 = vadd.f32 %v1565_v7, %v1409_v39  ;;  %v1721_v40 = vpop.f32.mrf.mxu3  ;;  %2624 = vmatpush.msra.mxu1 %v2623_v25  ;;  %v2628_v17 = vsub.f32 %v6620_v21, %v8155_v30  ;;  %v6635_v39 = vsub.f32 %v198_v47, %v6624_v32 }
 0x17a   :  { %2209 = vmatmul.f32.gmra.mxu0 %v6390_v36 }
 0x17b   :  { %v1648_v37 = vadd.f32 %v1647_v48, %v1566_v18  ;;  %2278 = vmatmul.f32.vlgmr.msrb.gmra.mxu1 %v1962_v0  ;;  %v2629_v18 = vand.u32 4294901760, %v2628_v17  ;;  %v8159_v22 = vand.u32 4294901760, %v6635_v39  ;;  %v6642_v0 = vand.u32 4294901760, %v197_v54  ;;  %2738 = vmatpush.msra.mxu2 %v6635_v39 }
 0x17c   :  { %2458 = vmatmul.f32.gmra.mxu3 %v6374_v28  ;;  %v1417_v48 = vadd.f32 %v1416_v56, %v6454_v63 }
 0x17d   :  { %v6637_v7 = vadd.f32 %v1721_v40, %v1648_v37  ;;  %2393 = vmatmul.f32.gmra.mxu2 %v6374_v28  ;;  %2630 = vmatpush.msra.mxu1 %v2629_v18  ;;  %v2634_v40 = vsub.f32 %v6635_v39, %v8159_v22  ;;  %v6652_v28 = vsub.f32 %v197_v54, %v6642_v0  ;;  %v194_v22 = vld [vmem:[#allocation6 + $0x218] sm:$0xff] }
 0x17e   :  { %2505 = vmatpush.msra.mxu0 %v6642_v0  ;;  %2820 = vmatpush.msra.mxu3 %v6642_v0  ;;  %v6688_v61 = vand.u32 4294901760, %v194_v22 }
 0x17f   :  { %v1424_v47 = vpop.f32.mrf.mxu0  ;;  %v2635_v63 = vand.u32 4294901760, %v2634_v40  ;;  %v8158_v56 = vand.u32 4294901760, %v6652_v28  ;;  %2741 = vmatpush.msra.mxu2 %v6652_v28  ;;  %v195_v40 = vld [vmem:[#allocation6 + $0x220] sm:$0xff] }
 0x180   :  { %v1569_v25 = vpop.f32.mrf.mxu1  ;;  %v1652_v17 = vpop.f32.mrf.mxu2  ;;  %2507 = vmatpush.msra.mxu0 %v6656_v23  ;;  %2822 = vmatpush.msra.mxu3 %v6656_v23 }
 0x181   :  { %v1570_v37 = vadd.f32 %v1569_v25, %v1417_v48  ;;  %v1727_v30 = vpop.f32.mrf.mxu3  ;;  %2636 = vmatpush.msra.mxu1 %v2635_v63  ;;  %v2640_v54 = vsub.f32 %v6652_v28, %v8158_v56  ;;  %v6667_v48 = vsub.f32 %v196_v49, %v6656_v23 }
 0x182   :  { %2214 = vmatmul.f32.gmra.mxu0 %v6418_v46 }
 0x183   :  { %v1653_v18 = vadd.f32 %v1652_v17, %v1570_v37  ;;  %2284 = vmatmul.f32.gmra.mxu1 %v1970_v1  ;;  %v2641_v37 = vand.u32 4294901760, %v2640_v54  ;;  %v8161_v36 = vand.u32 4294901760, %v6667_v48  ;;  %v6674_v1 = vand.u32 4294901760, %v195_v40  ;;  %2744 = vmatpush.msra.mxu2 %v6667_v48 }
 0x184   :  { %2462 = vmatmul.f32.gmra.mxu3 %v6402_v20  ;;  %v1425_v17 = vadd.f32 %v1424_v47, %v6469_v27 }
 0x185   :  { %v6669_v25 = vadd.f32 %v1727_v30, %v1653_v18  ;;  %2397 = vmatmul.f32.gmra.mxu2 %v6402_v20  ;;  %2642 = vmatpush.msra.mxu1 %v2641_v37  ;;  %v2646_v30 = vsub.f32 %v6667_v48, %v8161_v36  ;;  %v6684_v20 = vsub.f32 %v195_v40, %v6674_v1  ;;  %v193_v40 = vld [vmem:[#allocation6 + $0x210] sm:$0xff] }
 0x186   :  { %2509 = vmatpush.msra.mxu0 %v6674_v1  ;;  %2824 = vmatpush.msra.mxu3 %v6674_v1 }
 0x187   :  { %v1432_v49 = vpop.f32.mrf.mxu0  ;;  %v2647_v27 = vand.u32 4294901760, %v2646_v30  ;;  %v8162_v47 = vand.u32 4294901760, %v6684_v20  ;;  %2747 = vmatpush.msra.mxu2 %v6684_v20  ;;  %v6701_v30 = vand.u32 4294901760, %v193_v40 }
 0x188   :  { %v1573_v63 = vpop.f32.mrf.mxu1  ;;  %v1657_v54 = vpop.f32.mrf.mxu2  ;;  %2511 = vmatpush.msra.mxu0 %v6688_v61  ;;  %2826 = vmatpush.msra.mxu3 %v6688_v61 }
 0x189   :  { %v1574_v18 = vadd.f32 %v1573_v63, %v1425_v17  ;;  %v1733_v56 = vpop.f32.mrf.mxu3  ;;  %2648 = vmatpush.msra.mxu1 %v2647_v27  ;;  %v2652_v17 = vsub.f32 %v6684_v20, %v8162_v47  ;;  %v6699_v63 = vsub.f32 %v194_v22, %v6688_v61  ;;  %v1433_v22 = vadd.f32 %v1432_v49, %v6484_v3 }
 0x18a   :  { %2219 = vmatmul.f32.gmra.mxu0 %v6442_v29  ;;  %2828 = vmatpush.msra.mxu3 %v6701_v30 }
 0x18b   :  { %v1658_v37 = vadd.f32 %v1657_v54, %v1574_v18  ;;  %2290 = vmatmul.f32.gmra.mxu1 %v1978_v59  ;;  %v192_v18 = vld [vmem:[#allocation6 + $0x208] sm:$0xff]  ;;  %v2653_v46 = vand.u32 4294901760, %v2652_v17  ;;  %v8165_v59 = vand.u32 4294901760, %v6699_v63  ;;  %2513 = vmatpush.msra.mxu0 %v6701_v30  ;;  %v6710_v54 = vsub.f32 %v193_v40, %v6701_v30 }
 0x18c   :  { %2466 = vmatmul.f32.gmra.mxu3 %v6428_v19  ;;  %v6712_v27 = vand.u32 4294901760, %v192_v18  ;;  %2750 = vmatpush.msra.mxu2 %v6699_v63 }
 0x18d   :  { %v6703_v36 = vadd.f32 %v1733_v56, %v1658_v37  ;;  %2401 = vmatmul.f32.gmra.mxu2 %v6428_v19  ;;  %v191_v56 = vld [vmem:[#allocation6 + $0x200] sm:$0xff]  ;;  %2654 = vmatpush.msra.mxu1 %v2653_v46  ;;  %v2658_v19 = vsub.f32 %v6699_v63, %v8165_v59  ;;  %v8168_v17 = vand.u32 4294901760, %v6710_v54 }
 0x18e   :  { %2515 = vmatpush.msra.mxu0 %v6712_v27  ;;  %v6722_v40 = vand.u32 4294901760, %v191_v56  ;;  %v6725_v3 = vsub.f32 %v192_v18, %v6712_v27  ;;  %2753 = vmatpush.msra.mxu2 %v6710_v54 }
 0x18f   :  { %v1440_v37 = vpop.f32.mrf.mxu0  ;;  %v2659_v46 = vand.u32 4294901760, %v2658_v19  ;;  %v2664_v59 = vsub.f32 %v6710_v54, %v8168_v17  ;;  %2830 = vmatpush.msra.mxu3 %v6712_v27 }
 0x190   :  { %v1577_v47 = vpop.f32.mrf.mxu1  ;;  %v1662_v4 = vpop.f32.mrf.mxu2  ;;  %2517 = vmatpush.msra.mxu0 %v6722_v40  ;;  %v2669_v52 = vand.u32 4294901760, %v6725_v3  ;;  %v6735_v58 = vsub.f32 %v191_v56, %v6722_v40  ;;  %2756 = vmatpush.msra.mxu2 %v6725_v3 }
 0x191   :  { %v1578_v49 = vadd.f32 %v1577_v47, %v1433_v22  ;;  %v1739_v8 = vpop.f32.mrf.mxu3  ;;  %2660 = vmatpush.msra.mxu1 %v2659_v46  ;;  %v2665_v47 = vand.u32 4294901760, %v2664_v59  ;;  %2832 = vmatpush.msra.mxu3 %v6722_v40  ;;  %v75_v46 = vld [vmem:[#allocation3 + $0x20] sm:$0xff] }
 0x192   :  { %2224 = vmatmul.f32.gmra.mxu0 %v6461_v12  ;;  %v2670_v22 = vsub.f32 %v6725_v3, %v2669_v52  ;;  %v2675_v19 = vand.u32 4294901760, %v6735_v58  ;;  %2759 = vmatpush.msra.mxu2 %v6735_v58 }
 0x193   :  { %v1663_v18 = vadd.f32 %v1662_v4, %v1578_v49  ;;  %2296 = vmatmul.f32.gmra.mxu1 %v1986_v24  ;;  %2885 = vmatpush.msrb.mxu0 %v2585_v62  ;;  %v1441_v4 = vadd.f32 %v1440_v37, %v6506_v50  ;;  %v8274_v49 = vand.u32 4294901760, %v6540_v9  ;;  %v8275_v37 = vand.u32 4294901760, %v6461_v12 }
 0x194   :  { %2470 = vmatmul.f32.gmra.mxu3 %v6450_v42  ;;  %2666 = vmatpush.msra.mxu1 %v2665_v47  ;;  %v2671_v29 = vand.u32 4294901760, %v2670_v22  ;;  %v2676_v24 = vsub.f32 %v6735_v58, %v2675_v19  ;;  %v8277_v12 = vand.u32 4294901760, %v6573_v33  ;;  %v82_v33 = vld [vmem:[#allocation3 + $0x58] sm:$0xff] }
 0x195   :  { %v6745_v17 = vadd.f32 %v1739_v8, %v1663_v18  ;;  %2405 = vmatmul.f32.gmra.mxu2 %v6450_v42  ;;  %2889 = vmatpush.msrb.mxu0 %v2591_v31  ;;  %v6774_v18 = vand.u32 4294901760, %v75_v46 }
 0x196   :  { %2672 = vmatpush.msra.mxu1 %v2671_v29  ;;  %v2677_v56 = vand.u32 4294901760, %v2676_v24  ;;  %v8278_v24 = vand.u32 4294901760, %v6589_v26  ;;  %v6798_v26 = vand.u32 4294901760, %v82_v33 }
 0x197   :  { %v1448_v8 = vpop.f32.mrf.mxu0  ;;  %2893 = vmatpush.msrb.mxu0 %v8274_v49 }
 0x198   :  { %v1581_v59 = vpop.f32.mrf.mxu1  ;;  %v1667_v14 = vpop.f32.mrf.mxu2  ;;  %2678 = vmatpush.msra.mxu1 %v2677_v56  ;;  %v1449_v9 = vadd.f32 %v1448_v8, %v6542_v51  ;;  %v6786_v51 = vsub.f32 %v75_v46, %v6774_v18  ;;  %v8281_v8 = vand.u32 4294901760, %v6620_v21 }
 0x199   :  { %v1582_v42 = vadd.f32 %v1581_v59, %v1441_v4  ;;  %v1745_v62 = vpop.f32.mrf.mxu3  ;;  %2897 = vmatpush.msrb.mxu0 %v8276_v53 }
 0x19a   :  { %2229 = vmatmul.f32.gmra.mxu0 %v6476_v11  ;;  %2980 = vmatpush.msrb.mxu1 %v6497_v44 }
 0x19b   :  { %v1668_v50 = vadd.f32 %v1667_v14, %v1582_v42  ;;  %2302 = vmatmul.f32.gmra.mxu1 %v8275_v37  ;;  %2901 = vmatpush.msrb.mxu0 %v8277_v12  ;;  %v6811_v14 = vsub.f32 %v82_v33, %v6798_v26  ;;  %v222_v37 = vld [vmem:[#allocation6 + $0x2f8] sm:$0xff]  ;;  %v221_v12 = vld [vmem:[#allocation6 + $0x2f0] sm:$0xff]  ;;  %v219_v33 = vld [vmem:[#allocation6 + $0x2e0] sm:$0xff] }
 0x19c   :  { %2474 = vmatmul.f32.gmra.mxu3 %v6465_v34  ;;  %2982 = vmatpush.msrb.mxu1 %v6516_v55  ;;  %v8279_v55 = vand.u32 4294901760, %v6476_v11  ;;  %v6827_v53 = vand.u32 4294901760, %v222_v37 }
 0x19d   :  { %v6768_v31 = vadd.f32 %v1745_v62, %v1668_v50  ;;  %2409 = vmatmul.f32.gmra.mxu2 %v6465_v34  ;;  %2905 = vmatpush.msrb.mxu0 %v8278_v24  ;;  %v8284_v62 = vand.u32 4294901760, %v6652_v28  ;;  %v2528_v49 = vand.u32 4294901760, %v6811_v14 }
 0x19e   :  { %2984 = vmatpush.msrb.mxu1 %v6530_v5  ;;  %v8280_v5 = vand.u32 4294901760, %v6603_v41  ;;  %3045 = vmatpush.msrb.mxu2 %v6827_v53 }
 0x19f   :  { %v1456_v47 = vpop.f32.mrf.mxu0 }
 0x1a0   :  { %v1585_v44 = vpop.f32.mrf.mxu1  ;;  %v1672_v22 = vpop.f32.mrf.mxu2  ;;  %2986 = vmatpush.msrb.mxu1 %v6549_v16  ;;  %2909 = vmatpush.msrb.mxu0 %v8280_v5  ;;  %v1457_v11 = vadd.f32 %v1456_v47, %v6575_v35  ;;  %v2520_v16 = vand.u32 4294901760, %v6786_v51  ;;  %v6834_v47 = vsub.f32 %v222_v37, %v6827_v53 }
 0x1a1   :  { %v1586_v15 = vadd.f32 %v1585_v44, %v1449_v9  ;;  %v1751_v29 = vpop.f32.mrf.mxu3 }
 0x1a2   :  { %2234 = vmatmul.f32.gmra.mxu0 %v6488_v6  ;;  %2988 = vmatpush.msrb.mxu1 %v6563_v10  ;;  %v2521_v21 = vsub.f32 %v6786_v51, %v2520_v16  ;;  %v8180_v24 = vand.u32 4294901760, %v6834_v47 }
 0x1a3   :  { %v1673_v34 = vadd.f32 %v1672_v22, %v1586_v15  ;;  %2308 = vmatmul.f32.gmra.mxu1 %v8279_v55  ;;  %2913 = vmatpush.msrb.mxu0 %v8281_v8  ;;  %v8287_v15 = vand.u32 4294901760, %v6513_v57  ;;  %v220_v22 = vld [vmem:[#allocation6 + $0x2e8] sm:$0xff]  ;;  %v6864_v8 = vand.u32 4294901760, %v219_v33 }
 0x1a4   :  { %2478 = vmatmul.f32.gmra.mxu3 %v6479_v45  ;;  %2990 = vmatpush.msrb.mxu1 %v6579_v13  ;;  %v8283_v13 = vand.u32 4294901760, %v6488_v6  ;;  %v3144_v5 = vsub.f32 %v6834_v47, %v8180_v24 }
 0x1a5   :  { %v6791_v4 = vadd.f32 %v1751_v29, %v1673_v34  ;;  %2413 = vmatmul.f32.gmra.mxu2 %v6479_v45  ;;  %v8282_v45 = vand.u32 4294901760, %v6635_v39  ;;  %v96_v29 = vld [vmem:[#allocation3 + $0xc8] sm:$0xff]  ;;  %v6849_v34 = vand.u32 4294901760, %v220_v22 }
 0x1a6   :  { %2992 = vmatpush.msrb.mxu1 %v6593_v38  ;;  %v89_v38 = vld [vmem:[#allocation3 + $0x90] sm:$0xff] }
 0x1a7   :  { %v1464_v10 = vpop.f32.mrf.mxu0  ;;  %2917 = vmatpush.msrb.mxu0 %v8282_v45  ;;  %v6823_v50 = vand.u32 4294901760, %v89_v38  ;;  %v3145_v45 = vand.u32 4294901760, %v3144_v5 }
 0x1a8   :  { %v1589_v41 = vpop.f32.mrf.mxu1  ;;  %v1677_v56 = vpop.f32.mrf.mxu2  ;;  %2994 = vmatpush.msrb.mxu1 %v6610_v2  ;;  %v1465_v6 = vadd.f32 %v1464_v10, %v6605_v60  ;;  %v2522_v2 = vand.u32 4294901760, %v2521_v21  ;;  %v8286_v60 = vand.u32 4294901760, %v6684_v20  ;;  %v6867_v10 = vsub.f32 %v220_v22, %v6849_v34 }
 0x1a9   :  { %v1590_v59 = vadd.f32 %v1589_v41, %v1457_v11  ;;  %v1757_v42 = vpop.f32.mrf.mxu3  ;;  %2921 = vmatpush.msrb.mxu0 %v8284_v62  ;;  %v6845_v20 = vsub.f32 %v89_v38, %v6823_v50  ;;  %v217_v62 = vld [vmem:[#allocation6 + $0x2d0] sm:$0xff]  ;;  %3146 = vmatpush.msrb.mxu3 %v3145_v45 }
 0x1aa   :  { %2239 = vmatmul.f32.gmra.mxu0 %v6513_v57  ;;  %2996 = vmatpush.msrb.mxu1 %v6624_v32  ;;  %v8285_v32 = vand.u32 4294901760, %v6667_v48  ;;  %v6836_v48 = vand.u32 4294901760, %v221_v12  ;;  %v8288_v57 = vand.u32 4294901760, %v6699_v63  ;;  %v8289_v63 = vand.u32 4294901760, %v6710_v54 }
 0x1ab   :  { %v1678_v35 = vadd.f32 %v1677_v56, %v1590_v59  ;;  %2314 = vmatmul.f32.gmra.mxu1 %v8283_v13  ;;  %v218_v59 = vld [vmem:[#allocation6 + $0x2d8] sm:$0xff]  ;;  %v6893_v3 = vand.u32 4294901760, %v217_v62 }
 0x1ac   :  { %2482 = vmatmul.f32.gmra.mxu3 %v6495_v43  ;;  %2998 = vmatpush.msrb.mxu1 %v6642_v0 }
 0x1ad   :  { %v6816_v39 = vadd.f32 %v1757_v42, %v1678_v35  ;;  %2417 = vmatmul.f32.gmra.mxu2 %v6495_v43  ;;  %2925 = vmatpush.msrb.mxu0 %v8285_v32  ;;  %v8176_v35 = vand.u32 4294901760, %v6867_v10 }
 0x1ae   :  { %3000 = vmatpush.msrb.mxu1 %v6656_v23  ;;  %v2529_v23 = vsub.f32 %v6811_v14, %v2528_v49  ;;  %3047 = vmatpush.msrb.mxu2 %v6836_v48 }
 0x1af   :  { %v1832_v46 = vpop.f32.mrf.mxu0  ;;  %2929 = vmatpush.msrb.mxu0 %v8286_v60  ;;  %v3156_v37 = vsub.f32 %v6867_v10, %v8176_v35  ;;  %v117_v35 = vld [vmem:[#allocation3 + $0x170] sm:$0xff] }
 0x1b0   :  { %v1593_v28 = vpop.f32.mrf.mxu1  ;;  %v1682_v9 = vpop.f32.mrf.mxu2  ;;  %3002 = vmatpush.msrb.mxu1 %v6674_v1  ;;  %v6852_v1 = vsub.f32 %v221_v12, %v6836_v48  ;;  %v2530_v41 = vand.u32 4294901760, %v2529_v23  ;;  %3049 = vmatpush.msrb.mxu2 %v6849_v34 }
 0x1b1   :  { %v1594_v43 = vadd.f32 %v1593_v28, %v1465_v6  ;;  %v1763_v0 = vpop.f32.mrf.mxu3  ;;  %2933 = vmatpush.msrb.mxu0 %v8288_v57  ;;  %v103_v6 = vld [vmem:[#allocation3 + $0x100] sm:$0xff] }
 0x1b2   :  { %2523 = vmatmul.f32.vlgmr.msra.gmra.mxu0 %v2522_v2  ;;  %3004 = vmatpush.msrb.mxu1 %v6688_v61  ;;  %v8178_v11 = vand.u32 4294901760, %v6852_v1  ;;  %v2536_v61 = vand.u32 4294901760, %v6845_v20  ;;  %v6919_v60 = vand.u32 4294901760, %v103_v6 }
 0x1b3   :  { %v1683_v44 = vadd.f32 %v1682_v9, %v1594_v43  ;;  %2320 = vmatmul.f32.gmra.mxu1 %v8287_v15  ;;  %2937 = vmatpush.msrb.mxu0 %v8289_v63  ;;  %v216_v43 = vld [vmem:[#allocation6 + $0x2c8] sm:$0xff]  ;;  %v3157_v9 = vand.u32 4294901760, %v3156_v37  ;;  %v215_v15 = vld [vmem:[#allocation6 + $0x2c0] sm:$0xff] }
 0x1b4   :  { %2836 = vmatmul.f32.vlgmr.msra.gmra.mxu3 %v2520_v16  ;;  %v1833_v16 = vadd.f32 %v1832_v46, %v6637_v7  ;;  %3006 = vmatpush.msrb.mxu1 %v6701_v30  ;;  %v3150_v54 = vsub.f32 %v6852_v1, %v8178_v11  ;;  %v6881_v7 = vand.u32 4294901760, %v218_v59  ;;  %v6887_v30 = vsub.f32 %v219_v33, %v6864_v8 }
 0x1b5   :  { %v6856_v55 = vadd.f32 %v1763_v0, %v1683_v44  ;;  %2762 = vmatmul.f32.vlgmr.msra.gmra.mxu2 %v6786_v51  ;;  %v6873_v51 = vand.u32 4294901760, %v96_v29  ;;  %2941 = vmatpush.msrb.mxu0 %v2669_v52  ;;  %v6913_v0 = vsub.f32 %v217_v62, %v6893_v3 }
 0x1b6   :  { %3051 = vmatpush.msrb.mxu2 %v6864_v8  ;;  %3008 = vmatpush.msrb.mxu1 %v6712_v27  ;;  %v3151_v2 = vand.u32 4294901760, %v3150_v54  ;;  %v6896_v52 = vsub.f32 %v218_v59, %v6881_v7  ;;  %v2537_v27 = vsub.f32 %v6845_v20, %v2536_v61  ;;  %v8175_v46 = vand.u32 4294901760, %v6887_v30 }
 0x1b7   :  { %v1836_v56 = vpop.f32.mrf.mxu0  ;;  %2945 = vmatpush.msrb.mxu0 %v2675_v19  ;;  %v6905_v28 = vsub.f32 %v96_v29, %v6873_v51  ;;  %v6910_v19 = vand.u32 4294901760, %v216_v43  ;;  %v8172_v22 = vand.u32 4294901760, %v6913_v0  ;;  %v6930_v29 = vand.u32 4294901760, %v215_v15 }
 0x1b8   :  { %v1897_v42 = vpop.f32.mrf.mxu1  ;;  %v1966_v21 = vpop.f32.mrf.mxu2  ;;  %3152 = vmatpush.msrb.mxu3 %v3151_v2  ;;  %3053 = vmatpush.msrb.mxu2 %v6881_v7  ;;  %v8174_v58 = vand.u32 4294901760, %v6896_v52  ;;  %v3162_v44 = vsub.f32 %v6887_v30, %v8175_v46  ;;  %v1837_v57 = vadd.f32 %v1836_v56, %v6669_v25  ;;  %v2538_v33 = vand.u32 4294901760, %v2537_v27 }
 0x1b9   :  { %v1898_v13 = vadd.f32 %v1897_v42, %v1833_v16  ;;  %v2123_v38 = vpop.f32.mrf.mxu3  ;;  %3010 = vmatpush.msrb.mxu1 %v6722_v40  ;;  %v2544_v5 = vand.u32 4294901760, %v6905_v28  ;;  %3272 = vmatpush.msra.mxu0 %v6834_v47  ;;  %v3174_v59 = vsub.f32 %v6913_v0, %v8172_v22  ;;  %v6954_v2 = vsub.f32 %v215_v15, %v6930_v29 }
 0x1ba   :  { %2531 = vmatmul.f32.gmra.mxu0 %v2530_v41  ;;  %3158 = vmatpush.msrb.mxu3 %v3157_v9  ;;  %v3168_v23 = vsub.f32 %v6896_v52, %v8174_v58  ;;  %v3163_v40 = vand.u32 4294901760, %v3162_v44  ;;  %v110_v9 = vld [vmem:[#allocation3 + $0x138] sm:$0xff] }
 0x1bb   :  { %v1967_v32 = vadd.f32 %v1966_v21, %v1898_v13  ;;  %2680 = vmatmul.f32.vlgmr.msra.gmra.mxu1 %v6774_v18  ;;  %3055 = vmatpush.msrb.mxu2 %v6893_v3  ;;  %v6947_v13 = vsub.f32 %v103_v6, %v6919_v60  ;;  %v213_v21 = vld [vmem:[#allocation6 + $0x2b0] sm:$0xff]  ;;  %v8169_v15 = vand.u32 4294901760, %v6954_v2 }
 0x1bc   :  { %2842 = vmatmul.f32.gmra.mxu3 %v2528_v49  ;;  %v6933_v49 = vsub.f32 %v216_v43, %v6910_v19  ;;  %v3169_v41 = vand.u32 4294901760, %v3168_v23  ;;  %3360 = vmatpush.msra.mxu1 %v6827_v53  ;;  %v6956_v37 = vand.u32 4294901760, %v213_v21  ;;  %v212_v43 = vld [vmem:[#allocation6 + $0x2a8] sm:$0xff] }
 0x1bd   :  { %v6915_v12 = vadd.f32 %v2123_v38, %v1967_v32  ;;  %2767 = vmatmul.f32.gmra.mxu2 %v6811_v14  ;;  %v214_v14 = vld [vmem:[#allocation6 + $0x2b8] sm:$0xff]  ;;  %3164 = vmatpush.msrb.mxu3 %v3163_v40  ;;  %v3175_v38 = vand.u32 4294901760, %v3174_v59  ;;  %v2545_v32 = vsub.f32 %v6905_v28, %v2544_v5  ;;  %v6969_v23 = vand.u32 4294901760, %v212_v43 }
 0x1be   :  { %v8170_v42 = vand.u32 4294901760, %v6933_v49  ;;  %v6943_v45 = vand.u32 4294901760, %v214_v14  ;;  %3057 = vmatpush.msrb.mxu2 %v6910_v19  ;;  %3275 = vmatpush.msra.mxu0 %v6852_v1  ;;  %v8181_v40 = vand.u32 4294901760, %v6947_v13 }
 0x1bf   :  { %v1840_v63 = vpop.f32.mrf.mxu0  ;;  %3362 = vmatpush.msra.mxu1 %v6836_v48  ;;  %3170 = vmatpush.msrb.mxu3 %v3169_v41  ;;  %v3186_v41 = vsub.f32 %v6954_v2, %v8169_v15 }
 0x1c0   :  { %v1901_v16 = vpop.f32.mrf.mxu1  ;;  %v1974_v56 = vpop.f32.mrf.mxu2  ;;  %v3180_v62 = vsub.f32 %v6933_v49, %v8170_v42  ;;  %v6965_v27 = vsub.f32 %v214_v14, %v6943_v45  ;;  %3059 = vmatpush.msrb.mxu2 %v6930_v29  ;;  %3278 = vmatpush.msra.mxu0 %v6867_v10  ;;  %v2553_v22 = vsub.f32 %v6947_v13, %v8181_v40 }
 0x1c1   :  { %v1902_v25 = vadd.f32 %v1901_v16, %v1837_v57  ;;  %v2127_v54 = vpop.f32.mrf.mxu3  ;;  %v6972_v57 = vsub.f32 %v213_v21, %v6956_v37  ;;  %v211_v16 = vld [vmem:[#allocation6 + $0x2a0] sm:$0xff]  ;;  %3176 = vmatpush.msrb.mxu3 %v3175_v38  ;;  %v6992_v21 = vand.u32 4294901760, %v110_v9  ;;  %v210_v38 = vld [vmem:[#allocation6 + $0x298] sm:$0xff]  ;;  %3364 = vmatpush.msra.mxu1 %v6849_v34  ;;  %v3187_v15 = vand.u32 4294901760, %v3186_v41  ;;  %v209_v41 = vld [vmem:[#allocation6 + $0x290] sm:$0xff] }
 0x1c2   :  { %2539 = vmatmul.f32.gmra.mxu0 %v2538_v33  ;;  %v3181_v44 = vand.u32 4294901760, %v3180_v62  ;;  %v8171_v14 = vand.u32 4294901760, %v6965_v27  ;;  %3061 = vmatpush.msrb.mxu2 %v6943_v45 }
 0x1c3   :  { %v1975_v6 = vadd.f32 %v1974_v56, %v1902_v25  ;;  %2684 = vmatmul.f32.gmra.mxu1 %v6798_v26  ;;  %v8173_v59 = vand.u32 4294901760, %v6972_v57  ;;  %v6986_v25 = vand.u32 4294901760, %v211_v16  ;;  %v1841_v56 = vadd.f32 %v1840_v63, %v6703_v36  ;;  %3281 = vmatpush.msra.mxu0 %v6887_v30 }
 0x1c4   :  { %2848 = vmatmul.f32.gmra.mxu3 %v2536_v61  ;;  %v6989_v61 = vsub.f32 %v212_v43, %v6969_v23  ;;  %3063 = vmatpush.msrb.mxu2 %v6956_v37 }
 0x1c5   :  { %v6974_v33 = vadd.f32 %v2127_v54, %v1975_v6  ;;  %2772 = vmatmul.f32.gmra.mxu2 %v6845_v20  ;;  %v2546_v54 = vand.u32 4294901760, %v2545_v32  ;;  %v3192_v20 = vsub.f32 %v6965_v27, %v8171_v14  ;;  %3182 = vmatpush.msrb.mxu3 %v3181_v44  ;;  %v3198_v36 = vsub.f32 %v6972_v57, %v8173_v59 }
 0x1c6   :  { %v8177_v63 = vand.u32 4294901760, %v6989_v61  ;;  %v7003_v32 = vand.u32 4294901760, %v210_v38  ;;  %3366 = vmatpush.msra.mxu1 %v6864_v8  ;;  %3284 = vmatpush.msra.mxu0 %v6896_v52 }
 0x1c7   :  { %v1844_v62 = vpop.f32.mrf.mxu0  ;;  %v3193_v44 = vand.u32 4294901760, %v3192_v20  ;;  %3188 = vmatpush.msrb.mxu3 %v3187_v15  ;;  %v3199_v59 = vand.u32 4294901760, %v3198_v36  ;;  %v7022_v20 = vsub.f32 %v110_v9, %v6992_v21  ;;  %v208_v36 = vld [vmem:[#allocation6 + $0x288] sm:$0xff]  ;;  %3065 = vmatpush.msrb.mxu2 %v6969_v23  ;;  %v2554_v9 = vand.u32 4294901760, %v2553_v22 }
 0x1c8   :  { %v1905_v6 = vpop.f32.mrf.mxu1  ;;  %v1982_v42 = vpop.f32.mrf.mxu2  ;;  %v3204_v58 = vsub.f32 %v6989_v61, %v8177_v63  ;;  %v7025_v15 = vsub.f32 %v210_v38, %v7003_v32  ;;  %v7029_v11 = vand.u32 4294901760, %v208_v36  ;;  %3368 = vmatpush.msra.mxu1 %v6881_v7  ;;  %v1845_v22 = vadd.f32 %v1844_v62, %v6745_v17  ;;  %3287 = vmatpush.msra.mxu0 %v6913_v0 }
 0x1c9   :  { %v1906_v43 = vadd.f32 %v1905_v6, %v1841_v56  ;;  %v2131_v14 = vpop.f32.mrf.mxu3  ;;  %v7015_v56 = vsub.f32 %v211_v16, %v6986_v25  ;;  %v7017_v6 = vand.u32 4294901760, %v209_v41  ;;  %3194 = vmatpush.msrb.mxu3 %v3193_v44  ;;  %3067 = vmatpush.msrb.mxu2 %v6986_v25 }
 0x1ca   :  { %2547 = vmatmul.f32.gmra.mxu0 %v2546_v54  ;;  %v3205_v16 = vand.u32 4294901760, %v3204_v58  ;;  %v8182_v38 = vand.u32 4294901760, %v7025_v15  ;;  %3370 = vmatpush.msra.mxu1 %v6893_v3 }
 0x1cb   :  { %v1983_v46 = vadd.f32 %v1982_v42, %v1906_v43  ;;  %2688 = vmatmul.f32.gmra.mxu1 %v6823_v50  ;;  %v8179_v63 = vand.u32 4294901760, %v7015_v56  ;;  %v7032_v42 = vsub.f32 %v209_v41, %v7017_v6  ;;  %v207_v43 = vld [vmem:[#allocation6 + $0x280] sm:$0xff]  ;;  %3200 = vmatpush.msrb.mxu3 %v3199_v59  ;;  %v7052_v41 = vand.u32 4294901760, %v117_v35 }
 0x1cc   :  { %2854 = vmatmul.f32.gmra.mxu3 %v2544_v5  ;;  %3069 = vmatpush.msrb.mxu2 %v7003_v32 }
 0x1cd   :  { %v7034_v54 = vadd.f32 %v2131_v14, %v1983_v46  ;;  %2777 = vmatmul.f32.gmra.mxu2 %v6905_v28  ;;  %v3210_v58 = vsub.f32 %v7015_v56, %v8179_v63  ;;  %v8183_v44 = vand.u32 4294901760, %v7032_v42  ;;  %v7045_v46 = vand.u32 4294901760, %v207_v43  ;;  %3206 = vmatpush.msrb.mxu3 %v3205_v16 }
 0x1ce   :  { %v7048_v14 = vsub.f32 %v208_v36, %v7029_v11  ;;  %v3216_v28 = vsub.f32 %v7025_v15, %v8182_v38  ;;  %3290 = vmatpush.msra.mxu0 %v6933_v49  ;;  %3372 = vmatpush.msra.mxu1 %v6910_v19 }
 0x1cf   :  { %8290 = vst [vmem:[#allocation16_spill] sm:$0xff] %v7034_v54  ;;  %v1848_v59 = vpop.f32.mrf.mxu0  ;;  %v3211_v24 = vand.u32 4294901760, %v3210_v58  ;;  %v3222_v17 = vsub.f32 %v7032_v42, %v8183_v44  ;;  %v7064_v36 = vsub.f32 %v207_v43, %v7045_v46  ;;  %3071 = vmatpush.msrb.mxu2 %v7017_v6 }
 0x1d0   :  { %v1909_v63 = vpop.f32.mrf.mxu1  ;;  %v8184_v62 = vand.u32 4294901760, %v7048_v14  ;;  %v1990_v5 = vpop.f32.mrf.mxu2  ;;  %v3217_v54 = vand.u32 4294901760, %v3216_v28  ;;  %v7079_v28 = vsub.f32 %v117_v35, %v7052_v41  ;;  %3293 = vmatpush.msra.mxu0 %v6954_v2  ;;  %3374 = vmatpush.msra.mxu1 %v6930_v29 }
 0x1d1   :  { %v1910_v40 = vadd.f32 %v1909_v63, %v1845_v22  ;;  %v2135_v38 = vpop.f32.mrf.mxu3  ;;  %3212 = vmatpush.msrb.mxu3 %v3211_v24  ;;  %v3223_v16 = vand.u32 4294901760, %v3222_v17  ;;  %v3233_v44 = vand.u32 4294901760, %v7064_v36  ;;  %v8291_v63 = vand.u32 4294901760, %v7022_v20  ;;  %v124_v24 = vld [vmem:[#allocation3 + $0x1a8] sm:$0xff]  ;;  %3073 = vmatpush.msrb.mxu2 %v7029_v11 }
 0x1d2   :  { %v3228_v58 = vsub.f32 %v7048_v14, %v8184_v62  ;;  %2555 = vmatmul.f32.gmra.mxu0 %v2554_v9  ;;  %v8292_v9 = vand.u32 4294901760, %v6947_v13  ;;  %3376 = vmatpush.msra.mxu1 %v6943_v45 }
 0x1d3   :  { %v1991_v43 = vadd.f32 %v1990_v5, %v1910_v40  ;;  %2692 = vmatmul.f32.gmra.mxu1 %v6873_v51  ;;  %v2561_v22 = vsub.f32 %v7022_v20, %v8291_v63  ;;  %3218 = vmatpush.msrb.mxu3 %v3217_v54  ;;  %v3234_v62 = vsub.f32 %v7064_v36, %v3233_v44  ;;  %v2568_v54 = vand.u32 4294901760, %v7079_v28 }
 0x1d4   :  { %v3229_v17 = vand.u32 4294901760, %v3228_v58  ;;  %2860 = vmatmul.f32.gmra.mxu3 %v8292_v9  ;;  %v1849_v5 = vadd.f32 %v1848_v59, %v6768_v31  ;;  %v7093_v58 = vand.u32 4294901760, %v124_v24  ;;  %3296 = vmatpush.msra.mxu0 %v6965_v27  ;;  %v8293_v31 = vand.u32 4294901760, %v6834_v47 }
 0x1d5   :  { %v7085_v40 = vadd.f32 %v2135_v38, %v1991_v43  ;;  %2782 = vmatmul.f32.gmra.mxu2 %v6947_v13  ;;  %3224 = vmatpush.msrb.mxu3 %v3223_v16  ;;  %v3235_v35 = vand.u32 4294901760, %v3234_v62  ;;  %v2562_v63 = vand.u32 4294901760, %v2561_v22  ;;  %v2569_v62 = vsub.f32 %v7079_v28, %v2568_v54 }
 0x1d6   :  { %3075 = vmatpush.msrb.mxu2 %v7045_v46  ;;  %v7105_v22 = vsub.f32 %v124_v24, %v7093_v58  ;;  %3299 = vmatpush.msra.mxu0 %v6972_v57 }
 0x1d7   :  { %v1852_v38 = vpop.f32.mrf.mxu0  ;;  %3230 = vmatpush.msrb.mxu3 %v3229_v17  ;;  %v8294_v17 = vand.u32 4294901760, %v6852_v1  ;;  %v2570_v24 = vand.u32 4294901760, %v2569_v62  ;;  %v76_v1 = vld [vmem:[#allocation3 + $0x28] sm:$0xff]  ;;  %3378 = vmatpush.msra.mxu1 %v6956_v37  ;;  %v83_v62 = vld [vmem:[#allocation3 + $0x60] sm:$0xff] }
 0x1d8   :  { %v1913_v43 = vpop.f32.mrf.mxu1  ;;  %v1998_v13 = vpop.f32.mrf.mxu2  ;;  %3443 = vmatpush.msra.mxu2 %v8293_v31  ;;  %v1853_v47 = vadd.f32 %v1852_v38, %v6791_v4  ;;  %3302 = vmatpush.msra.mxu0 %v6989_v61  ;;  %v8297_v4 = vand.u32 4294901760, %v6887_v30  ;;  %v7127_v38 = vand.u32 4294901760, %v76_v1 }
 0x1d9   :  { %v1914_v9 = vadd.f32 %v1913_v43, %v1849_v5  ;;  %v2139_v16 = vpop.f32.mrf.mxu3  ;;  %3236 = vmatpush.msrb.mxu3 %v3235_v35  ;;  %v8295_v35 = vand.u32 4294901760, %v7022_v20  ;;  %v8296_v43 = vand.u32 4294901760, %v6867_v10  ;;  %3380 = vmatpush.msra.mxu1 %v6969_v23 }
 0x1da   :  { %2563 = vmatmul.f32.gmra.mxu0 %v2562_v63  ;;  %3447 = vmatpush.msra.mxu2 %v8294_v17  ;;  %v2576_v63 = vand.u32 4294901760, %v7105_v22 }
 0x1db   :  { %v1999_v59 = vadd.f32 %v1998_v13, %v1914_v9  ;;  %2696 = vmatmul.f32.gmra.mxu1 %v6919_v60  ;;  %3538 = vmatpush.msra.mxu3 %v6827_v53 }
 0x1dc   :  { %2866 = vmatmul.f32.gmra.mxu3 %v8295_v35  ;;  %3451 = vmatpush.msra.mxu2 %v8296_v43 }
 0x1dd   :  { %v7110_v5 = vadd.f32 %v2139_v16, %v1999_v59  ;;  %2787 = vmatmul.f32.gmra.mxu2 %v7022_v20  ;;  %3540 = vmatpush.msra.mxu3 %v6836_v48  ;;  %v8298_v16 = vand.u32 4294901760, %v6896_v52  ;;  %v8299_v52 = vand.u32 4294901760, %v6913_v0  ;;  %v7154_v0 = vand.u32 4294901760, %v83_v62 }
 0x1de   :  { %3455 = vmatpush.msra.mxu2 %v8297_v4  ;;  %3305 = vmatpush.msra.mxu0 %v7015_v56 }
 0x1df   :  { %v1856_v53 = vpop.f32.mrf.mxu0  ;;  %3542 = vmatpush.msra.mxu3 %v6849_v34  ;;  %v2577_v34 = vsub.f32 %v7105_v22, %v2576_v63  ;;  %3382 = vmatpush.msra.mxu1 %v6986_v25 }
 0x1e0   :  { %v1917_v9 = vpop.f32.mrf.mxu1  ;;  %v2006_v13 = vpop.f32.mrf.mxu2  ;;  %3459 = vmatpush.msra.mxu2 %v8298_v16  ;;  %v1857_v31 = vadd.f32 %v1856_v53, %v6816_v39  ;;  %3308 = vmatpush.msra.mxu0 %v7025_v15 }
 0x1e1   :  { %v1918_v20 = vadd.f32 %v1917_v9, %v1853_v47  ;;  %v2143_v48 = vpop.f32.mrf.mxu3  ;;  %3544 = vmatpush.msra.mxu3 %v6864_v8  ;;  %v7141_v8 = vsub.f32 %v76_v1, %v7127_v38  ;;  %v2578_v59 = vand.u32 4294901760, %v2577_v34  ;;  %3384 = vmatpush.msra.mxu1 %v7003_v32  ;;  %v90_v1 = vld [vmem:[#allocation3 + $0x98] sm:$0xff] }
 0x1e2   :  { %2571 = vmatmul.f32.gmra.mxu0 %v2570_v24  ;;  %3463 = vmatpush.msra.mxu2 %v8299_v52  ;;  %v7170_v24 = vsub.f32 %v83_v62, %v7154_v0  ;;  %v8306_v62 = vand.u32 4294901760, %v7025_v15 }
 0x1e3   :  { %v2007_v10 = vadd.f32 %v2006_v13, %v1918_v20  ;;  %2700 = vmatmul.f32.gmra.mxu1 %v6992_v21  ;;  %3546 = vmatpush.msra.mxu3 %v6881_v7  ;;  %v3078_v39 = vand.u32 4294901760, %v7141_v8  ;;  %v8303_v20 = vand.u32 4294901760, %v6972_v57  ;;  %v7182_v13 = vand.u32 4294901760, %v90_v1 }
 0x1e4   :  { %2872 = vmatmul.f32.gmra.mxu3 %v2568_v54  ;;  %3311 = vmatpush.msra.mxu0 %v7032_v42 }
 0x1e5   :  { %v7136_v30 = vadd.f32 %v2143_v48, %v2007_v10  ;;  %2792 = vmatmul.f32.gmra.mxu2 %v7079_v28  ;;  %3548 = vmatpush.msra.mxu3 %v6893_v3  ;;  %v8300_v3 = vand.u32 4294901760, %v6933_v49  ;;  %v7198_v48 = vsub.f32 %v90_v1, %v7182_v13  ;;  %v8305_v10 = vand.u32 4294901760, %v7015_v56 }
 0x1e6   :  { %3386 = vmatpush.msra.mxu1 %v7017_v6  ;;  %3314 = vmatpush.msra.mxu0 %v7048_v14 }
 0x1e7   :  { %v1860_v7 = vpop.f32.mrf.mxu0  ;;  %3550 = vmatpush.msra.mxu3 %v6910_v19  ;;  %3467 = vmatpush.msra.mxu2 %v8300_v3  ;;  %v8301_v19 = vand.u32 4294901760, %v6954_v2 }
 0x1e8   :  { %v1921_v54 = vpop.f32.mrf.mxu1  ;;  %v2014_v17 = vpop.f32.mrf.mxu2  ;;  %v1861_v2 = vadd.f32 %v1860_v7, %v6856_v55  ;;  %3317 = vmatpush.msra.mxu0 %v7064_v36  ;;  %3388 = vmatpush.msra.mxu1 %v7029_v11  ;;  %v3086_v55 = vand.u32 4294901760, %v7170_v24  ;;  %v3094_v7 = vand.u32 4294901760, %v7198_v48  ;;  %v8309_v36 = vld [vmem:[#allocation16_spill] sm:$0xff] }
 0x1e9   :  { %v1922_v28 = vadd.f32 %v1921_v54, %v1857_v31  ;;  %v2147_v35 = vpop.f32.mrf.mxu3  ;;  %3552 = vmatpush.msra.mxu3 %v6930_v29  ;;  %3471 = vmatpush.msra.mxu2 %v8301_v19  ;;  %v3079_v29 = vsub.f32 %v7141_v8, %v3078_v39 }
 0x1ea   :  { %2579 = vmatmul.f32.gmra.mxu0 %v2578_v59  ;;  %3390 = vmatpush.msra.mxu1 %v7045_v46  ;;  %v3095_v15 = vsub.f32 %v7198_v48, %v3094_v7 }
 0x1eb   :  { %v2015_v47 = vadd.f32 %v2014_v17, %v1922_v28  ;;  %2704 = vmatmul.f32.gmra.mxu1 %v7052_v41  ;;  %3554 = vmatpush.msra.mxu3 %v6943_v45  ;;  %v8302_v45 = vand.u32 4294901760, %v6965_v27  ;;  %v104_v28 = vld [vmem:[#allocation3 + $0x108] sm:$0xff] }
 0x1ec   :  { %2878 = vmatmul.f32.gmra.mxu3 %v2576_v63  ;;  %v3096_v19 = vand.u32 4294901760, %v3095_v15 }
 0x1ed   :  { %v7162_v49 = vadd.f32 %v2147_v35, %v2015_v47  ;;  %2797 = vmatmul.f32.gmra.mxu2 %v7105_v22  ;;  %3556 = vmatpush.msra.mxu3 %v6956_v37  ;;  %v3080_v37 = vand.u32 4294901760, %v3079_v29 }
 0x1ee   :  { %3475 = vmatpush.msra.mxu2 %v8302_v45 }
 0x1ef   :  { %v2205_v43 = vpop.f32.mrf.mxu0  ;;  %3558 = vmatpush.msra.mxu3 %v6969_v23  ;;  %v8304_v23 = vand.u32 4294901760, %v6989_v61  ;;  %v97_v61 = vld [vmem:[#allocation3 + $0xd0] sm:$0xff] }
 0x1f0   :  { %v1925_v63 = vpop.f32.mrf.mxu1  ;;  %v2022_v53 = vpop.f32.mrf.mxu2  ;;  %3479 = vmatpush.msra.mxu2 %v8303_v20  ;;  %v2206_v4 = vadd.f32 %v2205_v43, %v6915_v12 }
 0x1f1   :  { %v1926_v22 = vadd.f32 %v1925_v63, %v1861_v2  ;;  %v2151_v9 = vpop.f32.mrf.mxu3  ;;  %3560 = vmatpush.msra.mxu3 %v6986_v25  ;;  %v3087_v25 = vsub.f32 %v7170_v24, %v3086_v55  ;;  %v7230_v2 = vand.u32 4294901760, %v104_v28  ;;  %v111_v63 = vld [vmem:[#allocation3 + $0x140] sm:$0xff] }
 0x1f2   :  { %2947 = vmatmul.f32.vlgmr.msrb.gmra.mxu0 %v6774_v18  ;;  %3483 = vmatpush.msra.mxu2 %v8304_v23 }
 0x1f3   :  { %v2023_v27 = vadd.f32 %v2022_v53, %v1926_v22  ;;  %2708 = vmatmul.f32.gmra.mxu1 %v7093_v58  ;;  %3562 = vmatpush.msra.mxu3 %v7003_v32  ;;  %v3088_v52 = vand.u32 4294901760, %v3087_v25 }
 0x1f4   :  { %3238 = vmatmul.f32.vlgmr.msrb.gmra.mxu3 %v7127_v38  ;;  %3487 = vmatpush.msra.mxu2 %v8305_v10 }
 0x1f5   :  { %v7191_v57 = vadd.f32 %v2151_v9, %v2023_v27  ;;  %3081 = vmatmul.f32.vlgmr.msrb.gmra.mxu2 %v3080_v37  ;;  %3564 = vmatpush.msra.mxu3 %v7017_v6  ;;  %v7208_v6 = vand.u32 4294901760, %v97_v61  ;;  %v7245_v27 = vand.u32 4294901760, %v111_v63 }
 0x1f6   :  { %3491 = vmatpush.msra.mxu2 %v8306_v62 }
 0x1f7   :  { %v2210_v32 = vpop.f32.mrf.mxu0  ;;  %3566 = vmatpush.msra.mxu3 %v7029_v11  ;;  %v8307_v11 = vand.u32 4294901760, %v7032_v42  ;;  %v7222_v54 = vsub.f32 %v97_v61, %v7208_v6  ;;  %v7256_v61 = vsub.f32 %v111_v63, %v7245_v27 }
 0x1f8   :  { %v2279_v34 = vpop.f32.mrf.mxu1  ;;  %v2390_v31 = vpop.f32.mrf.mxu2 }
 0x1f9   :  { %v2280_v16 = vadd.f32 %v2279_v34, %v2206_v4  ;;  %v2455_v59 = vpop.f32.mrf.mxu3  ;;  %3568 = vmatpush.msra.mxu3 %v7045_v46  ;;  %3495 = vmatpush.msra.mxu2 %v8307_v11  ;;  %v2211_v46 = vadd.f32 %v2210_v32, %v6974_v33  ;;  %v3102_v29 = vand.u32 4294901760, %v7222_v54  ;;  %v118_v32 = vld [vmem:[#allocation3 + $0x178] sm:$0xff] }
 0x1fa   :  { %2951 = vmatmul.f32.gmra.mxu0 %v6798_v26 }
 0x1fb   :  { %v2391_v12 = vadd.f32 %v2390_v31, %v2280_v16  ;;  %3012 = vmatmul.f32.vlgmr.msrb.gmra.mxu1 %v6774_v18  ;;  %v8308_v18 = vand.u32 4294901760, %v7048_v14  ;;  %v3103_v14 = vsub.f32 %v7222_v54, %v3102_v29 }
 0x1fc   :  { %3242 = vmatmul.f32.gmra.mxu3 %v7154_v0 }
 0x1fd   :  { %v7215_v56 = vadd.f32 %v2455_v59, %v2391_v12  ;;  %3089 = vmatmul.f32.gmra.mxu2 %v3088_v52  ;;  %v3104_v20 = vand.u32 4294901760, %v3103_v14  ;;  %v3118_v52 = vand.u32 4294901760, %v7256_v61  ;;  %v7260_v12 = vand.u32 4294901760, %v118_v32 }
 0x1fe   :  { %3499 = vmatpush.msra.mxu2 %v8308_v18  ;;  %v125_v18 = vld [vmem:[#allocation3 + $0x1b0] sm:$0xff] }
 0x1ff   :  { %v2215_v42 = vpop.f32.mrf.mxu0  ;;  %v7275_v14 = vand.u32 4294901760, %v125_v18 }
 0x200   :  { %v2285_v17 = vpop.f32.mrf.mxu1  ;;  %v2394_v3 = vpop.f32.mrf.mxu2  ;;  %3503 = vmatpush.msra.mxu2 %v3233_v44  ;;  %v7241_v44 = vsub.f32 %v104_v28, %v7230_v2  ;;  %v2216_v45 = vadd.f32 %v2215_v42, %v8309_v36 }
 0x201   :  { %v2286_v35 = vadd.f32 %v2285_v17, %v2211_v46  ;;  %v2459_v47 = vpop.f32.mrf.mxu3  ;;  %v7271_v46 = vsub.f32 %v118_v32, %v7260_v12 }
 0x202   :  { %2955 = vmatmul.f32.gmra.mxu0 %v6823_v50  ;;  %v3110_v37 = vand.u32 4294901760, %v7241_v44 }
 0x203   :  { %v2395_v1 = vadd.f32 %v2394_v3, %v2286_v35  ;;  %3016 = vmatmul.f32.gmra.mxu1 %v6798_v26 }
 0x204   :  { %3246 = vmatmul.f32.gmra.mxu3 %v7182_v13  ;;  %v3111_v4 = vsub.f32 %v7241_v44, %v3110_v37 }
 0x205   :  { %v7234_v33 = vadd.f32 %v2459_v47, %v2395_v1  ;;  %3097 = vmatmul.f32.gmra.mxu2 %v3096_v19  ;;  %v224_v47 = vld [vmem:[#allocation6 + $0x308] sm:$0xff]  ;;  %v3126_v1 = vand.u32 4294901760, %v7271_v46 }
 0x206   :  { %v3112_v62 = vand.u32 4294901760, %v3111_v4  ;;  %v7277_v36 = vand.u32 4294901760, %v224_v47 }
 0x207   :  { %v2220_v43 = vpop.f32.mrf.mxu0 }
 0x208   :  { %v2291_v22 = vpop.f32.mrf.mxu1  ;;  %v2398_v9 = vpop.f32.mrf.mxu2  ;;  %v2221_v10 = vadd.f32 %v2220_v43, %v7085_v40  ;;  %v3119_v40 = vsub.f32 %v7256_v61, %v3118_v52  ;;  %3617 = vmatpush.msrb.mxu0 %v7277_v36  ;;  %3820 = vmatpush.msrb.mxu3 %v7277_v36  ;;  %v3127_v43 = vsub.f32 %v7271_v46, %v3126_v1 }
 0x209   :  { %v2292_v53 = vadd.f32 %v2291_v22, %v2216_v45  ;;  %v2463_v26 = vpop.f32.mrf.mxu3  ;;  %v7293_v22 = vsub.f32 %v125_v18, %v7275_v14 }
 0x20a   :  { %2959 = vmatmul.f32.gmra.mxu0 %v6873_v51  ;;  %v3120_v19 = vand.u32 4294901760, %v3119_v40  ;;  %v3128_v32 = vand.u32 4294901760, %v3127_v43 }
 0x20b   :  { %v2399_v23 = vadd.f32 %v2398_v9, %v2292_v53  ;;  %3020 = vmatmul.f32.gmra.mxu1 %v6823_v50 }
 0x20c   :  { %3250 = vmatmul.f32.gmra.mxu3 %v7208_v6 }
 0x20d   :  { %v7249_v25 = vadd.f32 %v2463_v26, %v2399_v23  ;;  %3105 = vmatmul.f32.gmra.mxu2 %v3104_v20 }
 0x20f   :  { %v2225_v34 = vpop.f32.mrf.mxu0 }
 0x210   :  { %v2297_v16 = vpop.f32.mrf.mxu1  ;;  %v2402_v59 = vpop.f32.mrf.mxu2  ;;  %v2226_v28 = vadd.f32 %v2225_v34, %v7110_v5  ;;  %v7283_v5 = vsub.f32 %v224_v47, %v7277_v36  ;;  %v3134_v34 = vand.u32 4294901760, %v7293_v22 }
 0x211   :  { %v2298_v31 = vadd.f32 %v2297_v16, %v2221_v10  ;;  %v2467_v50 = vpop.f32.mrf.mxu3 }
 0x212   :  { %2963 = vmatmul.f32.gmra.mxu0 %v6919_v60  ;;  %3760 = vmatpush.msrb.mxu2 %v7283_v5 }
 0x213   :  { %v2403_v11 = vadd.f32 %v2402_v59, %v2298_v31  ;;  %3024 = vmatmul.f32.gmra.mxu1 %v6873_v51  ;;  %v3135_v59 = vsub.f32 %v7293_v22, %v3134_v34 }
 0x214   :  { %3254 = vmatmul.f32.gmra.mxu3 %v7230_v2 }
 0x215   :  { %v7264_v15 = vadd.f32 %v2467_v50, %v2403_v11  ;;  %3113 = vmatmul.f32.gmra.mxu2 %v3112_v62 }
 0x217   :  { %v2230_v42 = vpop.f32.mrf.mxu0 }
 0x218   :  { %v2303_v17 = vpop.f32.mrf.mxu1  ;;  %v2406_v3 = vpop.f32.mrf.mxu2  ;;  %v2231_v53 = vadd.f32 %v2230_v42, %v7136_v30  ;;  %v3136_v42 = vand.u32 4294901760, %v3135_v59 }
 0x219   :  { %v2304_v35 = vadd.f32 %v2303_v17, %v2226_v28  ;;  %v2471_v51 = vpop.f32.mrf.mxu3 }
 0x21a   :  { %2967 = vmatmul.f32.gmra.mxu0 %v6992_v21 }
 0x21b   :  { %v2407_v45 = vadd.f32 %v2406_v3, %v2304_v35  ;;  %3028 = vmatmul.f32.gmra.mxu1 %v6919_v60  ;;  %v3701_v60 = vand.u32 4294901760, %v7283_v5 }
 0x21c   :  { %3258 = vmatmul.f32.gmra.mxu3 %v7245_v27 }
 0x21d   :  { %v7286_v63 = vadd.f32 %v2471_v51, %v2407_v45  ;;  %3121 = vmatmul.f32.gmra.mxu2 %v3120_v19  ;;  %v3702_v20 = vsub.f32 %v7283_v5, %v3701_v60 }
 0x21f   :  { %v2235_v9 = vpop.f32.mrf.mxu0  ;;  %v3703_v16 = vand.u32 4294901760, %v3702_v20  ;;  %v223_v20 = vld [vmem:[#allocation6 + $0x300] sm:$0xff] }
 0x220   :  { %v2309_v26 = vpop.f32.mrf.mxu1  ;;  %v2410_v4 = vpop.f32.mrf.mxu2  ;;  %v2236_v50 = vadd.f32 %v2235_v9, %v7162_v49 }
 0x221   :  { %v2310_v23 = vadd.f32 %v2309_v26, %v2231_v53  ;;  %v2475_v10 = vpop.f32.mrf.mxu3  ;;  %3704 = vmatpush.msrb.mxu1 %v3703_v16 }
 0x222   :  { %2971 = vmatmul.f32.gmra.mxu0 %v7052_v41 }
 0x223   :  { %v2411_v31 = vadd.f32 %v2410_v4, %v2310_v23  ;;  %3032 = vmatmul.f32.gmra.mxu1 %v6992_v21  ;;  %v3618_v23 = vand.u32 4294901760, %v223_v20 }
 0x224   :  { %3262 = vmatmul.f32.gmra.mxu3 %v7260_v12 }
 0x225   :  { %v7302_v30 = vadd.f32 %v2475_v10, %v2411_v31  ;;  %3129 = vmatmul.f32.gmra.mxu2 %v3128_v32  ;;  %3619 = vmatpush.msrb.mxu0 %v3618_v23 }
 0x226   :  { %3822 = vmatpush.msrb.mxu3 %v3618_v23 }
 0x227   :  { %v2240_v62 = vpop.f32.mrf.mxu0 }
 0x228   :  { %v2315_v11 = vpop.f32.mrf.mxu1  ;;  %v2414_v28 = vpop.f32.mrf.mxu2  ;;  %v2241_v35 = vadd.f32 %v2240_v62, %v7191_v57 }
 0x229   :  { %v2316_v40 = vadd.f32 %v2315_v11, %v2236_v50  ;;  %v2479_v18 = vpop.f32.mrf.mxu3 }
 0x22a   :  { %2975 = vmatmul.f32.gmra.mxu0 %v7093_v58 }
 0x22b   :  { %v2415_v17 = vadd.f32 %v2414_v28, %v2316_v40  ;;  %3036 = vmatmul.f32.gmra.mxu1 %v7052_v41 }
 0x22c   :  { %3266 = vmatmul.f32.gmra.mxu3 %v7275_v14 }
 0x22d   :  { %v7311_v21 = vadd.f32 %v2479_v18, %v2415_v17  ;;  %3137 = vmatmul.f32.gmra.mxu2 %v3136_v42 }
 0x22f   :  { %v2524_v49 = vpop.f32.mrf.mxu0 }
 0x230   :  { %v2321_v3 = vpop.f32.mrf.mxu1  ;;  %v2418_v47 = vpop.f32.mrf.mxu2  ;;  %v2525_v41 = vadd.f32 %v2524_v49, %v7215_v56 }
 0x231   :  { %v2322_v51 = vadd.f32 %v2321_v3, %v2241_v35  ;;  %v2483_v19 = vpop.f32.mrf.mxu3 }
 0x232   :  { %3320 = vmatmul.f32.vlgmr.msra.gmra.mxu0 %v7141_v8 }
 0x233   :  { %v2419_v45 = vadd.f32 %v2418_v47, %v2322_v51  ;;  %3040 = vmatmul.f32.gmra.mxu1 %v7093_v58  ;;  %v3706_v58 = vsub.f32 %v223_v20, %v3618_v23  ;;  %3889 = vmatpush.msra.mxu0 %v3701_v60 }
 0x234   :  { %3570 = vmatmul.f32.vlgmr.msra.gmra.mxu3 %v7127_v38 }
 0x235   :  { %v7317_v5 = vadd.f32 %v2483_v19, %v2419_v45  ;;  %3505 = vmatmul.f32.vlgmr.msra.gmra.mxu2 %v7127_v38  ;;  %v3707_v38 = vand.u32 4294901760, %v3706_v58  ;;  %v77_v19 = vld [vmem:[#allocation3 + $0x30] sm:$0xff] }
 0x236   :  { %3763 = vmatpush.msrb.mxu2 %v3706_v58 }
 0x237   :  { %v2532_v43 = vpop.f32.mrf.mxu0  ;;  %v3708_v31 = vsub.f32 %v3706_v58, %v3707_v38  ;;  %3893 = vmatpush.msra.mxu0 %v3707_v38 }
 0x238   :  { %v2681_v57 = vpop.f32.mrf.mxu1  ;;  %v2763_v9 = vpop.f32.mrf.mxu2  ;;  %v2533_v56 = vadd.f32 %v2532_v43, %v7234_v33 }
 0x239   :  { %v2682_v53 = vadd.f32 %v2681_v57, %v2525_v41  ;;  %v2837_v26 = vpop.f32.mrf.mxu3  ;;  %v3709_v50 = vand.u32 4294901760, %v3708_v31 }
 0x23a   :  { %3325 = vmatmul.f32.gmra.mxu0 %v7170_v24 }
 0x23b   :  { %v2764_v4 = vadd.f32 %v2763_v9, %v2682_v53  ;;  %3394 = vmatmul.f32.vlgmr.msra.gmra.mxu1 %v3078_v39 }
 0x23c   :  { %3574 = vmatmul.f32.gmra.mxu3 %v7154_v0  ;;  %3710 = vmatpush.msrb.mxu1 %v3709_v50 }
 0x23d   :  { %v7325_v10 = vadd.f32 %v2837_v26, %v2764_v4  ;;  %3509 = vmatmul.f32.gmra.mxu2 %v7154_v0  ;;  %v84_v26 = vld [vmem:[#allocation3 + $0x68] sm:$0xff] }
 0x23e   :  { %3942 = vmatpush.msra.mxu1 %v7277_v36 }
 0x23f   :  { %v2540_v32 = vpop.f32.mrf.mxu0 }
 0x240   :  { %v2685_v16 = vpop.f32.mrf.mxu1  ;;  %v2768_v39 = vpop.f32.mrf.mxu2  ;;  %v2541_v33 = vadd.f32 %v2540_v32, %v7249_v25  ;;  %3944 = vmatpush.msra.mxu1 %v3618_v23  ;;  %v91_v32 = vld [vmem:[#allocation3 + $0xa0] sm:$0xff] }
 0x241   :  { %v2686_v8 = vadd.f32 %v2685_v16, %v2533_v56  ;;  %v2843_v59 = vpop.f32.mrf.mxu3 }
 0x242   :  { %3330 = vmatmul.f32.gmra.mxu0 %v7198_v48 }
 0x243   :  { %v2769_v62 = vadd.f32 %v2768_v39, %v2686_v8  ;;  %3400 = vmatmul.f32.gmra.mxu1 %v3086_v55 }
 0x244   :  { %3578 = vmatmul.f32.gmra.mxu3 %v7182_v13 }
 0x245   :  { %v7333_v0 = vadd.f32 %v2843_v59, %v2769_v62  ;;  %3513 = vmatmul.f32.gmra.mxu2 %v7182_v13 }
 0x247   :  { %v2548_v60 = vpop.f32.mrf.mxu0 }
 0x248   :  { %v2689_v11 = vpop.f32.mrf.mxu1  ;;  %v2773_v28 = vpop.f32.mrf.mxu2  ;;  %v2549_v55 = vadd.f32 %v2548_v60, %v7264_v15 }
 0x249   :  { %v2690_v40 = vadd.f32 %v2689_v11, %v2541_v33  ;;  %v2849_v18 = vpop.f32.mrf.mxu3  ;;  %v98_v11 = vld [vmem:[#allocation3 + $0xd8] sm:$0xff] }
 0x24a   :  { %3335 = vmatmul.f32.gmra.mxu0 %v7222_v54  ;;  %v231_v54 = vsel %vm229_vm0, %v77_v19, 0  ;;  %v112_v19 = vld [vmem:[#allocation3 + $0x148] sm:$0xff] }
 0x24b   :  { %v2774_v42 = vadd.f32 %v2773_v28, %v2690_v40  ;;  %3406 = vmatmul.f32.gmra.mxu1 %v3094_v7 }
 0x24c   :  { %3582 = vmatmul.f32.gmra.mxu3 %v7208_v6 }
 0x24d   :  { %v7342_v24 = vadd.f32 %v2849_v18, %v2774_v42  ;;  %3517 = vmatmul.f32.gmra.mxu2 %v7208_v6 }
 0x24f   :  { %v2556_v13 = vpop.f32.mrf.mxu0 }
 0x250   :  { %v2693_v25 = vpop.f32.mrf.mxu1  ;;  %v2778_v17 = vpop.f32.mrf.mxu2  ;;  %v2557_v7 = vadd.f32 %v2556_v13, %v7286_v63  ;;  %v7364_v63 = vand.u32 4294901760, %v231_v54 }
 0x251   :  { %v2694_v36 = vadd.f32 %v2693_v25, %v2549_v55  ;;  %v2855_v35 = vpop.f32.mrf.mxu3 }
 0x252   :  { %3340 = vmatmul.f32.gmra.mxu0 %v7241_v44 }
 0x253   :  { %v2779_v3 = vadd.f32 %v2778_v17, %v2694_v36  ;;  %3412 = vmatmul.f32.gmra.mxu1 %v3102_v29 }
 0x254   :  { %3586 = vmatmul.f32.gmra.mxu3 %v7230_v2 }
 0x255   :  { %v7350_v48 = vadd.f32 %v2855_v35, %v2779_v3  ;;  %3521 = vmatmul.f32.gmra.mxu2 %v7230_v2 }
 0x257   :  { %v2564_v6 = vpop.f32.mrf.mxu0 }
 0x258   :  { %v2697_v15 = vpop.f32.mrf.mxu1  ;;  %v2783_v51 = vpop.f32.mrf.mxu2  ;;  %v2565_v2 = vadd.f32 %v2564_v6, %v7302_v30 }
 0x259   :  { %v2698_v49 = vadd.f32 %v2697_v15, %v2557_v7  ;;  %v2861_v47 = vpop.f32.mrf.mxu3 }
 0x25a   :  { %3345 = vmatmul.f32.gmra.mxu0 %v7256_v61 }
 0x25b   :  { %v2784_v45 = vadd.f32 %v2783_v51, %v2698_v49  ;;  %3418 = vmatmul.f32.gmra.mxu1 %v3110_v37  ;;  %v3621_v37 = vsub.f32 %v231_v54, %v7364_v63 }
 0x25c   :  { %3590 = vmatmul.f32.gmra.mxu3 %v7245_v27 }
 0x25d   :  { %v7359_v29 = vadd.f32 %v2861_v47, %v2784_v45  ;;  %3525 = vmatmul.f32.gmra.mxu2 %v7245_v27  ;;  %v234_v27 = vsel %vm229_vm0, %v84_v26, 0  ;;  %v3622_v23 = vand.u32 4294901760, %v3621_v37 }
 0x25e   :  { %v7376_v4 = vand.u32 4294901760, %v234_v27 }
 0x25f   :  { %8310 = vst [vmem:[#allocation17_spill] sm:$0xff] %v7359_v29  ;;  %v2572_v41 = vpop.f32.mrf.mxu0  ;;  %v3623_v31 = vsub.f32 %v3621_v37, %v3622_v23  ;;  %v4093_v29 = vld [vmem:[#allocation8 + $0x18] sm:$0xff] }
 0x260   :  { %v2701_v43 = vpop.f32.mrf.mxu1  ;;  %v2788_v53 = vpop.f32.mrf.mxu2  ;;  %v2573_v30 = vadd.f32 %v2572_v41, %v7311_v21  ;;  %v237_v21 = vsel %vm229_vm0, %v91_v32, 0  ;;  %v246_v41 = vsel %vm229_vm0, %v112_v19, 0 }
 0x261   :  { %v2702_v57 = vadd.f32 %v2701_v43, %v2565_v2  ;;  %v2867_v9 = vpop.f32.mrf.mxu3  ;;  %v3624_v59 = vand.u32 4294901760, %v3623_v31  ;;  %v7388_v62 = vand.u32 4294901760, %v237_v21 }
 0x262   :  { %3350 = vmatmul.f32.gmra.mxu0 %v7271_v46 }
 0x263   :  { %v2789_v44 = vadd.f32 %v2788_v53, %v2702_v57  ;;  %3424 = vmatmul.f32.gmra.mxu1 %v3118_v52  ;;  %v7420_v53 = vand.u32 4294901760, %v246_v41 }
 0x264   :  { %3594 = vmatmul.f32.gmra.mxu3 %v7260_v12 }
 0x265   :  { %v7371_v20 = vadd.f32 %v2867_v9, %v2789_v44  ;;  %3529 = vmatmul.f32.gmra.mxu2 %v7260_v12  ;;  %v3629_v12 = vsub.f32 %v234_v27, %v7376_v4 }
 0x267   :  { %8311 = vst [vmem:[#allocation18_spill] sm:$0xff] %v7371_v20  ;;  %v2580_v58 = vpop.f32.mrf.mxu0  ;;  %v3630_v50 = vand.u32 4294901760, %v3629_v12 }
 0x268   :  { %v2705_v38 = vpop.f32.mrf.mxu1  ;;  %v2793_v61 = vpop.f32.mrf.mxu2  ;;  %v2581_v39 = vadd.f32 %v2580_v58, %v7317_v5  ;;  %v240_v5 = vsel %vm229_vm0, %v98_v11, 0 }
 0x269   :  { %v2706_v56 = vadd.f32 %v2705_v38, %v2573_v30  ;;  %v2873_v52 = vpop.f32.mrf.mxu3  ;;  %v3631_v18 = vsub.f32 %v3629_v12, %v3630_v50  ;;  %v7398_v25 = vand.u32 4294901760, %v240_v5  ;;  %v3661_v30 = vsub.f32 %v246_v41, %v7420_v53 }
 0x26a   :  { %3355 = vmatmul.f32.gmra.mxu0 %v7293_v22  ;;  %v105_v22 = vld [vmem:[#allocation3 + $0x110] sm:$0xff] }
 0x26b   :  { %v2794_v16 = vadd.f32 %v2793_v61, %v2706_v56  ;;  %3430 = vmatmul.f32.gmra.mxu1 %v3126_v1  ;;  %v3632_v55 = vand.u32 4294901760, %v3631_v18  ;;  %v3645_v35 = vsub.f32 %v240_v5, %v7398_v25  ;;  %v243_v3 = vsel %vm229_vm0, %v105_v22, 0 }
 0x26c   :  { %3598 = vmatmul.f32.gmra.mxu3 %v7275_v14  ;;  %v7409_v49 = vand.u32 4294901760, %v243_v3  ;;  %v3662_v56 = vand.u32 4294901760, %v3661_v30 }
 0x26d   :  { %v7383_v8 = vadd.f32 %v2873_v52, %v2794_v16  ;;  %3533 = vmatmul.f32.gmra.mxu2 %v7275_v14  ;;  %v3637_v14 = vsub.f32 %v237_v21, %v7388_v62  ;;  %v3646_v15 = vand.u32 4294901760, %v3645_v35  ;;  %v126_v16 = vld [vmem:[#allocation3 + $0x1b8] sm:$0xff] }
 0x26e   :  { %v3653_v2 = vsub.f32 %v243_v3, %v7409_v49 }
 0x26f   :  { %8312 = vst [vmem:[#allocation16_spill] sm:$0xff] %v7383_v8  ;;  %v7390_v46 = vpop.f32.mrf.mxu0  ;;  %v3638_v13 = vand.u32 4294901760, %v3637_v14  ;;  %v3647_v54 = vsub.f32 %v3645_v35, %v3646_v15 }
 0x270   :  { %v2709_v33 = vpop.f32.mrf.mxu1  ;;  %v2798_v60 = vpop.f32.mrf.mxu2  ;;  %v3654_v57 = vand.u32 4294901760, %v3653_v2 }
 0x271   :  { %v2710_v1 = vadd.f32 %v2709_v33, %v2581_v39  ;;  %v2879_v40 = vpop.f32.mrf.mxu3  ;;  %v3648_v43 = vand.u32 4294901760, %v3647_v54  ;;  %v252_v39 = vsel %vm229_vm0, %v126_v16, 0 }
 0x272   :  { %3625 = vmatmul.f32.vlgmr.msrb.gmra.mxu0 %v3624_v59  ;;  %v3655_v27 = vsub.f32 %v3653_v2, %v3654_v57 }
 0x273   :  { %v2799_v28 = vadd.f32 %v2798_v60, %v2710_v1  ;;  %3436 = vmatmul.f32.gmra.mxu1 %v3134_v34  ;;  %v3639_v34 = vsub.f32 %v3637_v14, %v3638_v13  ;;  %v7446_v1 = vand.u32 4294901760, %v252_v39 }
 0x274   :  { %3826 = vmatmul.f32.vlgmr.msrb.gmra.mxu3 %v3622_v23  ;;  %v3656_v38 = vand.u32 4294901760, %v3655_v27 }
 0x275   :  { %v7396_v42 = vadd.f32 %v2879_v40, %v2799_v28  ;;  %3766 = vmatmul.f32.vlgmr.msrb.gmra.mxu2 %v3621_v37  ;;  %v3640_v6 = vand.u32 4294901760, %v3639_v34  ;;  %v119_v37 = vld [vmem:[#allocation3 + $0x180] sm:$0xff]  ;;  %v3677_v28 = vsub.f32 %v252_v39, %v7446_v1 }
 0x276   :  { %v249_v23 = vsel %vm229_vm0, %v119_v37, 0 }
 0x277   :  { %8313 = vst [vmem:[#allocation19_spill] sm:$0xff] %v7396_v42  ;;  %v7400_v36 = vpop.f32.mrf.mxu0  ;;  %v7433_v61 = vand.u32 4294901760, %v249_v23  ;;  %v3678_v5 = vand.u32 4294901760, %v3677_v28  ;;  %v4103_v42 = vld [vmem:[#allocation8 + $0x68] sm:$0xff] }
 0x278   :  { %v7402_v17 = vpop.f32.mrf.mxu1  ;;  %v7407_v7 = vpop.f32.mrf.mxu2 }
 0x279   :  { %v7415_v45 = vpop.f32.mrf.mxu3  ;;  %v3669_v21 = vsub.f32 %v249_v23, %v7433_v61  ;;  %v3679_v34 = vsub.f32 %v3677_v28, %v3678_v5 }
 0x27a   :  { %3633 = vmatmul.f32.gmra.mxu0 %v3632_v55 }
 0x27b   :  { %3712 = vmatmul.f32.vlgmr.msrb.gmra.mxu1 %v7364_v63  ;;  %v3670_v33 = vand.u32 4294901760, %v3669_v21  ;;  %v3680_v3 = vand.u32 4294901760, %v3679_v34 }
 0x27c   :  { %3832 = vmatmul.f32.gmra.mxu3 %v3630_v50 }
 0x27d   :  { %3771 = vmatmul.f32.gmra.mxu2 %v3629_v12  ;;  %v3663_v12 = vsub.f32 %v3661_v30, %v3662_v56  ;;  %v3671_v40 = vsub.f32 %v3669_v21, %v3670_v33 }
 0x27f   :  { %v7411_v51 = vpop.f32.mrf.mxu0  ;;  %v3664_v50 = vand.u32 4294901760, %v3663_v12 }
 0x280   :  { %v7413_v47 = vpop.f32.mrf.mxu1  ;;  %v7426_v44 = vpop.f32.mrf.mxu2 }
 0x281   :  { %v7431_v58 = vpop.f32.mrf.mxu3 }
 0x282   :  { %3641 = vmatmul.f32.gmra.mxu0 %v3640_v6 }
 0x283   :  { %3716 = vmatmul.f32.gmra.mxu1 %v7376_v4 }
 0x284   :  { %3838 = vmatmul.f32.gmra.mxu3 %v3638_v13 }
 0x285   :  { %3776 = vmatmul.f32.gmra.mxu2 %v3637_v14  ;;  %v3672_v14 = vand.u32 4294901760, %v3671_v40 }
 0x287   :  { %v7422_v9 = vpop.f32.mrf.mxu0 }
 0x288   :  { %v7424_v26 = vpop.f32.mrf.mxu1  ;;  %v7439_v31 = vpop.f32.mrf.mxu2 }
 0x289   :  { %v7444_v59 = vpop.f32.mrf.mxu3 }
 0x28a   :  { %3649 = vmatmul.f32.gmra.mxu0 %v3648_v43 }
 0x28b   :  { %3720 = vmatmul.f32.gmra.mxu1 %v7388_v62 }
 0x28c   :  { %3844 = vmatmul.f32.gmra.mxu3 %v3646_v15 }
 0x28d   :  { %3781 = vmatmul.f32.gmra.mxu2 %v3645_v35 }
 0x28f   :  { %v7435_v52 = vpop.f32.mrf.mxu0 }
 0x290   :  { %8314 = vst [vmem:[#allocation20_spill] sm:$0xff] %v7435_v52  ;;  %v7437_v32 = vpop.f32.mrf.mxu1  ;;  %v7454_v18 = vpop.f32.mrf.mxu2 }
 0x291   :  { %8317 = vst [vmem:[#allocation23_spill] sm:$0xff] %v7454_v18  ;;  %v7460_v22 = vpop.f32.mrf.mxu3 }
 0x292   :  { %3657 = vmatmul.f32.gmra.mxu0 %v3656_v38  ;;  %8320 = vst [vmem:[#allocation26_spill] sm:$0xff] %v7460_v22 }
 0x293   :  { %3724 = vmatmul.f32.gmra.mxu1 %v7398_v25 }
 0x294   :  { %3850 = vmatmul.f32.gmra.mxu3 %v3654_v57 }
 0x295   :  { %3786 = vmatmul.f32.gmra.mxu2 %v3653_v2 }
 0x297   :  { %v7448_v60 = vpop.f32.mrf.mxu0 }
 0x298   :  { %8315 = vst [vmem:[#allocation21_spill] sm:$0xff] %v7448_v60  ;;  %v7450_v11 = vpop.f32.mrf.mxu1  ;;  %v7463_v35 = vpop.f32.mrf.mxu2 }
 0x299   :  { %8316 = vst [vmem:[#allocation22_spill] sm:$0xff] %v7450_v11  ;;  %v7469_v19 = vpop.f32.mrf.mxu3 }
 0x29a   :  { %3665 = vmatmul.f32.gmra.mxu0 %v3664_v50  ;;  %8321 = vst [vmem:[#allocation27_spill] sm:$0xff] %v7463_v35 }
 0x29b   :  { %3728 = vmatmul.f32.gmra.mxu1 %v7409_v49  ;;  %8324 = vst [vmem:[#allocation30_spill] sm:$0xff] %v7469_v19 }
 0x29c   :  { %3856 = vmatmul.f32.gmra.mxu3 %v3662_v56 }
 0x29d   :  { %3791 = vmatmul.f32.gmra.mxu2 %v3661_v30 }
 0x29f   :  { %v7456_v55 = vpop.f32.mrf.mxu0 }
 0x2a0   :  { %8318 = vst [vmem:[#allocation24_spill] sm:$0xff] %v7456_v55  ;;  %v7458_v13 = vpop.f32.mrf.mxu1  ;;  %v7476_v41 = vpop.f32.mrf.mxu2 }
 0x2a1   :  { %8319 = vst [vmem:[#allocation25_spill] sm:$0xff] %v7458_v13  ;;  %v7480_v43 = vpop.f32.mrf.mxu3 }
 0x2a2   :  { %3673 = vmatmul.f32.gmra.mxu0 %v3672_v14  ;;  %8326 = vst [vmem:[#allocation32_spill] sm:$0xff] %v7476_v41 }
 0x2a3   :  { %3732 = vmatmul.f32.gmra.mxu1 %v7420_v53  ;;  %8327 = vst [vmem:[#allocation33_spill] sm:$0xff] %v7480_v43  ;;  %v4102_v43 = vld [vmem:[#allocation8 + $0x60] sm:$0xff] }
 0x2a4   :  { %3862 = vmatmul.f32.gmra.mxu3 %v3670_v33  ;;  %v7591_v8 = vand.u32 4294901760, %v4102_v43 }
 0x2a5   :  { %3796 = vmatmul.f32.gmra.mxu2 %v3669_v21 }
 0x2a7   :  { %v7465_v6 = vpop.f32.mrf.mxu0 }
 0x2a8   :  { %8322 = vst [vmem:[#allocation28_spill] sm:$0xff] %v7465_v6  ;;  %v7467_v15 = vpop.f32.mrf.mxu1  ;;  %v7486_v27 = vpop.f32.mrf.mxu2 }
 0x2a9   :  { %8323 = vst [vmem:[#allocation29_spill] sm:$0xff] %v7467_v15  ;;  %v7490_v30 = vpop.f32.mrf.mxu3 }
 0x2aa   :  { %3681 = vmatmul.f32.gmra.mxu0 %v3680_v3  ;;  %8328 = vst [vmem:[#allocation34_spill] sm:$0xff] %v7486_v27 }
 0x2ab   :  { %3736 = vmatmul.f32.gmra.mxu1 %v7433_v61  ;;  %8329 = vst [vmem:[#allocation35_spill] sm:$0xff] %v7490_v30 }
 0x2ac   :  { %3868 = vmatmul.f32.gmra.mxu3 %v3678_v5 }
 0x2ad   :  { %3801 = vmatmul.f32.gmra.mxu2 %v3677_v28 }
 0x2af   :  { %v7474_v2 = vpop.f32.mrf.mxu0 }
 0x2b0   :  { %v7472_v54 = vpop.f32.mrf.mxu1  ;;  %v7498_v56 = vpop.f32.mrf.mxu2 }
 0x2b1   :  { %8325 = vst [vmem:[#allocation31_spill] sm:$0xff] %v7472_v54  ;;  %v7504_v21 = vpop.f32.mrf.mxu3 }
 0x2b2   :  { %3895 = vmatmul.f32.vlgmr.msra.gmra.mxu0 %v7364_v63  ;;  %8330 = vst [vmem:[#allocation36_spill] sm:$0xff] %v7498_v56  ;;  %v4105_v56 = vld [vmem:[#allocation8 + $0x78] sm:$0xff] }
 0x2b3   :  { %3740 = vmatmul.f32.gmra.mxu1 %v7446_v1  ;;  %8333 = vst [vmem:[#allocation39_spill] sm:$0xff] %v7504_v21 }
 0x2b7   :  { %v7482_v57 = vpop.f32.mrf.mxu0 }
 0x2b8   :  { %v7484_v37 = vpop.f32.mrf.mxu1 }
 0x2b9   :  { %v7514_v33 = vpop.f32.mrf.mxu3 }
 0x2ba   :  { %3899 = vmatmul.f32.gmra.mxu0 %v7376_v4 }
 0x2bb   :  { %3946 = vmatmul.f32.vlgmr.msra.gmra.mxu1 %v7364_v63  ;;  %v7508_v63 = vpop.f32.mrf.mxu2 }
 0x2bf   :  { %v7492_v23 = vpop.f32.mrf.mxu0 }
 0x2c0   :  { %v7494_v38 = vpop.f32.mrf.mxu1 }
 0x2c2   :  { %3903 = vmatmul.f32.gmra.mxu0 %v7388_v62 }
 0x2c3   :  { %3950 = vmatmul.f32.gmra.mxu1 %v7376_v4  ;;  %v7522_v28 = vpop.f32.mrf.mxu2 }
 0x2c7   :  { %v7500_v16 = vpop.f32.mrf.mxu0 }
 0x2c8   :  { %8331 = vst [vmem:[#allocation37_spill] sm:$0xff] %v7500_v16  ;;  %v7502_v12 = vpop.f32.mrf.mxu1 }
 0x2c9   :  { %8332 = vst [vmem:[#allocation38_spill] sm:$0xff] %v7502_v12  ;;  %v4092_v12 = vld [vmem:[#allocation8 + $0x10] sm:$0xff] }
 0x2ca   :  { %3907 = vmatmul.f32.gmra.mxu0 %v7398_v25 }
 0x2cb   :  { %3954 = vmatmul.f32.gmra.mxu1 %v7388_v62  ;;  %v7526_v62 = vpop.f32.mrf.mxu3  ;;  %v7532_v34 = vpop.f32.mrf.mxu2 }
 0x2cc   :  { %8338 = vst [vmem:[#allocation44_spill] sm:$0xff] %v7526_v62 }
 0x2cd   :  { %8341 = vst [vmem:[#allocation47_spill] sm:$0xff] %v7532_v34 }
 0x2cf   :  { %v7510_v39 = vpop.f32.mrf.mxu0 }
 0x2d0   :  { %8334 = vst [vmem:[#allocation40_spill] sm:$0xff] %v7510_v39  ;;  %v7512_v50 = vpop.f32.mrf.mxu1  ;;  %v4100_v39 = vld [vmem:[#allocation8 + $0x50] sm:$0xff] }
 0x2d1   :  { %8335 = vst [vmem:[#allocation41_spill] sm:$0xff] %v7512_v50 }
 0x2d2   :  { %3911 = vmatmul.f32.gmra.mxu0 %v7409_v49 }
 0x2d3   :  { %3958 = vmatmul.f32.gmra.mxu1 %v7398_v25  ;;  %v7536_v25 = vpop.f32.mrf.mxu3 }
 0x2d4   :  { %8342 = vst [vmem:[#allocation48_spill] sm:$0xff] %v7536_v25 }
 0x2d7   :  { %v7518_v4 = vpop.f32.mrf.mxu0 }
 0x2d8   :  { %8336 = vst [vmem:[#allocation42_spill] sm:$0xff] %v7518_v4  ;;  %v7520_v40 = vpop.f32.mrf.mxu1  ;;  %v7573_v4 = vand.u32 4294901760, %v4103_v42 }
 0x2d9   :  { %8337 = vst [vmem:[#allocation43_spill] sm:$0xff] %v7520_v40  ;;  %v4101_v40 = vld [vmem:[#allocation8 + $0x58] sm:$0xff] }
 0x2da   :  { %3915 = vmatmul.f32.gmra.mxu0 %v7420_v53 }
 0x2db   :  { %3962 = vmatmul.f32.gmra.mxu1 %v7409_v49  ;;  %v7544_v49 = vpop.f32.mrf.mxu2 }
 0x2dc   :  { %8345 = vst [vmem:[#allocation51_spill] sm:$0xff] %v7544_v49  ;;  %v4099_v49 = vld [vmem:[#allocation8 + $0x48] sm:$0xff] }
 0x2dd   :  { %v7630_v60 = vand.u32 4294901760, %v4099_v49 }
 0x2df   :  { %v7528_v14 = vpop.f32.mrf.mxu0 }
 0x2e0   :  { %8339 = vst [vmem:[#allocation45_spill] sm:$0xff] %v7528_v14  ;;  %v7530_v5 = vpop.f32.mrf.mxu1  ;;  %v7546_v14 = vand.u32 4294901760, %v4105_v56 }
 0x2e1   :  { %8340 = vst [vmem:[#allocation46_spill] sm:$0xff] %v7530_v5 }
 0x2e2   :  { %3919 = vmatmul.f32.gmra.mxu0 %v7433_v61  ;;  %4111 = vmatpush.msra.mxu2 %v7546_v14 }
 0x2e3   :  { %3966 = vmatmul.f32.gmra.mxu1 %v7420_v53  ;;  %v7554_v53 = vsub.f32 %v4105_v56, %v7546_v14 }
 0x2e4   :  { %4426 = vmatpush.msrb.mxu1 %v7546_v14 }
 0x2e5   :  { %4338 = vmatpush.msrb.mxu0 %v7554_v53 }
 0x2e7   :  { %v7538_v3 = vpop.f32.mrf.mxu0 }
 0x2e8   :  { %8343 = vst [vmem:[#allocation49_spill] sm:$0xff] %v7538_v3  ;;  %v7540_v21 = vpop.f32.mrf.mxu1  ;;  %v7557_v3 = vpop.f32.mrf.mxu3 }
 0x2e9   :  { %8344 = vst [vmem:[#allocation50_spill] sm:$0xff] %v7540_v21  ;;  %v4104_v21 = vld [vmem:[#allocation8 + $0x70] sm:$0xff] }
 0x2ea   :  { %3923 = vmatmul.f32.gmra.mxu0 %v7446_v1  ;;  %8347 = vst [vmem:[#allocation53_spill] sm:$0xff] %v7557_v3  ;;  %v7560_v6 = vand.u32 4294901760, %v4104_v21 }
 0x2eb   :  { %3970 = vmatmul.f32.gmra.mxu1 %v7433_v61  ;;  %v8185_v61 = vand.u32 4294901760, %v7554_v53 }
 0x2ec   :  { %4113 = vmatpush.msra.mxu2 %v7560_v6  ;;  %v7569_v56 = vsub.f32 %v4104_v21, %v7560_v6  ;;  %4428 = vmatpush.msrb.mxu1 %v7560_v6 }
 0x2ee   :  { %v8186_v27 = vand.u32 4294901760, %v7569_v56  ;;  %4341 = vmatpush.msrb.mxu0 %v7569_v56  ;;  %4115 = vmatpush.msra.mxu2 %v7573_v4 }
 0x2ef   :  { %v7550_v30 = vpop.f32.mrf.mxu0  ;;  %4430 = vmatpush.msrb.mxu1 %v7573_v4 }
 0x2f0   :  { %v7548_v54 = vpop.f32.mrf.mxu1  ;;  %v4216_v21 = vsub.f32 %v7569_v56, %v8186_v27  ;;  %4117 = vmatpush.msra.mxu2 %v7591_v8 }
 0x2f1   :  { %8346 = vst [vmem:[#allocation52_spill] sm:$0xff] %v7548_v54  ;;  %v4210_v54 = vsub.f32 %v7554_v53, %v8185_v61  ;;  %4432 = vmatpush.msrb.mxu1 %v7591_v8 }
 0x2f2   :  { %v4217_v55 = vand.u32 4294901760, %v4216_v21  ;;  %v7603_v21 = vand.u32 4294901760, %v4101_v40 }
 0x2f3   :  { %3974 = vmatmul.f32.gmra.mxu1 %v7446_v1  ;;  %v4211_v5 = vand.u32 4294901760, %v4210_v54  ;;  %v7576_v1 = vpop.f32.mrf.mxu2  ;;  %v7587_v54 = vsub.f32 %v4103_v42, %v7573_v4  ;;  %v7601_v42 = vsub.f32 %v4102_v43, %v7591_v8 }
 0x2f4   :  { %8348 = vst [vmem:[#allocation54_spill] sm:$0xff] %v7576_v1  ;;  %4119 = vmatpush.msra.mxu2 %v7603_v21  ;;  %4434 = vmatpush.msrb.mxu1 %v7603_v21 }
 0x2f5   :  { %4212 = vmatpush.msra.mxu3 %v4211_v5  ;;  %v8187_v1 = vand.u32 4294901760, %v7587_v54  ;;  %4344 = vmatpush.msrb.mxu0 %v7587_v54  ;;  %v7594_v5 = vpop.f32.mrf.mxu3  ;;  %v8188_v41 = vand.u32 4294901760, %v7601_v42 }
 0x2f6   :  { %8350 = vst [vmem:[#allocation56_spill] sm:$0xff] %v7594_v5 }
 0x2f7   :  { %v7578_v15 = vpop.f32.mrf.mxu0  ;;  %4218 = vmatpush.msra.mxu3 %v4217_v55  ;;  %v4222_v27 = vsub.f32 %v7587_v54, %v8187_v1  ;;  %4347 = vmatpush.msrb.mxu0 %v7601_v42  ;;  %v7610_v55 = vsub.f32 %v4101_v40, %v7603_v21  ;;  %v7612_v1 = vand.u32 4294901760, %v4100_v39 }
 0x2f8   :  { %8349 = vst [vmem:[#allocation55_spill] sm:$0xff] %v7578_v15  ;;  %v7580_v61 = vpop.f32.mrf.mxu1 }
 0x2f9   :  { %v4223_v3 = vand.u32 4294901760, %v4222_v27  ;;  %v4228_v27 = vsub.f32 %v7601_v42, %v8188_v41  ;;  %v8189_v19 = vand.u32 4294901760, %v7610_v55  ;;  %4121 = vmatpush.msra.mxu2 %v7612_v1  ;;  %v7627_v40 = vsub.f32 %v4100_v39, %v7612_v1  ;;  %4350 = vmatpush.msrb.mxu0 %v7610_v55 }
 0x2fa   :  { %4436 = vmatpush.msrb.mxu1 %v7612_v1  ;;  %v7642_v39 = vsub.f32 %v4099_v49, %v7630_v60  ;;  %v4096_v49 = vld [vmem:[#allocation8 + $0x30] sm:$0xff] }
 0x2fb   :  { %4224 = vmatpush.msra.mxu3 %v4223_v3  ;;  %v7622_v13 = vpop.f32.mrf.mxu2  ;;  %v4098_v3 = vld [vmem:[#allocation8 + $0x40] sm:$0xff]  ;;  %v4234_v41 = vsub.f32 %v7610_v55, %v8189_v19  ;;  %4353 = vmatpush.msrb.mxu0 %v7627_v40 }
 0x2fc   :  { %8353 = vst [vmem:[#allocation59_spill] sm:$0xff] %v7622_v13  ;;  %v8190_v13 = vand.u32 4294901760, %v7627_v40  ;;  %v7637_v20 = vand.u32 4294901760, %v4098_v3  ;;  %4123 = vmatpush.msra.mxu2 %v7630_v60  ;;  %4438 = vmatpush.msrb.mxu1 %v7630_v60 }
 0x2fd   :  { %v7644_v25 = vpop.f32.mrf.mxu3  ;;  %v4235_v50 = vand.u32 4294901760, %v4234_v41  ;;  %4356 = vmatpush.msrb.mxu0 %v7642_v39 }
 0x2fe   :  { %8354 = vst [vmem:[#allocation60_spill] sm:$0xff] %v7644_v25  ;;  %v4240_v19 = vsub.f32 %v7627_v40, %v8190_v13  ;;  %v7650_v35 = vsub.f32 %v4098_v3, %v7637_v20  ;;  %4125 = vmatpush.msra.mxu2 %v7637_v20  ;;  %4440 = vmatpush.msrb.mxu1 %v7637_v20 }
 0x2ff   :  { %v7615_v43 = vpop.f32.mrf.mxu0 }
 0x300   :  { %8351 = vst [vmem:[#allocation57_spill] sm:$0xff] %v7615_v43  ;;  %v7617_v5 = vpop.f32.mrf.mxu1  ;;  %v4229_v43 = vand.u32 4294901760, %v4228_v27  ;;  %v4097_v27 = vld [vmem:[#allocation8 + $0x38] sm:$0xff]  ;;  %v4241_v41 = vand.u32 4294901760, %v4240_v19  ;;  %v8192_v25 = vand.u32 4294901760, %v7650_v35  ;;  %4359 = vmatpush.msrb.mxu0 %v7650_v35  ;;  %v4095_v19 = vld [vmem:[#allocation8 + $0x28] sm:$0xff] }
 0x301   :  { %8352 = vst [vmem:[#allocation58_spill] sm:$0xff] %v7617_v5  ;;  %v7655_v16 = vand.u32 4294901760, %v4097_v27  ;;  %v7659_v5 = vand.u32 4294901760, %v4096_v49 }
 0x302   :  { %4230 = vmatpush.msra.mxu3 %v4229_v43  ;;  %v8191_v43 = vand.u32 4294901760, %v7642_v39 }
 0x303   :  { %8355 = vst [vmem:[#allocation61_spill] sm:$0xff] %v7655_v16  ;;  %4127 = vmatpush.msra.mxu2 %v7655_v16  ;;  %v7671_v11 = vsub.f32 %v4097_v27, %v7655_v16  ;;  %v7683_v27 = vand.u32 4294901760, %v4095_v19  ;;  %v7685_v15 = vpop.f32.mrf.mxu2  ;;  %4442 = vmatpush.msrb.mxu1 %v7655_v16 }
 0x304   :  { %4236 = vmatpush.msra.mxu3 %v4235_v50  ;;  %8356 = vst [vmem:[#allocation62_spill] sm:$0xff] %v7659_v5  ;;  %v4246_v34 = vsub.f32 %v7642_v39, %v8191_v43  ;;  %v4252_v50 = vsub.f32 %v7650_v35, %v8192_v25  ;;  %v4094_v43 = vld [vmem:[#allocation8 + $0x20] sm:$0xff] }
 0x305   :  { %v8193_v22 = vand.u32 4294901760, %v7671_v11  ;;  %4129 = vmatpush.msra.mxu2 %v7659_v5  ;;  %4362 = vmatpush.msrb.mxu0 %v7671_v11  ;;  %8359 = vst [vmem:[#allocation65_spill] sm:$0xff] %v7683_v27  ;;  %v7689_v25 = vand.u32 4294901760, %v4094_v43  ;;  %v7710_v62 = vpop.f32.mrf.mxu3 }
 0x306   :  { %4242 = vmatpush.msra.mxu3 %v4241_v41  ;;  %8360 = vst [vmem:[#allocation66_spill] sm:$0xff] %v7685_v15  ;;  %v4253_v41 = vand.u32 4294901760, %v4252_v50  ;;  %4444 = vmatpush.msrb.mxu1 %v7659_v5 }
 0x307   :  { %v7662_v3 = vpop.f32.mrf.mxu0  ;;  %8361 = vst [vmem:[#allocation67_spill] sm:$0xff] %v7689_v25  ;;  %4131 = vmatpush.msra.mxu2 %v7683_v27  ;;  %v7703_v15 = vsub.f32 %v4094_v43, %v7689_v25  ;;  %v7718_v43 = vand.u32 4294901760, %v4092_v12 }
 0x308   :  { %8357 = vst [vmem:[#allocation63_spill] sm:$0xff] %v7662_v3  ;;  %v7664_v13 = vpop.f32.mrf.mxu1  ;;  %v7678_v3 = vsub.f32 %v4096_v49, %v7659_v5  ;;  %v7695_v49 = vsub.f32 %v4095_v19, %v7683_v27  ;;  %4446 = vmatpush.msrb.mxu1 %v7683_v27  ;;  %v2949_v5 = vadd.f32 %v7390_v46, %v7325_v10 }
 0x309   :  { %8358 = vst [vmem:[#allocation64_spill] sm:$0xff] %v7664_v13  ;;  %v4247_v13 = vand.u32 4294901760, %v4246_v34  ;;  %v4258_v34 = vsub.f32 %v7671_v11, %v8193_v22  ;;  %4133 = vmatpush.msra.mxu2 %v7689_v25 }
 0x30a   :  { %v8194_v52 = vand.u32 4294901760, %v7678_v3  ;;  %4365 = vmatpush.msrb.mxu0 %v7678_v3  ;;  %v8197_v19 = vand.u32 4294901760, %v7695_v49  ;;  %8362 = vst [vmem:[#allocation68_spill] sm:$0xff] %v7710_v62  ;;  %4448 = vmatpush.msrb.mxu1 %v7689_v25  ;;  %v3014_v10 = vadd.f32 %v7402_v17, %v2949_v5 }
 0x30b   :  { %4248 = vmatpush.msra.mxu3 %v4247_v13  ;;  %v7706_v13 = vand.u32 4294901760, %v4093_v29  ;;  %v4259_v22 = vand.u32 4294901760, %v4258_v34  ;;  %v7755_v46 = vpop.f32.mrf.mxu2 }
 0x30c   :  { %v4264_v50 = vsub.f32 %v7678_v3, %v8194_v52  ;;  %4368 = vmatpush.msrb.mxu0 %v7695_v49  ;;  %v4091_v52 = vld [vmem:[#allocation8 + $0x8] sm:$0xff]  ;;  %8367 = vst [vmem:[#allocation72_spill] sm:$0xff] %v7755_v46 }
 0x30d   :  { %4254 = vmatpush.msra.mxu3 %v4253_v41  ;;  %v7714_v16 = vsub.f32 %v4093_v29, %v7706_v13  ;;  %v8365_v29 = vand.u32 4294901760, %v7703_v15  ;;  %4135 = vmatpush.msra.mxu2 %v7706_v13  ;;  %v7779_v46 = vpop.f32.mrf.mxu3 }
 0x30e   :  { %v4265_v18 = vand.u32 4294901760, %v4264_v50  ;;  %v4270_v50 = vsub.f32 %v7695_v49, %v8197_v19  ;;  %4371 = vmatpush.msrb.mxu0 %v7703_v15  ;;  %v7738_v19 = vand.u32 4294901760, %v4091_v52  ;;  %4450 = vmatpush.msrb.mxu1 %v7706_v13 }
 0x30f   :  { %v7720_v41 = vpop.f32.mrf.mxu0  ;;  %4260 = vmatpush.msra.mxu3 %v4259_v22  ;;  %v4276_v62 = vsub.f32 %v7703_v15, %v8365_v29  ;;  %v8200_v27 = vand.u32 4294901760, %v7714_v16  ;;  %v7735_v22 = vsub.f32 %v4092_v12, %v7718_v43  ;;  %4137 = vmatpush.msra.mxu2 %v7718_v43 }
 0x310   :  { %8363 = vst [vmem:[#allocation69_spill] sm:$0xff] %v7720_v41  ;;  %v7722_v34 = vpop.f32.mrf.mxu1  ;;  %v4271_v41 = vand.u32 4294901760, %v4270_v50  ;;  %4374 = vmatpush.msrb.mxu0 %v7714_v16  ;;  %v7751_v50 = vsub.f32 %v4091_v52, %v7738_v19  ;;  %4452 = vmatpush.msrb.mxu1 %v7718_v43 }
 0x311   :  { %8364 = vst [vmem:[#allocation70_spill] sm:$0xff] %v7722_v34  ;;  %4266 = vmatpush.msra.mxu3 %v4265_v18  ;;  %v4090_v34 = vld [vmem:[#allocation8] sm:$0xff]  ;;  %v4277_v29 = vand.u32 4294901760, %v4276_v62  ;;  %v4282_v25 = vsub.f32 %v7714_v16, %v8200_v27  ;;  %v8201_v12 = vand.u32 4294901760, %v7735_v22  ;;  %4139 = vmatpush.msra.mxu2 %v7738_v19 }
 0x312   :  { %8366 = vst [vmem:[#allocation71_spill] sm:$0xff] %v7738_v19  ;;  %v7746_v18 = vand.u32 4294901760, %v4090_v34  ;;  %4377 = vmatpush.msrb.mxu0 %v7735_v22  ;;  %4454 = vmatpush.msrb.mxu1 %v7738_v19 }
 0x313   :  { %4272 = vmatpush.msra.mxu3 %v4271_v41  ;;  %v4283_v62 = vand.u32 4294901760, %v4282_v25  ;;  %v4288_v52 = vsub.f32 %v7735_v22, %v8201_v12  ;;  %v8203_v41 = vand.u32 4294901760, %v7751_v50  ;;  %v3083_v12 = vadd.f32 %v7407_v7, %v3014_v10 }
 0x314   :  { %v7758_v27 = vsub.f32 %v4090_v34, %v7746_v18  ;;  %4380 = vmatpush.msrb.mxu0 %v7751_v50  ;;  %4141 = vmatpush.msra.mxu2 %v7746_v18 }
 0x315   :  { %4278 = vmatpush.msra.mxu3 %v4277_v29  ;;  %v4289_v34 = vand.u32 4294901760, %v4288_v52  ;;  %v4294_v29 = vsub.f32 %v7751_v50, %v8203_v41  ;;  %4456 = vmatpush.msrb.mxu1 %v7746_v18  ;;  %v2953_v52 = vadd.f32 %v7400_v36, %v7333_v0  ;;  %v3240_v7 = vadd.f32 %v7415_v45, %v3083_v12  ;;  %v8385_v12 = vld [vmem:[#allocation38_spill] sm:$0xff] }
 0x316   :  { %v8204_v17 = vand.u32 4294901760, %v7758_v27  ;;  %4383 = vmatpush.msrb.mxu0 %v7758_v27  ;;  %v8373_v0 = vand.u32 4294901760, %v7601_v42  ;;  %v8375_v42 = vand.u32 4294901760, %v7627_v40  ;;  %v8379_v40 = vand.u32 4294901760, %v7678_v3  ;;  %v8384_v3 = vld [vmem:[#allocation44_spill] sm:$0xff] }
 0x317   :  { %v7770_v25 = vpop.f32.mrf.mxu0  ;;  %4284 = vmatpush.msra.mxu3 %v4283_v62  ;;  %v4295_v62 = vand.u32 4294901760, %v4294_v29  ;;  %v3018_v10 = vadd.f32 %v7413_v47, %v2953_v52  ;;  %v8391_v52 = vld [vmem:[#allocation65_spill] sm:$0xff] }
 0x318   :  { %8368 = vst [vmem:[#allocation73_spill] sm:$0xff] %v7770_v25  ;;  %v7772_v5 = vpop.f32.mrf.mxu1  ;;  %v4300_v19 = vsub.f32 %v7758_v27, %v8204_v17  ;;  %v8370_v25 = vand.u32 4294901760, %v7554_v53  ;;  %v8372_v17 = vand.u32 4294901760, %v7587_v54  ;;  %v3322_v53 = vadd.f32 %v7474_v2, %v3240_v7 }
 0x319   :  { %8369 = vst [vmem:[#allocation74_spill] sm:$0xff] %v7772_v5  ;;  %4290 = vmatpush.msra.mxu3 %v4289_v34  ;;  %v8371_v5 = vand.u32 4294901760, %v7569_v56  ;;  %v3091_v45 = vadd.f32 %v7426_v44, %v3018_v10  ;;  %v8374_v54 = vand.u32 4294901760, %v7610_v55  ;;  %v2957_v2 = vadd.f32 %v7411_v51, %v7342_v24  ;;  %v8393_v10 = vld [vmem:[#allocation26_spill] sm:$0xff] }
 0x31a   :  { %4509 = vmatpush.msrb.mxu2 %v8370_v25  ;;  %v4301_v41 = vand.u32 4294901760, %v4300_v19  ;;  %v3767_v25 = vpop.f32.mrf.mxu2  ;;  %v3396_v47 = vadd.f32 %v7484_v37, %v3322_v53  ;;  %v8377_v24 = vand.u32 4294901760, %v7650_v35  ;;  %v2961_v35 = vadd.f32 %v7422_v9, %v7350_v48 }
 0x31b   :  { %4296 = vmatpush.msra.mxu3 %v4295_v62  ;;  %v3244_v19 = vadd.f32 %v7431_v58, %v3091_v45  ;;  %v3022_v44 = vadd.f32 %v7424_v26, %v2957_v2  ;;  %v8380_v48 = vand.u32 4294901760, %v7695_v49  ;;  %v8387_v49 = vand.u32 4294901760, %v7714_v16  ;;  %v8395_v45 = vld [vmem:[#allocation47_spill] sm:$0xff]  ;;  %v8396_v16 = vld [vmem:[#allocation58_spill] sm:$0xff] }
 0x31c   :  { %4513 = vmatpush.msrb.mxu2 %v8371_v5  ;;  %v3507_v37 = vadd.f32 %v7508_v63, %v3396_v47  ;;  %v8389_v5 = vld [vmem:[#allocation20_spill] sm:$0xff]  ;;  %v8392_v7 = vand.u32 4294901760, %v7735_v22  ;;  %v8400_v22 = vand.u32 4294901760, %v7758_v27  ;;  %v8407_v27 = vld [vmem:[#allocation71_spill] sm:$0xff] }
 0x31d   :  { %4302 = vmatpush.msra.mxu3 %v4301_v41  ;;  %v3327_v55 = vadd.f32 %v7482_v57, %v3244_v19  ;;  %v3099_v26 = vadd.f32 %v7439_v31, %v3022_v44  ;;  %v8378_v57 = vand.u32 4294901760, %v7671_v11  ;;  %v3026_v31 = vadd.f32 %v7437_v32, %v2961_v35  ;;  %v8383_v32 = vld [vmem:[#allocation23_spill] sm:$0xff]  ;;  %v8399_v44 = vld [vmem:[#allocation37_spill] sm:$0xff]  ;;  %v8403_v35 = vld [vmem:[#allocation48_spill] sm:$0xff] }
 0x31e   :  { %4517 = vmatpush.msrb.mxu2 %v8372_v17  ;;  %v3572_v58 = vadd.f32 %v7514_v33, %v3507_v37  ;;  %v8386_v17 = vld [vmem:[#allocation62_spill] sm:$0xff]  ;;  %v8398_v19 = vand.u32 4294901760, %v7751_v50 }
 0x31f   :  { %4604 = vmatpush.msrb.mxu3 %v7546_v14  ;;  %v7799_v36 = vpop.f32.mrf.mxu0  ;;  %v3827_v14 = vpop.f32.mrf.mxu3 }
 0x320   :  { %4521 = vmatpush.msrb.mxu2 %v8373_v0  ;;  %v7801_v56 = vpop.f32.mrf.mxu1  ;;  %v8394_v0 = vld [vmem:[#allocation22_spill] sm:$0xff] }
 0x321   :  { %4606 = vmatpush.msrb.mxu3 %v7560_v6  ;;  %v8376_v6 = vand.u32 4294901760, %v7642_v39  ;;  %v3107_v39 = vadd.f32 %v8383_v32, %v3026_v31  ;;  %v8404_v31 = vld [vmem:[#allocation18_spill] sm:$0xff] }
 0x322   :  { %4525 = vmatpush.msrb.mxu2 %v8374_v54  ;;  %v3772_v63 = vpop.f32.mrf.mxu2 }
 0x323   :  { %4608 = vmatpush.msrb.mxu3 %v7573_v4  ;;  %v3252_v53 = vadd.f32 %v8393_v10, %v3107_v39  ;;  %v8410_v39 = vld [vmem:[#allocation51_spill] sm:$0xff] }
 0x324   :  { %4529 = vmatpush.msrb.mxu2 %v8375_v42  ;;  %v8397_v42 = vld [vmem:[#allocation67_spill] sm:$0xff] }
 0x325   :  { %4610 = vmatpush.msrb.mxu3 %v7591_v8  ;;  %v3402_v8 = vadd.f32 %v7494_v38, %v3327_v55  ;;  %v3248_v38 = vadd.f32 %v7444_v59, %v3099_v26  ;;  %v3337_v37 = vadd.f32 %v8399_v44, %v3252_v53 }
 0x326   :  { %4533 = vmatpush.msrb.mxu2 %v8376_v6 }
 0x327   :  { %4612 = vmatpush.msrb.mxu3 %v7603_v21  ;;  %v7823_v51 = vpop.f32.mrf.mxu0  ;;  %v3627_v21 = vadd.f32 %v7550_v30, %v3572_v58  ;;  %v3511_v33 = vadd.f32 %v7522_v28, %v3402_v8  ;;  %v3833_v11 = vpop.f32.mrf.mxu3  ;;  %v3332_v9 = vadd.f32 %v7492_v23, %v3248_v38  ;;  %v8382_v30 = vand.u32 4294901760, %v7703_v15  ;;  %v8388_v23 = vld [vmem:[#allocation17_spill] sm:$0xff]  ;;  %v8390_v15 = vld [vmem:[#allocation55_spill] sm:$0xff] }
 0x328   :  { %4537 = vmatpush.msrb.mxu2 %v8377_v24  ;;  %v7825_v4 = vpop.f32.mrf.mxu1  ;;  %v2965_v34 = vadd.f32 %v8389_v5, %v8388_v23  ;;  %v8401_v24 = vld [vmem:[#allocation27_spill] sm:$0xff]  ;;  %v8402_v58 = vld [vmem:[#allocation41_spill] sm:$0xff]  ;;  %v8413_v5 = vld [vmem:[#allocation32_spill] sm:$0xff] }
 0x329   :  { %4614 = vmatpush.msrb.mxu3 %v7612_v1  ;;  %v3714_v1 = vadd.f32 %v7580_v61, %v3627_v21  ;;  %v3576_v61 = vadd.f32 %v8384_v3, %v3511_v33  ;;  %v3408_v41 = vadd.f32 %v8385_v12, %v3332_v9  ;;  %v8405_v38 = vld [vmem:[#allocation21_spill] sm:$0xff]  ;;  %v8408_v9 = vld [vmem:[#allocation30_spill] sm:$0xff] }
 0x32a   :  { %4541 = vmatpush.msrb.mxu2 %v8378_v57  ;;  %v3777_v62 = vpop.f32.mrf.mxu2  ;;  %v2969_v33 = vadd.f32 %v8405_v38, %v8404_v31  ;;  %v8423_v31 = vld [vmem:[#allocation42_spill] sm:$0xff] }
 0x32b   :  { %4616 = vmatpush.msrb.mxu3 %v7630_v60  ;;  %v8381_v60 = vld [vmem:[#allocation61_spill] sm:$0xff]  ;;  %v3635_v29 = vadd.f32 %v8390_v15, %v3576_v61  ;;  %v3515_v47 = vadd.f32 %v8395_v45, %v3408_v41 }
 0x32c   :  { %4545 = vmatpush.msrb.mxu2 %v8379_v40  ;;  %v8414_v15 = vld [vmem:[#allocation53_spill] sm:$0xff] }
 0x32d   :  { %4618 = vmatpush.msrb.mxu3 %v7637_v20  ;;  %v3768_v20 = vadd.f32 %v3767_v25, %v3714_v1  ;;  %v3030_v25 = vadd.f32 %v8394_v0, %v2965_v34  ;;  %v3718_v2 = vadd.f32 %v8396_v16, %v3635_v29  ;;  %v3580_v21 = vadd.f32 %v8403_v35, %v3515_v47  ;;  %v8406_v1 = vld [vmem:[#allocation57_spill] sm:$0xff]  ;;  %v8416_v47 = vld [vmem:[#allocation16_spill] sm:$0xff] }
 0x32e   :  { %4549 = vmatpush.msrb.mxu2 %v8380_v48 }
 0x32f   :  { %4620 = vmatpush.msrb.mxu3 %v8381_v60  ;;  %v3896_v28 = vpop.f32.mrf.mxu0  ;;  %v3828_v54 = vadd.f32 %v3827_v14, %v3768_v20  ;;  %v3839_v6 = vpop.f32.mrf.mxu3  ;;  %v3115_v26 = vadd.f32 %v8401_v24, %v3030_v25  ;;  %v3414_v14 = vadd.f32 %v8402_v58, %v3337_v37  ;;  %v3773_v40 = vadd.f32 %v3772_v63, %v3718_v2  ;;  %v8411_v63 = vld [vmem:[#allocation64_spill] sm:$0xff] }
 0x330   :  { %4553 = vmatpush.msrb.mxu2 %v8382_v30  ;;  %v7851_v59 = vpop.f32.mrf.mxu1  ;;  %v8409_v30 = vld [vmem:[#allocation25_spill] sm:$0xff]  ;;  %v5026_v20 = vmov 1.0  }
 0x331   :  { %4622 = vmatpush.msrb.mxu3 %v8386_v17  ;;  %v3897_v55 = vadd.f32 %v3896_v28, %v3828_v54  ;;  %v3256_v60 = vadd.f32 %v8408_v9, %v3115_v26  ;;  %v3034_v32 = vadd.f32 %v8409_v30, %v2969_v33  ;;  %v3519_v28 = vadd.f32 %v8410_v39, %v3414_v14  ;;  %v8417_v54 = vld [vmem:[#allocation24_spill] sm:$0xff]  ;;  %v8420_v26 = vld [vmem:[#allocation29_spill] sm:$0xff]  ;;  %v8421_v14 = vld [vmem:[#allocation54_spill] sm:$0xff] }
 0x332   :  { %4557 = vmatpush.msrb.mxu2 %v8387_v49  ;;  %v3834_v3 = vadd.f32 %v3833_v11, %v3773_v40  ;;  %v3782_v12 = vpop.f32.mrf.mxu2  ;;  %v5027_v17 = vmov 0.0   ;;  %v2973_v16 = vadd.f32 %v8417_v54, %v8416_v47  ;;  %v8425_v9 = vld [vmem:[#allocation56_spill] sm:$0xff]  ;;  %v8426_v30 = vld [vmem:[#allocation46_spill] sm:$0xff] }
 0x333   :  { %4624 = vmatpush.msrb.mxu3 %v8391_v52  ;;  %v3123_v34 = vadd.f32 %v8413_v5, %v3034_v32  ;;  %v3584_v29 = vadd.f32 %v8414_v15, %v3519_v28  ;;  %v8415_v52 = vld [vmem:[#allocation43_spill] sm:$0xff] }
 0x334   :  { %4561 = vmatpush.msrb.mxu2 %v8392_v7  ;;  %v3038_v58 = vadd.f32 %v8420_v26, %v2973_v16  ;;  %v8430_v15 = vld [vmem:[#allocation35_spill] sm:$0xff]  ;;  %v8434_v16 = vld [vmem:[#allocation45_spill] sm:$0xff] }
 0x335   :  { %4626 = vmatpush.msrb.mxu3 %v8397_v42  ;;  %v8418_v42 = vld [vmem:[#allocation63_spill] sm:$0xff] }
 0x336   :  { %4565 = vmatpush.msrb.mxu2 %v8398_v19  ;;  %v3651_v19 = vadd.f32 %v8418_v42, %v3584_v29 }
 0x337   :  { %4628 = vmatpush.msrb.mxu3 %v7706_v13  ;;  %v3900_v8 = vpop.f32.mrf.mxu0  ;;  %v3643_v13 = vadd.f32 %v8406_v1, %v3580_v21  ;;  %v3845_v2 = vpop.f32.mrf.mxu3 }
 0x338   :  { %4569 = vmatpush.msrb.mxu2 %v8400_v22  ;;  %v3947_v57 = vpop.f32.mrf.mxu1  ;;  %v3901_v11 = vadd.f32 %v3900_v8, %v3834_v3  ;;  %v8419_v22 = vld [vmem:[#allocation33_spill] sm:$0xff] }
 0x339   :  { %v3948_v50 = vadd.f32 %v3947_v57, %v3897_v55  ;;  %4630 = vmatpush.msrb.mxu3 %v7718_v43  ;;  %v3722_v61 = vadd.f32 %v8411_v63, %v3643_v13  ;;  %v8412_v43 = vld [vmem:[#allocation40_spill] sm:$0xff]  ;;  %v3260_v24 = vadd.f32 %v8419_v22, %v3123_v34  ;;  %v8422_v57 = vld [vmem:[#allocation70_spill] sm:$0xff] }
 0x33a   :  { %v3342_v41 = vadd.f32 %v8412_v43, %v3256_v60  ;;  %v3726_v35 = vadd.f32 %v8422_v57, %v3651_v19  ;;  %v3787_v33 = vpop.f32.mrf.mxu2  ;;  %v8427_v43 = vld [vmem:[#allocation19_spill] sm:$0xff] }
 0x33b   :  { %v7882_v48 = vadd.f32 -1.0, %v3948_v50  ;;  %4632 = vmatpush.msrb.mxu3 %v8407_v27  ;;  %v3778_v53 = vadd.f32 %v3777_v62, %v3722_v61  ;;  %v4000_v25 = vmul.f32 0.9, %v3948_v50  ;;  %v4002_v44 = vmul.f32 0.8, %v3948_v50  ;;  %v8424_v50 = vld [vmem:[#allocation34_spill] sm:$0xff] }
 0x33c   :  { %v3347_v38 = vadd.f32 %v8423_v31, %v3260_v24  ;;  %v3131_v27 = vadd.f32 %v8424_v50, %v3038_v58  ;;  %v3783_v3 = vadd.f32 %v3782_v12, %v3726_v35  ;;  %v8436_v24 = vld [vmem:[#allocation60_spill] sm:$0xff]  ;;  %v8437_v58 = vld [vmem:[#allocation50_spill] sm:$0xff] }
 0x33d   :  { %vm3994_vm1 = vcmp.gt.f32.partialorder %v7882_v48, 0.0  ;;  %4634 = vmatpush.msrb.mxu3 %v7746_v18  ;;  %v3420_v18 = vadd.f32 %v8415_v52, %v3342_v41  ;;  %v3840_v8 = vadd.f32 %v3839_v6, %v3778_v53  ;;  %v8428_v41 = vld [vmem:[#allocation28_spill] sm:$0xff]  ;;  %v8431_v52 = vld [vmem:[#allocation31_spill] sm:$0xff] }
 0x33e   :  { %4854 = vmatmul.msk.f32.vlgmr.msra.gmra.mxu3 %vm3994_vm1, %v5026_v20  ;;  %v4823_v49 = vsel %vm3994_vm1, 1.0, %v5027_v17  ;;  %v3426_v32 = vadd.f32 %v8426_v30, %v3347_v38  ;;  %v3264_v29 = vadd.f32 %v8430_v15, %v3131_v27  ;;  %v8438_v38 = vld [vmem:[#allocation73_spill] sm:$0xff]  ;;  %v8439_v27 = vld [vmem:[#allocation39_spill] sm:$0xff]  ;;  %v8443_v15 = vld [vmem:[#allocation52_spill] sm:$0xff] }
 0x33f   :  { %v4143_v23 = vsub.f32 %v4823_v49, %v4823_v49  ;;  %v3904_v7 = vpop.f32.mrf.mxu0  ;;  %v3523_v62 = vadd.f32 %v8421_v14, %v3420_v18  ;;  %v3851_v12 = vpop.f32.mrf.mxu3 }
 0x340   :  { %v3951_v10 = vpop.f32.mrf.mxu1  ;;  %v3905_v1 = vadd.f32 %v3904_v7, %v3840_v8  ;;  %v8432_v7 = vld [vmem:[#allocation59_spill] sm:$0xff]  ;;  %v3352_v42 = vadd.f32 %v8434_v16, %v3264_v29 }
 0x341   :  { %v3952_v0 = vadd.f32 %v3951_v10, %v3901_v11  ;;  %4386 = vmatmul.f32.vlgmr.msrb.gmra.mxu0 %v4143_v23  ;;  %v4144_v45 = vand.u32 4294901760, %v4143_v23  ;;  %v3588_v60 = vadd.f32 %v8425_v9, %v3523_v62  ;;  %v2977_v11 = vadd.f32 %v8428_v41, %v8427_v43 }
 0x342   :  { %v3527_v10 = vadd.f32 %v8432_v7, %v3426_v32  ;;  %v3432_v14 = vadd.f32 %v8437_v58, %v3352_v42 }
 0x343   :  { %v4001_v37 = vadd.f32 %v4000_v25, %v3952_v0  ;;  %4460 = vmatmul.f32.vlgmr.msrb.gmra.mxu1 %v4144_v45  ;;  %v4145_v55 = vsub.f32 %v4143_v23, %v4144_v45  ;;  %v8429_v23 = vld [vmem:[#allocation69_spill] sm:$0xff]  ;;  %v3042_v18 = vadd.f32 %v8431_v52, %v2977_v11  ;;  %v3846_v0 = vadd.f32 %v3845_v2, %v3783_v3  ;;  %v8433_v25 = vld [vmem:[#allocation74_spill] sm:$0xff] }
 0x344   :  { %v3659_v5 = vadd.f32 %v8429_v23, %v3588_v60  ;;  %v3592_v26 = vadd.f32 %v8436_v24, %v3527_v10  ;;  %v8440_v60 = vld [vmem:[#allocation66_spill] sm:$0xff] }
 0x345   :  { %v4003_v21 = vadd.f32 %v4002_v44, %v4001_v37  ;;  %v4146_v40 = vand.u32 4294901760, %v4145_v55  ;;  %v4012_v63 = vmul.f32 0.9, %v4001_v37  ;;  %v8435_v55 = vld [vmem:[#allocation36_spill] sm:$0xff]  ;;  %v3531_v30 = vadd.f32 %v8440_v60, %v3432_v14 }
 0x346   :  { %v3730_v45 = vadd.f32 %v8433_v25, %v3659_v5  ;;  %v3139_v22 = vadd.f32 %v8435_v55, %v3042_v18 }
 0x347   :  { %v4004_v13 = vsub.f32 %v4003_v21, %v4823_v49  ;;  %4147 = vmatmul.f32.vlgmr.msra.gmra.mxu2 %v4146_v40  ;;  %v3908_v39 = vpop.f32.mrf.mxu0  ;;  %v3792_v40 = vpop.f32.mrf.mxu2 }
 0x348   :  { %v3955_v28 = vpop.f32.mrf.mxu1  ;;  %v3909_v19 = vadd.f32 %v3908_v39, %v3846_v0  ;;  %v3788_v57 = vadd.f32 %v3787_v33, %v3730_v45  ;;  %v3268_v9 = vadd.f32 %v8439_v27, %v3139_v22  ;;  %v3857_v41 = vpop.f32.mrf.mxu3 }
 0x349   :  { %v3956_v6 = vadd.f32 %v3955_v28, %v3905_v1  ;;  %v7912_v61 = vadd.f32 -1.0, %v4004_v13  ;;  %v4014_v34 = vmul.f32 0.8, %v4004_v13  ;;  %v3667_v1 = vadd.f32 %v8438_v38, %v3592_v26 }
 0x34a   :  { %v3852_v39 = vadd.f32 %v3851_v12, %v3788_v57 }
 0x34b   :  { %v4013_v49 = vadd.f32 %v4012_v63, %v3956_v6  ;;  %vm4006_vm2 = vcmp.gt.f32.partialorder %v7912_v61, 0.0  ;;  %v3734_v28 = vadd.f32 %v7801_v56, %v3667_v1  ;;  %v8441_v63 = vld [vmem:[#allocation49_spill] sm:$0xff] }
 0x34c   :  { %4855 = vmatmul.msk.f32.gmra.mxu3 %vm4006_vm2, %v5026_v20  ;;  %v4825_v53 = vsel %vm4006_vm2, 1.0, %v5027_v17  ;;  %v3357_v43 = vadd.f32 %v8441_v63, %v3268_v9 }
 0x34d   :  { %v4015_v47 = vadd.f32 %v4014_v34, %v4013_v49  ;;  %v4151_v54 = vsub.f32 %v4825_v53, %v4825_v53  ;;  %v4024_v35 = vmul.f32 0.9, %v4013_v49  ;;  %v8442_v49 = vld [vmem:[#allocation68_spill] sm:$0xff]  ;;  %v3793_v7 = vadd.f32 %v3792_v40, %v3734_v28 }
 0x34e   :  { %v3596_v34 = vadd.f32 %v8442_v49, %v3531_v30  ;;  %v3438_v29 = vadd.f32 %v8443_v15, %v3357_v43 }
 0x34f   :  { %v4016_v44 = vsub.f32 %v4015_v47, %v4825_v53  ;;  %4391 = vmatmul.f32.gmra.mxu0 %v4151_v54  ;;  %v4152_v37 = vand.u32 4294901760, %v4151_v54  ;;  %v3912_v62 = vpop.f32.mrf.mxu0  ;;  %v8444_v47 = vld [vmem:[#allocation72_spill] sm:$0xff]  ;;  %v3797_v16 = vpop.f32.mrf.mxu2 }
 0x350   :  { %v3959_v8 = vpop.f32.mrf.mxu1  ;;  %v3913_v11 = vadd.f32 %v3912_v62, %v3852_v39  ;;  %v3675_v0 = vadd.f32 %v7799_v36, %v3596_v34  ;;  %v3863_v14 = vpop.f32.mrf.mxu3 }
 0x351   :  { %v3960_v2 = vadd.f32 %v3959_v8, %v3909_v19  ;;  %4466 = vmatmul.f32.gmra.mxu1 %v4152_v37  ;;  %v7932_v21 = vadd.f32 -1.0, %v4016_v44  ;;  %v4153_v31 = vsub.f32 %v4151_v54, %v4152_v37  ;;  %v4026_v50 = vmul.f32 0.8, %v4016_v44 }
 0x352   :  { %v3535_v54 = vadd.f32 %v8444_v47, %v3438_v29  ;;  %v3858_v44 = vadd.f32 %v3857_v41, %v3793_v7  ;;  %v3738_v37 = vadd.f32 %v7825_v4, %v3675_v0 }
 0x353   :  { %v4025_v13 = vadd.f32 %v4024_v35, %v3960_v2  ;;  %vm4018_vm3 = vcmp.gt.f32.partialorder %v7932_v21, 0.0  ;;  %v4154_v33 = vand.u32 4294901760, %v4153_v31 }
 0x354   :  { %4856 = vmatmul.msk.f32.gmra.mxu3 %vm4018_vm3, %v5026_v20  ;;  %v4827_v32 = vsel %vm4018_vm3, 1.0, %v5027_v17  ;;  %v3600_v58 = vadd.f32 %v7779_v46, %v3535_v54  ;;  %v3798_v8 = vadd.f32 %v3797_v16, %v3738_v37 }
 0x355   :  { %v4027_v3 = vadd.f32 %v4026_v50, %v4025_v13  ;;  %v4159_v6 = vsub.f32 %v4827_v32, %v4827_v32  ;;  %4155 = vmatmul.f32.gmra.mxu2 %v4154_v33  ;;  %v4036_v12 = vmul.f32 0.9, %v4025_v13 }
 0x356   :  { %v3683_v4 = vadd.f32 %v7823_v51, %v3600_v58  ;;  %v3864_v50 = vadd.f32 %v3863_v14, %v3798_v8 }
 0x357   :  { %v4028_v23 = vsub.f32 %v4027_v3, %v4827_v32  ;;  %4396 = vmatmul.f32.gmra.mxu0 %v4159_v6  ;;  %v4160_v5 = vand.u32 4294901760, %v4159_v6  ;;  %v3916_v52 = vpop.f32.mrf.mxu0  ;;  %v3802_v30 = vpop.f32.mrf.mxu2 }
 0x358   :  { %v3963_v18 = vpop.f32.mrf.mxu1  ;;  %v3917_v22 = vadd.f32 %v3916_v52, %v3858_v44  ;;  %v3742_v27 = vadd.f32 %v7851_v59, %v3683_v4  ;;  %v3869_v43 = vpop.f32.mrf.mxu3 }
 0x359   :  { %v3964_v10 = vadd.f32 %v3963_v18, %v3913_v11  ;;  %4472 = vmatmul.f32.gmra.mxu1 %v4160_v5  ;;  %v7948_v56 = vadd.f32 -1.0, %v4028_v23  ;;  %v4161_v53 = vsub.f32 %v4159_v6, %v4160_v5  ;;  %v4038_v45 = vmul.f32 0.8, %v4028_v23 }
 0x35a   :  { %v3803_v28 = vadd.f32 %v3802_v30, %v3742_v27 }
 0x35b   :  { %v4037_v25 = vadd.f32 %v4036_v12, %v3964_v10  ;;  %vm4030_vm4 = vcmp.gt.f32.partialorder %v7948_v56, 0.0  ;;  %v4162_v42 = vand.u32 4294901760, %v4161_v53 }
 0x35c   :  { %4857 = vmatmul.msk.f32.gmra.mxu3 %vm4030_vm4, %v5026_v20  ;;  %v4829_v19 = vsel %vm4030_vm4, 1.0, %v5027_v17  ;;  %v3870_v34 = vadd.f32 %v3869_v43, %v3803_v28 }
 0x35d   :  { %v4039_v36 = vadd.f32 %v4038_v45, %v4037_v25  ;;  %v4167_v55 = vsub.f32 %v4829_v19, %v4829_v19  ;;  %4163 = vmatmul.f32.gmra.mxu2 %v4162_v42  ;;  %v4048_v2 = vmul.f32 0.9, %v4037_v25 }
 0x35f   :  { %v4040_v24 = vsub.f32 %v4039_v36, %v4829_v19  ;;  %4401 = vmatmul.f32.gmra.mxu0 %v4167_v55  ;;  %v4168_v26 = vand.u32 4294901760, %v4167_v55  ;;  %v3920_v40 = vpop.f32.mrf.mxu0 }
 0x360   :  { %v3967_v62 = vpop.f32.mrf.mxu1  ;;  %v3921_v51 = vadd.f32 %v3920_v40, %v3864_v50 }
 0x361   :  { %v3968_v57 = vadd.f32 %v3967_v62, %v3917_v22  ;;  %4478 = vmatmul.f32.gmra.mxu1 %v4168_v26  ;;  %v7961_v35 = vadd.f32 -1.0, %v4040_v24  ;;  %v4169_v31 = vsub.f32 %v4167_v55, %v4168_v26  ;;  %v4050_v1 = vmul.f32 0.8, %v4040_v24 }
 0x363   :  { %v4049_v38 = vadd.f32 %v4048_v2, %v3968_v57  ;;  %vm4042_vm5 = vcmp.gt.f32.partialorder %v7961_v35, 0.0  ;;  %v4170_v46 = vand.u32 4294901760, %v4169_v31 }
 0x364   :  { %4858 = vmatmul.msk.f32.gmra.mxu3 %vm4042_vm5, %v5026_v20  ;;  %v4831_v13 = vsel %vm4042_vm5, 1.0, %v5027_v17 }
 0x365   :  { %v4051_v9 = vadd.f32 %v4050_v1, %v4049_v38  ;;  %v4175_v60 = vsub.f32 %v4831_v13, %v4831_v13  ;;  %4171 = vmatmul.f32.gmra.mxu2 %v4170_v46  ;;  %v4060_v6 = vmul.f32 0.9, %v4049_v38 }
 0x367   :  { %v4052_v33 = vsub.f32 %v4051_v9, %v4831_v13  ;;  %4406 = vmatmul.f32.gmra.mxu0 %v4175_v60  ;;  %v4176_v32 = vand.u32 4294901760, %v4175_v60  ;;  %v3924_v59 = vpop.f32.mrf.mxu0 }
 0x368   :  { %v3971_v39 = vpop.f32.mrf.mxu1  ;;  %v3925_v52 = vadd.f32 %v3924_v59, %v3870_v34 }
 0x369   :  { %v3972_v3 = vadd.f32 %v3971_v39, %v3921_v51  ;;  %4484 = vmatmul.f32.gmra.mxu1 %v4176_v32  ;;  %v7972_v63 = vadd.f32 -1.0, %v4052_v33  ;;  %v4177_v41 = vsub.f32 %v4175_v60, %v4176_v32  ;;  %v4062_v23 = vmul.f32 0.8, %v4052_v33 }
 0x36b   :  { %v4061_v11 = vadd.f32 %v4060_v6, %v3972_v3  ;;  %vm4054_vm6 = vcmp.gt.f32.partialorder %v7972_v63, 0.0  ;;  %v4178_v5 = vand.u32 4294901760, %v4177_v41 }
 0x36c   :  { %4859 = vmatmul.msk.f32.gmra.mxu3 %vm4054_vm6, %v5026_v20  ;;  %v4833_v49 = vsel %vm4054_vm6, 1.0, %v5027_v17 }
 0x36d   :  { %v4063_v15 = vadd.f32 %v4062_v23, %v4061_v11  ;;  %v4183_v29 = vsub.f32 %v4833_v49, %v4833_v49  ;;  %4179 = vmatmul.f32.gmra.mxu2 %v4178_v5  ;;  %v4072_v53 = vmul.f32 0.9, %v4061_v11 }
 0x36f   :  { %v4064_v18 = vsub.f32 %v4063_v15, %v4833_v49  ;;  %4411 = vmatmul.f32.gmra.mxu0 %v4183_v29  ;;  %v4184_v7 = vand.u32 4294901760, %v4183_v29 }
 0x370   :  { %v3975_v10 = vpop.f32.mrf.mxu1 }
 0x371   :  { %v3976_v12 = vadd.f32 %v3975_v10, %v3925_v52  ;;  %4490 = vmatmul.f32.gmra.mxu1 %v4184_v7  ;;  %v4834_v0 = vadd.f32 -1.0, %v4064_v18  ;;  %v4185_v25 = vsub.f32 %v4183_v29, %v4184_v7  ;;  %v4074_v47 = vmul.f32 0.8, %v4064_v18 }
 0x373   :  { %v4073_v45 = vadd.f32 %v4072_v53, %v3976_v12  ;;  %vm4066_vm7 = vcmp.gt.f32.partialorder %v4834_v0, 0.0  ;;  %v4186_v54 = vand.u32 4294901760, %v4185_v25 }
 0x374   :  { %4860 = vmatmul.msk.f32.gmra.mxu3 %vm4066_vm7, %v5026_v20  ;;  %v4835_v16 = vsel %vm4066_vm7, 1.0, %v5027_v17 }
 0x375   :  { %v4075_v42 = vadd.f32 %v4074_v47, %v4073_v45  ;;  %v4191_v19 = vsub.f32 %v4835_v16, %v4835_v16  ;;  %4187 = vmatmul.f32.gmra.mxu2 %v4186_v54 }
 0x377   :  { %4416 = vmatmul.f32.gmra.mxu0 %v4191_v19  ;;  %v4192_v44 = vand.u32 4294901760, %v4191_v19  ;;  %v4076_v37 = vsub.f32 %v4075_v42, %v4835_v16 }
 0x379   :  { %4496 = vmatmul.f32.gmra.mxu1 %v4192_v44  ;;  %v4836_v36 = vadd.f32 -1.0, %v4076_v37  ;;  %v4193_v55 = vsub.f32 %v4191_v19, %v4192_v44 }
 0x37b   :  { %vm4078_vm8 = vcmp.gt.f32.partialorder %v4836_v36, 0.0  ;;  %v4194_v22 = vand.u32 4294901760, %v4193_v55 }
 0x37c   :  { %4861 = vmatmul.msk.f32.gmra.mxu3 %vm4078_vm8, %v5026_v20  ;;  %v4837_v24 = vsel %vm4078_vm8, 1.0, %v5027_v17 }
 0x37d   :  { %v4199_v26 = vsub.f32 %v4837_v24, %v4837_v24  ;;  %4195 = vmatmul.f32.gmra.mxu2 %v4194_v22 }
 0x37f   :  { %4421 = vmatmul.f32.gmra.mxu0 %v4199_v26  ;;  %v4200_v58 = vand.u32 4294901760, %v4199_v26 }
 0x381   :  { %4502 = vmatmul.f32.gmra.mxu1 %v4200_v58  ;;  %v4201_v14 = vsub.f32 %v4199_v26, %v4200_v58 }
 0x383   :  { %v4202_v62 = vand.u32 4294901760, %v4201_v14 }
 0x384   :  { %4870 = vmatmul.msk.f32.vlgmr.msrb.gmra.mxu3 %vm3994_vm1, %v5026_v20 }
 0x385   :  { %4203 = vmatmul.f32.gmra.mxu2 %v4202_v62 }
 0x38c   :  { %4871 = vmatmul.msk.f32.gmra.mxu3 %vm4006_vm2, %v5026_v20 }
 0x38d   :  { %4862 = vmatmul.msk.f32.vlgmr.msrb.gmra.mxu2 %vm3994_vm1, %v5026_v20 }
 0x394   :  { %4872 = vmatmul.msk.f32.gmra.mxu3 %vm4018_vm3, %v5026_v20 }
 0x395   :  { %4863 = vmatmul.msk.f32.gmra.mxu2 %vm4006_vm2, %v5026_v20 }
 0x39c   :  { %4873 = vmatmul.msk.f32.gmra.mxu3 %vm4030_vm4, %v5026_v20 }
 0x39d   :  { %4864 = vmatmul.msk.f32.gmra.mxu2 %vm4018_vm3, %v5026_v20 }
 0x3a4   :  { %4874 = vmatmul.msk.f32.gmra.mxu3 %vm4042_vm5, %v5026_v20 }
 0x3a5   :  { %4865 = vmatmul.msk.f32.gmra.mxu2 %vm4030_vm4, %v5026_v20 }
 0x3ac   :  { %4875 = vmatmul.msk.f32.gmra.mxu3 %vm4054_vm6, %v5026_v20 }
 0x3ad   :  { %4866 = vmatmul.msk.f32.gmra.mxu2 %vm4042_vm5, %v5026_v20 }
 0x3b4   :  { %4876 = vmatmul.msk.f32.gmra.mxu3 %vm4066_vm7, %v5026_v20 }
 0x3b5   :  { %4867 = vmatmul.msk.f32.gmra.mxu2 %vm4054_vm6, %v5026_v20 }
 0x3bc   :  { %4877 = vmatmul.msk.f32.gmra.mxu3 %vm4078_vm8, %v5026_v20 }
 0x3bd   :  { %4868 = vmatmul.msk.f32.gmra.mxu2 %vm4066_vm7, %v5026_v20 }
 0x3be   :  { %v4387_v46 = vpop.f32.mrf.mxu0 }
 0x3c0   :  { %v4461_v27 = vpop.f32.mrf.mxu1 }
 0x3c1   :  { %v4305_v48 = vpop.f32.mrf.mxu3 }
 0x3c5   :  { %4869 = vmatmul.msk.f32.gmra.mxu2 %vm4078_vm8, %v5026_v20  ;;  %v8046_v20 = vld [vmem:[%s8091_s4] ss:$0 sm:$0xff]  ;;  %s5028_s4 = smov [#allocation10]  }
 0x3c6   :  { %s4801_s16 = sshll.u32 %s5028_s4, 4  ;;  %s4802_s16 = int_to_ptr.vmem [resolvable:$true] %s4801_s16 }
 0x3ca   :  { %v4148_v21 = vpop.f32.mrf.mxu2 }
 0x3cb   :  { %v4149_v9 = vadd.f32 %v8046_v20, %v4148_v21 }
 0x3cc   :  { %v4392_v60 = vpop.f32.mrf.mxu0 }
 0x3cd   :  { %v4306_v51 = vadd.f32 %v4305_v48, %v4149_v9 }
 0x3ce   :  { %v4467_v32 = vpop.f32.mrf.mxu1 }
 0x3cf   :  { %v4309_v61 = vpop.f32.mrf.mxu3  ;;  %v4388_v28 = vadd.f32 %v4387_v46, %v4306_v51 }
 0x3d1   :  { %v4462_v63 = vadd.f32 %v4461_v27, %v4388_v28 }
 0x3d4   :  { %v4397_v43 = vpop.f32.mrf.mxu0 }
 0x3d6   :  { %v4473_v49 = vpop.f32.mrf.mxu1 }
 0x3d7   :  { %v4313_v56 = vpop.f32.mrf.mxu3 }
 0x3d8   :  { %v4156_v8 = vpop.f32.mrf.mxu2 }
 0x3d9   :  { %v4157_v39 = vadd.f32 %v8046_v20, %v4156_v8 }
 0x3db   :  { %v4310_v6 = vadd.f32 %v4309_v61, %v4157_v39 }
 0x3dc   :  { %v4402_v12 = vpop.f32.mrf.mxu0 }
 0x3dd   :  { %v4393_v5 = vadd.f32 %v4392_v60, %v4310_v6 }
 0x3de   :  { %v4479_v16 = vpop.f32.mrf.mxu1 }
 0x3df   :  { %v4317_v57 = vpop.f32.mrf.mxu3  ;;  %v4468_v29 = vadd.f32 %v4467_v32, %v4393_v5 }
 0x3e0   :  { %v4164_v2 = vpop.f32.mrf.mxu2 }
 0x3e1   :  { %v4165_v23 = vadd.f32 %v8046_v20, %v4164_v2 }
 0x3e3   :  { %v4314_v15 = vadd.f32 %v4313_v56, %v4165_v23 }
 0x3e4   :  { %v4407_v48 = vpop.f32.mrf.mxu0 }
 0x3e5   :  { %v4398_v45 = vadd.f32 %v4397_v43, %v4314_v15 }
 0x3e7   :  { %v8033_v35 = vpop.f32.mrf.mxu3  ;;  %v4474_v44 = vadd.f32 %v4473_v49, %v4398_v45 }
 0x3e8   :  { %v4172_v40 = vpop.f32.mrf.mxu2 }
 0x3e9   :  { %v4173_v53 = vadd.f32 %v8046_v20, %v4172_v40  ;;  %v4485_v40 = vpop.f32.mrf.mxu1 }
 0x3eb   :  { %v4318_v42 = vadd.f32 %v4317_v57, %v4173_v53 }
 0x3ed   :  { %v4403_v62 = vadd.f32 %v4402_v12, %v4318_v42 }
 0x3ef   :  { %v8035_v31 = vpop.f32.mrf.mxu3  ;;  %v4480_v2 = vadd.f32 %v4479_v16, %v4403_v62 }
 0x3f0   :  { %v4180_v4 = vpop.f32.mrf.mxu2 }
 0x3f1   :  { %v4181_v22 = vadd.f32 %v8046_v20, %v4180_v4 }
 0x3f3   :  { %v4322_v56 = vadd.f32 %v8033_v35, %v4181_v22 }
 0x3f5   :  { %v4408_v9 = vadd.f32 %v4407_v48, %v4322_v56 }
 0x3f7   :  { %v8037_v38 = vpop.f32.mrf.mxu3 }
 0x3f8   :  { %v8039_v1 = vpop.f32.mrf.mxu2 }
 0x3f9   :  { %v4189_v60 = vadd.f32 %v8046_v20, %v8039_v1  ;;  %v4491_v1 = vpop.f32.mrf.mxu1 }
 0x3ff   :  { %v8041_v13 = vpop.f32.mrf.mxu3 }
 0x400   :  { %v8048_v50 = vpop.f32.mrf.mxu2 }
 0x401   :  { %v4197_v5 = vadd.f32 %v8046_v20, %v8048_v50 }
 0x407   :  { %v4637_v30 = vpop.f32.mrf.mxu3 }
 0x408   :  { %v8051_v33 = vpop.f32.mrf.mxu2 }
 0x40f   :  { %v4641_v3 = vpop.f32.mrf.mxu3 }
 0x410   :  { %v4572_v41 = vpop.f32.mrf.mxu2 }
 0x411   :  { %v4573_v11 = vadd.f32 %v4572_v41, %v4462_v63  ;;  %v4326_v63 = vadd.f32 %v8035_v31, %v4189_v60  ;;  %v4486_v41 = vadd.f32 %v4485_v40, %v4408_v9  ;;  %v4330_v31 = vadd.f32 %v8037_v38, %v4197_v5 }
 0x413   :  { %v4638_v59 = vadd.f32 %v4637_v30, %v4573_v11 }
 0x415   :  { %v4838_v34 = vadd.f32 -1.0, %v4638_v59  ;;  %4685 = vst [vmem:[#allocation10] sm:$0xff] %v4638_v59  ;;  %v4688_v0 = vmul.f32 0.9, %v4638_v59  ;;  %v4690_v47 = vmul.f32 0.8, %v4638_v59 }
 0x417   :  { %vm4681_vm9 = vcmp.gt.f32.partialorder %v4838_v34, 0.0  ;;  %v4645_v18 = vpop.f32.mrf.mxu3 }
 0x418   :  { %v4839_v52 = vsel %vm4681_vm9, 1.0, %v5027_v17  ;;  %v4576_v7 = vpop.f32.mrf.mxu2 }
 0x419   :  { %4684 = vst [vmem:[#allocation9] sm:$0xff] %v4839_v52  ;;  %v4577_v10 = vadd.f32 %v4576_v7, %v4468_v29 }
 0x41b   :  { %v4642_v25 = vadd.f32 %v4641_v3, %v4577_v10  ;;  %v4412_v3 = vpop.f32.mrf.mxu0 }
 0x41c   :  { %v4413_v29 = vadd.f32 %v4412_v3, %v4326_v63 }
 0x41d   :  { %v4689_v54 = vadd.f32 %v4688_v0, %v4642_v25 }
 0x41e   :  { %v4492_v53 = vadd.f32 %v4491_v1, %v4413_v29 }
 0x41f   :  { %v4691_v19 = vadd.f32 %v4690_v47, %v4689_v54  ;;  %v4649_v24 = vpop.f32.mrf.mxu3  ;;  %v4702_v14 = vmul.f32 0.9, %v4689_v54  ;;  %v4205_v54 = vadd.f32 %v8046_v20, %v8051_v33 }
 0x420   :  { %v4580_v37 = vpop.f32.mrf.mxu2 }
 0x421   :  { %v4692_v36 = vsub.f32 %v4691_v19, %v4839_v52  ;;  %v4581_v55 = vadd.f32 %v4580_v37, %v4474_v44  ;;  %v4497_v44 = vpop.f32.mrf.mxu1 }
 0x423   :  { %4699 = vst [vmem:[#allocation10 + $0x8] sm:$0xff] %v4692_v36  ;;  %v4646_v26 = vadd.f32 %v4645_v18, %v4581_v55  ;;  %v4840_v58 = vadd.f32 -1.0, %v4692_v36  ;;  %v4704_v21 = vmul.f32 0.8, %v4692_v36  ;;  %v4417_v0 = vpop.f32.mrf.mxu0  ;;  %v4334_v55 = vadd.f32 %v8041_v13, %v4205_v54 }
 0x424   :  { %v4418_v47 = vadd.f32 %v4417_v0, %v4330_v31 }
 0x425   :  { %vm4694_vm10 = vcmp.gt.f32.partialorder %v4840_v58, 0.0  ;;  %v4703_v61 = vadd.f32 %v4702_v14, %v4646_v26 }
 0x426   :  { %v4841_v8 = vsel %vm4694_vm10, 1.0, %v5027_v17 }
 0x427   :  { %4698 = vst [vmem:[#allocation9 + $0x8] sm:$0xff] %v4841_v8  ;;  %v4705_v57 = vadd.f32 %v4704_v21, %v4703_v61  ;;  %v4716_v32 = vmul.f32 0.9, %v4703_v61  ;;  %v4653_v39 = vpop.f32.mrf.mxu3 }
 0x428   :  { %v4584_v46 = vpop.f32.mrf.mxu2 }
 0x429   :  { %v4706_v4 = vsub.f32 %v4705_v57, %v4841_v8  ;;  %v4585_v27 = vadd.f32 %v4584_v46, %v4480_v2  ;;  %v4503_v57 = vpop.f32.mrf.mxu1 }
 0x42b   :  { %4713 = vst [vmem:[#allocation10 + $0x10] sm:$0xff] %v4706_v4  ;;  %v4650_v30 = vadd.f32 %v4649_v24, %v4585_v27  ;;  %v4842_v51 = vadd.f32 -1.0, %v4706_v4  ;;  %v4718_v28 = vmul.f32 0.8, %v4706_v4  ;;  %v4498_v24 = vadd.f32 %v4497_v44, %v4418_v47  ;;  %v4422_v20 = vpop.f32.mrf.mxu0 }
 0x42c   :  { %v4423_v21 = vadd.f32 %v4422_v20, %v4334_v55 }
 0x42d   :  { %vm4708_vm11 = vcmp.gt.f32.partialorder %v4842_v51, 0.0  ;;  %v4717_v35 = vadd.f32 %v4716_v32, %v4650_v30 }
 0x42e   :  { %v4843_v6 = vsel %vm4708_vm11, 1.0, %v5027_v17  ;;  %v4504_v40 = vadd.f32 %v4503_v57, %v4423_v21 }
 0x42f   :  { %4712 = vst [vmem:[#allocation9 + $0x10] sm:$0xff] %v4843_v6  ;;  %v4719_v43 = vadd.f32 %v4718_v28, %v4717_v35  ;;  %v4730_v15 = vmul.f32 0.9, %v4717_v35  ;;  %v4657_v7 = vpop.f32.mrf.mxu3 }
 0x430   :  { %v4588_v11 = vpop.f32.mrf.mxu2 }
 0x431   :  { %v4720_v23 = vsub.f32 %v4719_v43, %v4843_v6  ;;  %v4589_v59 = vadd.f32 %v4588_v11, %v4486_v41 }
 0x433   :  { %4727 = vst [vmem:[#allocation10 + $0x18] sm:$0xff] %v4720_v23  ;;  %v4654_v49 = vadd.f32 %v4653_v39, %v4589_v59  ;;  %v4844_v34 = vadd.f32 -1.0, %v4720_v23  ;;  %v4732_v18 = vmul.f32 0.8, %v4720_v23 }
 0x435   :  { %vm4722_vm12 = vcmp.gt.f32.partialorder %v4844_v34, 0.0  ;;  %v4731_v52 = vadd.f32 %v4730_v15, %v4654_v49 }
 0x436   :  { %v4845_v10 = vsel %vm4722_vm12, 1.0, %v5027_v17 }
 0x437   :  { %4726 = vst [vmem:[#allocation9 + $0x18] sm:$0xff] %v4845_v10  ;;  %v4733_v12 = vadd.f32 %v4732_v18, %v4731_v52  ;;  %v4744_v19 = vmul.f32 0.9, %v4731_v52  ;;  %v4661_v26 = vpop.f32.mrf.mxu3 }
 0x438   :  { %v4592_v25 = vpop.f32.mrf.mxu2 }
 0x439   :  { %v4734_v45 = vsub.f32 %v4733_v12, %v4845_v10  ;;  %v4593_v50 = vadd.f32 %v4592_v25, %v4492_v53 }
 0x43b   :  { %4741 = vst [vmem:[#allocation10 + $0x20] sm:$0xff] %v4734_v45  ;;  %v4658_v16 = vadd.f32 %v4657_v7, %v4593_v50  ;;  %v4846_v42 = vadd.f32 -1.0, %v4734_v45  ;;  %v4746_v37 = vmul.f32 0.8, %v4734_v45 }
 0x43d   :  { %vm4736_vm13 = vcmp.gt.f32.partialorder %v4846_v42, 0.0  ;;  %v4745_v38 = vadd.f32 %v4744_v19, %v4658_v16 }
 0x43e   :  { %v4847_v36 = vsel %vm4736_vm13, 1.0, %v5027_v17 }
 0x43f   :  { %4740 = vst [vmem:[#allocation9 + $0x20] sm:$0xff] %v4847_v36  ;;  %v4747_v22 = vadd.f32 %v4746_v37, %v4745_v38  ;;  %v4758_v61 = vmul.f32 0.9, %v4745_v38  ;;  %v4665_v9 = vpop.f32.mrf.mxu3 }
 0x440   :  { %v4596_v58 = vpop.f32.mrf.mxu2 }
 0x441   :  { %v4748_v14 = vsub.f32 %v4747_v22, %v4847_v36  ;;  %v4597_v62 = vadd.f32 %v4596_v58, %v4498_v24 }
 0x443   :  { %4755 = vst [vmem:[#allocation10 + $0x28] sm:$0xff] %v4748_v14  ;;  %v4662_v33 = vadd.f32 %v4661_v26, %v4597_v62  ;;  %v4848_v48 = vadd.f32 -1.0, %v4748_v14  ;;  %v4760_v8 = vmul.f32 0.8, %v4748_v14 }
 0x445   :  { %vm4750_vm14 = vcmp.gt.f32.partialorder %v4848_v48, 0.0  ;;  %v4759_v56 = vadd.f32 %v4758_v61, %v4662_v33 }
 0x446   :  { %v4849_v2 = vsel %vm4750_vm14, 1.0, %v5027_v17 }
 0x447   :  { %4754 = vst [vmem:[#allocation9 + $0x28] sm:$0xff] %v4849_v2  ;;  %v4761_v13 = vadd.f32 %v4760_v8, %v4759_v56  ;;  %v4772_v51 = vmul.f32 0.9, %v4759_v56 }
 0x448   :  { %v4600_v46 = vpop.f32.mrf.mxu2 }
 0x449   :  { %v4762_v4 = vsub.f32 %v4761_v13, %v4849_v2  ;;  %v4601_v27 = vadd.f32 %v4600_v46, %v4504_v40 }
 0x44b   :  { %4769 = vst [vmem:[#allocation10 + $0x30] sm:$0xff] %v4762_v4  ;;  %v4666_v60 = vadd.f32 %v4665_v9, %v4601_v27  ;;  %v4850_v30 = vadd.f32 -1.0, %v4762_v4  ;;  %v4774_v39 = vmul.f32 0.8, %v4762_v4 }
 0x44d   :  { %vm4764_vm15 = vcmp.gt.f32.partialorder %v4850_v30, 0.0  ;;  %v4773_v32 = vadd.f32 %v4772_v51, %v4666_v60 }
 0x44e   :  { %v4851_v35 = vsel %vm4764_vm15, 1.0, %v5027_v17 }
 0x44f   :  { %4768 = vst [vmem:[#allocation9 + $0x30] sm:$0xff] %v4851_v35  ;;  %v4775_v28 = vadd.f32 %v4774_v39, %v4773_v32 }
 0x451   :  { %v4776_v3 = vsub.f32 %v4775_v28, %v4851_v35 }
 0x453   :  { %v4852_v6 = vadd.f32 -1.0, %v4776_v3  ;;  %4783 = vst [vmem:[#allocation10 + $0x38] sm:$0xff] %v4776_v3 }
 0x454   :  { %4809 = dma.vmem_to_hbm [thread:$0]  %s4802_s16, 1024, %s4804_s19, [#allocation11], %s5020_s29, %s5020_s29, %s5021_s30  }
 0x455   :  { %vm4778_vm0 = vcmp.gt.f32.partialorder %v4852_v6, 0.0 }
 0x456   :  { %v4853_v63 = vsel %vm4778_vm0, 1.0, %v5027_v17 }
 0x457   :  { %4782 = vst [vmem:[#allocation9 + $0x38] sm:$0xff] %v4853_v63 }
 0x458   :  { %4796 = dma.vmem_to_hbm [thread:$0]  %s4789_s21, 1024, %s4791_s24, [#allocation5], %s5020_s29, %s5020_s29, %s5021_s30  }
 0x459   :  { %5015 = dma.done.wait [#allocation5], 1024  }
 0x45a   :  { %5016 = vsyncadd [#allocation5], 4294966272 }
 0x45b   :  { %5017 = dma.done.wait [#allocation11], 1024  }
 0x45c   :  { %5018 = vsyncadd [#allocation11], 4294966272 }
 0x45d   :  { %4818 = vsyncpa [#allocation4], 1 }
 0x45e   :  { %4819 = vsyncpa [#allocation7], 1 }
 0x45f   :  { %4820 = vsyncpa [#allocation5], 1 }
 0x460   :  { %4821 = vsyncpa [#allocation11], 1 }

</bundles_post_ra>
